<compile_context>
chip_gen: v6e
topology: v6e:2x2x1
jax: 0.10.0
libtpu: 0.0.40
codegen_flags: <defaults>
</compile_context>

<pallas_src>
import functools
import math

import jax
import jax.numpy as jnp
from jax.experimental import pallas as pl
from jax.experimental.pallas import tpu as pltpu


# ----------------------------------------------------------------------------
# In-kernel helpers (operate on values loaded from VMEM refs)
# ----------------------------------------------------------------------------
def _ln(x, g, b, eps):
    """LayerNorm over the last axis, f32 math.  x:(M,D), g/b:(1,D)."""
    mean = jnp.mean(x, axis=-1, keepdims=True)
    var = jnp.mean(jnp.square(x - mean), axis=-1, keepdims=True)
    return (x - mean) * jax.lax.rsqrt(var + eps) * g + b


def _mha(q, k, v, wo_bf, bo, *, B, S, H):
    """Multi-head attention + fused output projection.

    q/k/v: (B*S, D) f32 (already projected, batch-major rows b*S+s).
    wo_bf: (D, D) bf16, bo: (1, D) f32.  Returns (B*S, D) f32.
    Batch is handled by batched dot_generals ('bqd,bkd->bqk'); heads are a small static
    loop with the per-head output projection folded in (no lane-dim head concat).
    """
    M, D = q.shape
    Dh = D // H
    scale = 1.0 / math.sqrt(Dh)
    bf = jnp.bfloat16
    # Cast once, reshape once (major-dim split only; last dim untouched).
    q3 = q.astype(bf).reshape(B, S, D)
    k3 = k.astype(bf).reshape(B, S, D)
    v3 = v.astype(bf).reshape(B, S, D)

    out3 = None
    for h in range(H):
        sl = slice(h * Dh, (h + 1) * Dh)
        s = jax.lax.dot_general(                       # (B, S, S) f32
            q3[:, :, sl], k3[:, :, sl],
            (((2,), (2,)), ((0,), (0,))),
            preferred_element_type=jnp.float32) * scale
        s = s - jnp.max(s, axis=-1, keepdims=True)
        p = jnp.exp(s)
        p = p * pl.reciprocal(jnp.sum(p, axis=-1, keepdims=True), approx=True)
        oh = jax.lax.dot_general(                      # (B, S, Dh) f32
            p.astype(bf), v3[:, :, sl],
            (((2,), (1,)), ((0,), (0,))),
            preferred_element_type=jnp.float32)
        contrib = jax.lax.dot_general(                 # (B, S, D) f32
            oh.astype(bf), wo_bf[sl, :],
            (((2,), (0,)), ((), ())),
            preferred_element_type=jnp.float32)
        out3 = contrib if out3 is None else out3 + contrib
    return out3.reshape(M, D) + bo


# ----------------------------------------------------------------------------
# Single fused transformer kernel: grid = (Le + Ld,)
#   l <  Le : encoder layer l
#   l >= Le : decoder layer l - Le   (cross-attn weight specs are index-clamped)
# ----------------------------------------------------------------------------
def _transformer_kernel(emb_ref, wqkv_ref, bqkv_ref, wo_ref, bo_ref, n1g_ref, n1b_ref,
                        w1_ref, b1_ref, w2_ref, b2_ref, nfg_ref, nfb_ref,
                        c_wq_ref, c_bq_ref, c_wkv_ref, c_bkv_ref, c_wo_ref, c_bo_ref,
                        n2g_ref, n2b_ref,
                        enc_ng_ref, enc_nb_ref, dec_ng_ref, dec_nb_ref,
                        fcw_ref, fcb_ref,
                        out_ref,
                        x_sc, mem_sc,
                        *, B, S, H, Le, eps, ffn_chunk):
    l = pl.program_id(0)
    L = pl.num_programs(0)
    bf = jnp.bfloat16

    # (Re)load the embedding at the start of the encoder (l==0) and decoder (l==Le).
    @pl.when(jnp.logical_or(l == 0, l == Le))
    def _reset():
        x_sc[...] = emb_ref[...]

    x = x_sc[...]                                       # (M, D) f32

    # ---- self-attention block (common to encoder & decoder layers) ----
    x_bf = x.astype(bf)
    q = jnp.dot(x_bf, wqkv_ref[0], preferred_element_type=jnp.float32) + bqkv_ref[0]
    k = jnp.dot(x_bf, wqkv_ref[1], preferred_element_type=jnp.float32) + bqkv_ref[1]
    v = jnp.dot(x_bf, wqkv_ref[2], preferred_element_type=jnp.float32) + bqkv_ref[2]
    sa = _mha(q, k, v, wo_ref[...], bo_ref[...], B=B, S=S, H=H)
    x = _ln(x + sa, n1g_ref[...], n1b_ref[...], eps)
    x_sc[...] = x

    # ---- cross-attention block (decoder layers only; K/V from encoder memory) ----
    @pl.when(l >= Le)
    def _cross():
        xd = x_sc[...]
        mem_bf = mem_sc[...].astype(bf)
        cq = jnp.dot(xd.astype(bf), c_wq_ref[...],
                     preferred_element_type=jnp.float32) + c_bq_ref[...]
        ck = jnp.dot(mem_bf, c_wkv_ref[0],
                     preferred_element_type=jnp.float32) + c_bkv_ref[0]
        cv = jnp.dot(mem_bf, c_wkv_ref[1],
                     preferred_element_type=jnp.float32) + c_bkv_ref[1]
        ca = _mha(cq, ck, cv, c_wo_ref[...], c_bo_ref[...], B=B, S=S, H=H)
        x_sc[...] = _ln(xd + ca, n2g_ref[...], n2b_ref[...], eps)

    # ---- feed-forward block, chunked along F (bf16 intermediate, f32 accumulator) ----
    x2 = x_sc[...]
    x2_bf = x2.astype(bf)
    F = w1_ref.shape[-1]
    D = x2.shape[-1]
    acc = jnp.zeros((x2.shape[0], D), jnp.float32)
    for c in range(0, F, ffn_chunk):
        hc = jnp.dot(x2_bf, w1_ref[:, c:c + ffn_chunk],
                     preferred_element_type=jnp.float32)
        hc = jnp.maximum(hc + b1_ref[:, c:c + ffn_chunk], 0.0).astype(bf)
        acc = acc + jnp.dot(hc, w2_ref[c:c + ffn_chunk, :],
                            preferred_element_type=jnp.float32)
    x3 = _ln(x2 + acc + b2_ref[...], nfg_ref[...], nfb_ref[...], eps)
    x_sc[...] = x3

    # ---- encoder final norm -> memory scratch (end of encoder phase) ----
    @pl.when(l == Le - 1)
    def _enc_final():
        mem_sc[...] = _ln(x3, enc_ng_ref[...], enc_nb_ref[...], eps)

    # ---- decoder final norm + classifier on the last-token rows only ----
    @pl.when(l == L - 1)
    def _finalize():
        y = _ln(x3, dec_ng_ref[...], dec_nb_ref[...], eps)
        # rows b*S + (S-1): last time step of every batch (batch-major layout)
        last = jnp.concatenate([y[b * S + S - 1: b * S + S, :] for b in range(B)], axis=0)
        out_ref[...] = jnp.dot(last.astype(bf), fcw_ref[...],
                               preferred_element_type=jnp.float32) + fcb_ref[...]


# ----------------------------------------------------------------------------
# pallas_call wrapper
# ----------------------------------------------------------------------------
def transformer_model_forward(params, x_tokens, *, num_heads, num_encoder_layers,
                              output_size):
    S, B = x_tokens.shape
    D = params["embedding"].shape[1]
    M = B * S
    L = params["wqkv"].shape[0]
    Le = num_encoder_layers
    F = params["w1"].shape[-1]
    O_pad = params["fc_w"].shape[-1]
    ffn_chunk = 512 if F % 512 == 0 else F

    # Embedding gather kept in plain JAX glue; rows laid out batch-major (b*S + s).
    emb = jnp.take(params["embedding"], x_tokens.T.reshape(-1), axis=0)   # (M, D) f32

    def const(shape):
        return pl.BlockSpec(tuple(shape), lambda l: (0,) * len(shape))

    def per_layer(shape):
        return pl.BlockSpec((None,) + tuple(shape),
                            lambda l: (l,) + (0,) * len(shape))

    def per_dec_layer(shape):
        # Clamp to decoder layer 0 during the encoder phase (block stays resident,
        # re-fetched only once per distinct decoder layer).
        return pl.BlockSpec((None,) + tuple(shape),
                            lambda l: (jnp.maximum(l - Le, 0),) + (0,) * len(shape))

    in_specs = [
        const((M, D)),                 # emb
        per_layer((3, D, D)),          # wqkv   (q/k/v weights, leading-axis indexed)
        per_layer((3, 1, D)),          # bqkv
        per_layer((D, D)),             # wo
        per_layer((1, D)),             # bo
        per_layer((1, D)),             # n1g
        per_layer((1, D)),             # n1b
        per_layer((D, F)),             # w1
        per_layer((1, F)),             # b1
        per_layer((F, D)),             # w2
        per_layer((1, D)),             # b2
        per_layer((1, D)),             # nfg   (FFN norm: enc norm2 / dec norm3)
        per_layer((1, D)),             # nfb
        per_dec_layer((D, D)),         # c_wq
        per_dec_layer((1, D)),         # c_bq
        per_dec_layer((2, D, D)),      # c_wkv
        per_dec_layer((2, 1, D)),      # c_bkv
        per_dec_layer((D, D)),         # c_wo
        per_dec_layer((1, D)),         # c_bo
        per_dec_layer((1, D)),         # n2g
        per_dec_layer((1, D)),         # n2b
        const((1, D)),                 # enc final norm gamma
        const((1, D)),                 # enc final norm beta
        const((1, D)),                 # dec final norm gamma
        const((1, D)),                 # dec final norm beta
        const((D, O_pad)),             # fc_w (lane-dense padded)
        const((1, O_pad)),             # fc_b
    ]

    out = pl.pallas_call(
        functools.partial(_transformer_kernel, B=B, S=S, H=num_heads, Le=Le,
                          eps=1e-5, ffn_chunk=ffn_chunk),
        grid=(L,),
        in_specs=in_specs,
        out_specs=pl.BlockSpec((B, O_pad), lambda l: (0, 0)),
        out_shape=jax.ShapeDtypeStruct((B, O_pad), jnp.float32),
        scratch_shapes=[pltpu.VMEM((M, D), jnp.float32),     # running activation
                        pltpu.VMEM((M, D), jnp.float32)],    # encoder memory
        compiler_params=pltpu.CompilerParams(
            dimension_semantics=("arbitrary",),
            vmem_limit_bytes=32 * 1024 * 1024),
    )(emb,
      params["wqkv"], params["bqkv"], params["wo"], params["bo"],
      params["n1g"], params["n1b"],
      params["w1"], params["b1"], params["w2"], params["b2"],
      params["nfg"], params["nfb"],
      params["c_wq"], params["c_bq"], params["c_wkv"], params["c_bkv"],
      params["c_wo"], params["c_bo"], params["n2g"], params["n2b"],
      params["enc_ng"], params["enc_nb"], params["dec_ng"], params["dec_nb"],
      params["fc_w"], params["fc_b"])

    return out[:, :output_size]


# ----------------------------------------------------------------------------
# Pure-JAX reference (f32 math over the same, bf16-quantized, parameters)
# ----------------------------------------------------------------------------
def _reference_forward(params, x_tokens, *, num_heads, num_encoder_layers, output_size):
    f32 = jnp.float32
    S, B = x_tokens.shape
    D = params["embedding"].shape[1]
    H = num_heads
    Dh = D // H
    Le = num_encoder_layers
    L = params["wqkv"].shape[0]
    eps = 1e-5

    def ln(x, g, b):
        m = jnp.mean(x, -1, keepdims=True)
        v = jnp.mean((x - m) ** 2, -1, keepdims=True)
        return (x - m) * jax.lax.rsqrt(v + eps) * g + b

    def mha(q, k, v, wo, bo):
        outs = []
        for b in range(B):
            qb, kb, vb = q[b * S:(b + 1) * S], k[b * S:(b + 1) * S], v[b * S:(b + 1) * S]
            heads = []
            for h in range(H):
                sl = slice(h * Dh, (h + 1) * Dh)
                s = (qb[:, sl] @ kb[:, sl].T) / math.sqrt(Dh)
                heads.append(jax.nn.softmax(s, axis=-1) @ vb[:, sl])
            outs.append(jnp.concatenate(heads, axis=1) @ wo.astype(f32) + bo)
        return jnp.concatenate(outs, axis=0)

    def self_block(x, li):
        wq, wk, wv = (params["wqkv"][li, i].astype(f32) for i in range(3))
        bq, bk, bv = (params["bqkv"][li, i] for i in range(3))
        a = mha(x @ wq + bq, x @ wk + bk, x @ wv + bv,
                params["wo"][li], params["bo"][li])
        return ln(x + a, params["n1g"][li], params["n1b"][li])

    def ffn_block(x, li):
        h = jnp.maximum(x @ params["w1"][li].astype(f32) + params["b1"][li], 0.0)
        y = x + h @ params["w2"][li].astype(f32) + params["b2"][li]
        return ln(y, params["nfg"][li], params["nfb"][li])

    emb = jnp.take(params["embedding"], x_tokens.T.reshape(-1), axis=0)   # (B*S, D)

    mem = emb
    for li in range(Le):
        mem = ffn_block(self_block(mem, li), li)
    mem = ln(mem, params["enc_ng"], params["enc_nb"])

    out = emb
    for li in range(Le, L):
        dl = li - Le
        x = self_block(out, li)
        cq = x @ params["c_wq"][dl].astype(f32) + params["c_bq"][dl]
        ck = mem @ params["c_wkv"][dl, 0].astype(f32) + params["c_bkv"][dl, 0]
        cv = mem @ params["c_wkv"][dl, 1].astype(f32) + params["c_bkv"][dl, 1]
        a = mha(cq, ck, cv, params["c_wo"][dl], params["c_bo"][dl])
        x = ln(x + a, params["n2g"][dl], params["n2b"][dl])
        out = ffn_block(x, li)
    out = ln(out, params["dec_ng"], params["dec_nb"])

    last = out.reshape(B, S, D)[:, -1, :]
    logits = last @ params["fc_w"].astype(f32) + params["fc_b"]
    return logits[:, :output_size]


# ----------------------------------------------------------------------------
# Deterministic synthetic parameter init (shapes follow the PyTorch module)
# Encoder layers occupy indices [0, Le); decoder layers [Le, Le+Ld) in shared stacks.
# ----------------------------------------------------------------------------
def init_params(seed, input_size, output_size, d_model, num_heads,
                num_encoder_layers, num_decoder_layers=6, dim_feedforward=2048):
    D, F = d_model, dim_feedforward
    Le, Ld = num_encoder_layers, num_decoder_layers
    L = Le + Ld
    bf16 = jnp.bfloat16
    key = jax.random.PRNGKey(seed)

    def nxt():
        nonlocal key
        key, sub = jax.random.split(key)
        return sub

    def dense(shape, dtype=jnp.float32):
        return (0.02 * jax.random.normal(nxt(), shape, jnp.float32)).astype(dtype)

    ones = lambda s: jnp.ones(s, jnp.float32)
    zeros = lambda s: jnp.zeros(s, jnp.float32)

    # Pad the classifier to a lane-dense (multiple of 128) output width.
    O_pad = max(128, ((output_size + 127) // 128) * 128)
    fc_w = jnp.zeros((D, O_pad), jnp.float32).at[:, :output_size].set(
        dense((D, output_size))).astype(bf16)
    fc_b = jnp.zeros((1, O_pad), jnp.float32).at[:, :output_size].set(
        dense((1, output_size)))

    return dict(
        embedding=dense((input_size, D)),
        # self-attention + FFN, stacked over all L layers (encoder first, then decoder):
        wqkv=dense((L, 3, D, D), bf16), bqkv=dense((L, 3, 1, D)),
        wo=dense((L, D, D), bf16), bo=dense((L, 1, D)),
        n1g=ones((L, 1, D)), n1b=zeros((L, 1, D)),
        w1=dense((L, D, F), bf16), b1=dense((L, 1, F)),
        w2=dense((L, F, D), bf16), b2=dense((L, 1, D)),
        nfg=ones((L, 1, D)), nfb=zeros((L, 1, D)),
        # cross-attention, decoder layers only:
        c_wq=dense((Ld, D, D), bf16), c_bq=dense((Ld, 1, D)),
        c_wkv=dense((Ld, 2, D, D), bf16), c_bkv=dense((Ld, 2, 1, D)),
        c_wo=dense((Ld, D, D), bf16), c_bo=dense((Ld, 1, D)),
        n2g=ones((Ld, 1, D)), n2b=zeros((Ld, 1, D)),
        # final norms + classifier:
        enc_ng=ones((1, D)), enc_nb=zeros((1, D)),
        dec_ng=ones((1, D)), dec_nb=zeros((1, D)),
        fc_w=fc_w, fc_b=fc_b,
    )


# ----------------------------------------------------------------------------
if __name__ == "__main__":
    # Small, module-consistent shapes.
    input_size, output_size = 50, 10            # stand-ins for data.pth values
    d_model, num_heads, num_encoder_layers = 32, 4, 2
    num_decoder_layers, dim_feedforward = 6, 2048   # nn.Transformer defaults
    seq_len, batch = 8, 2

    params = init_params(0, input_size, output_size, d_model, num_heads,
                         num_encoder_layers, num_decoder_layers, dim_feedforward)

    x = jax.random.randint(jax.random.PRNGKey(0), (seq_len, batch), 0, input_size,
                           dtype=jnp.int32)

    fwd = jax.jit(functools.partial(transformer_model_forward,
                                    num_heads=num_heads,
                                    num_encoder_layers=num_encoder_layers,
                                    output_size=output_size))
    out = jax.block_until_ready(fwd(params, x))

    assert out.shape == (batch, output_size), out.shape
    assert bool(jnp.all(jnp.isfinite(out)))

    # Numerical check against a pure-JAX f32 reference on the same parameters
    # (kernel uses bf16 MXU operands + approx reciprocal, so allow a small tolerance).
    ref = _reference_forward(params, x, num_heads=num_heads,
                             num_encoder_layers=num_encoder_layers,
                             output_size=output_size)
    assert bool(jnp.max(jnp.abs(out - ref)) < 5e-2), (out, ref)

    print("KERNEL_OK")
</pallas_src>

<mosaic_0001>
module attributes {stable_mosaic.version = 11 : i64} {
  func.func @_transformer_kernel(%arg0: i32, %arg1: memref<16x32xf32, #tpu.memory_space<vmem>>, %arg2: memref<1x3x32x32xbf16, #tpu.memory_space<vmem>>, %arg3: memref<1x3x1x32xf32, #tpu.memory_space<vmem>>, %arg4: memref<1x32x32xbf16, #tpu.memory_space<vmem>>, %arg5: memref<1x1x32xf32, #tpu.memory_space<vmem>>, %arg6: memref<1x1x32xf32, #tpu.memory_space<vmem>>, %arg7: memref<1x1x32xf32, #tpu.memory_space<vmem>>, %arg8: memref<1x32x2048xbf16, #tpu.memory_space<vmem>>, %arg9: memref<1x1x2048xf32, #tpu.memory_space<vmem>>, %arg10: memref<1x2048x32xbf16, #tpu.memory_space<vmem>>, %arg11: memref<1x1x32xf32, #tpu.memory_space<vmem>>, %arg12: memref<1x1x32xf32, #tpu.memory_space<vmem>>, %arg13: memref<1x1x32xf32, #tpu.memory_space<vmem>>, %arg14: memref<1x32x32xbf16, #tpu.memory_space<vmem>>, %arg15: memref<1x1x32xf32, #tpu.memory_space<vmem>>, %arg16: memref<1x2x32x32xbf16, #tpu.memory_space<vmem>>, %arg17: memref<1x2x1x32xf32, #tpu.memory_space<vmem>>, %arg18: memref<1x32x32xbf16, #tpu.memory_space<vmem>>, %arg19: memref<1x1x32xf32, #tpu.memory_space<vmem>>, %arg20: memref<1x1x32xf32, #tpu.memory_space<vmem>>, %arg21: memref<1x1x32xf32, #tpu.memory_space<vmem>>, %arg22: memref<1x32xf32, #tpu.memory_space<vmem>>, %arg23: memref<1x32xf32, #tpu.memory_space<vmem>>, %arg24: memref<1x32xf32, #tpu.memory_space<vmem>>, %arg25: memref<1x32xf32, #tpu.memory_space<vmem>>, %arg26: memref<32x128xbf16, #tpu.memory_space<vmem>>, %arg27: memref<1x128xf32, #tpu.memory_space<vmem>>, %arg28: memref<2x128xf32, #tpu.memory_space<vmem>>, %arg29: memref<16x32xf32, #tpu.memory_space<vmem>>, %arg30: memref<16x32xf32, #tpu.memory_space<vmem>>) attributes {dimension_semantics = [#tpu.dimension_semantics<arbitrary>], iteration_bounds = array<i64: 8>, scalar_prefetch = 0 : i64, scratch_operands = 2 : i64, tpu.core_type = #tpu.core_type<tc>, window_params = [{pipeline_mode = #tpu.pipeline_mode<synchronous>, transform_indices = @transform_0, window_bounds = array<i64: 16, 32>}, {transform_indices = @transform_1, window_bounds = array<i64: 1, 3, 32, 32>}, {transform_indices = @transform_2, window_bounds = array<i64: 1, 3, 1, 32>}, {transform_indices = @transform_3, window_bounds = array<i64: 1, 32, 32>}, {transform_indices = @transform_4, window_bounds = array<i64: 1, 1, 32>}, {transform_indices = @transform_5, window_bounds = array<i64: 1, 1, 32>}, {transform_indices = @transform_6, window_bounds = array<i64: 1, 1, 32>}, {transform_indices = @transform_7, window_bounds = array<i64: 1, 32, 2048>}, {transform_indices = @transform_8, window_bounds = array<i64: 1, 1, 2048>}, {transform_indices = @transform_9, window_bounds = array<i64: 1, 2048, 32>}, {transform_indices = @transform_10, window_bounds = array<i64: 1, 1, 32>}, {transform_indices = @transform_11, window_bounds = array<i64: 1, 1, 32>}, {transform_indices = @transform_12, window_bounds = array<i64: 1, 1, 32>}, {transform_indices = @transform_13, window_bounds = array<i64: 1, 32, 32>}, {transform_indices = @transform_14, window_bounds = array<i64: 1, 1, 32>}, {transform_indices = @transform_15, window_bounds = array<i64: 1, 2, 32, 32>}, {transform_indices = @transform_16, window_bounds = array<i64: 1, 2, 1, 32>}, {transform_indices = @transform_17, window_bounds = array<i64: 1, 32, 32>}, {transform_indices = @transform_18, window_bounds = array<i64: 1, 1, 32>}, {transform_indices = @transform_19, window_bounds = array<i64: 1, 1, 32>}, {transform_indices = @transform_20, window_bounds = array<i64: 1, 1, 32>}, {pipeline_mode = #tpu.pipeline_mode<synchronous>, transform_indices = @transform_21, window_bounds = array<i64: 1, 32>}, {pipeline_mode = #tpu.pipeline_mode<synchronous>, transform_indices = @transform_22, window_bounds = array<i64: 1, 32>}, {pipeline_mode = #tpu.pipeline_mode<synchronous>, transform_indices = @transform_23, window_bounds = array<i64: 1, 32>}, {pipeline_mode = #tpu.pipeline_mode<synchronous>, transform_indices = @transform_24, window_bounds = array<i64: 1, 32>}, {pipeline_mode = #tpu.pipeline_mode<synchronous>, transform_indices = @transform_25, window_bounds = array<i64: 32, 128>}, {pipeline_mode = #tpu.pipeline_mode<synchronous>, transform_indices = @transform_26, window_bounds = array<i64: 1, 128>}, {pipeline_mode = #tpu.pipeline_mode<synchronous>, transform_indices = @transform_27, window_bounds = array<i64: 2, 128>}]} {
    %c0_i32 = arith.constant 0 : i32
    %0 = arith.cmpi eq, %arg0, %c0_i32 : i32
    %c2_i32 = arith.constant 2 : i32
    %1 = arith.cmpi eq, %arg0, %c2_i32 : i32
    %2 = arith.ori %0, %1 : i1
    %3 = arith.extui %2 : i1 to i32
    %c0_i32_0 = arith.constant 0 : i32
    %4 = arith.cmpi ne, %3, %c0_i32_0 : i32
    scf.if %4 {
      %c0_137 = arith.constant 0 : index
      %c0_138 = arith.constant 0 : index
      %256 = vector.load %arg1[%c0_137, %c0_138] : memref<16x32xf32, #tpu.memory_space<vmem>>, vector<16x32xf32>
      %c0_139 = arith.constant 0 : index
      %c0_140 = arith.constant 0 : index
      %257 = vector.load %arg29[%c0_139, %c0_140] : memref<16x32xf32, #tpu.memory_space<vmem>>, vector<16x32xf32>
      tpu.vector_store %arg29[%c0_139, %c0_140], %256 {strides = array<i32>} : memref<16x32xf32, #tpu.memory_space<vmem>>, vector<16x32xf32>,
    } else {
    }
    %c0 = arith.constant 0 : index
    %c0_1 = arith.constant 0 : index
    %5 = vector.load %arg29[%c0, %c0_1] : memref<16x32xf32, #tpu.memory_space<vmem>>, vector<16x32xf32>
    %6 = arith.truncf %5 : vector<16x32xf32> to vector<16x32xbf16>
    %c0_2 = arith.constant 0 : index
    %c0_3 = arith.constant 0 : index
    %c0_4 = arith.constant 0 : index
    %c0_5 = arith.constant 0 : index
    %7 = vector.load %arg2[%c0_2, %c0_3, %c0_4, %c0_5] : memref<1x3x32x32xbf16, #tpu.memory_space<vmem>>, vector<1x1x32x32xbf16>
    %8 = vector.shape_cast %7 : vector<1x1x32x32xbf16> to vector<32x32xbf16>
    %cst = arith.constant dense<0.000000e+00> : vector<16x32xf32>
    %9 = tpu.matmul %6, %8, %cst {dimension_numbers = #tpu.dot_dimension_numbers<[1], [0], [0], [1], [0, 0, 1, 1], [], []>} : vector<16x32xbf16>, vector<32x32xbf16>, vector<16x32xf32> -> vector<16x32xf32>
    %c0_6 = arith.constant 0 : index
    %c0_7 = arith.constant 0 : index
    %c0_8 = arith.constant 0 : index
    %c0_9 = arith.constant 0 : index
    %10 = vector.load %arg3[%c0_6, %c0_7, %c0_8, %c0_9] : memref<1x3x1x32xf32, #tpu.memory_space<vmem>>, vector<1x1x1x32xf32>
    %11 = vector.shape_cast %10 : vector<1x1x1x32xf32> to vector<1x32xf32>
    %12 = vector.broadcast %11 : vector<1x32xf32> to vector<16x32xf32>
    %13 = arith.addf %9, %12 : vector<16x32xf32>
    %c0_10 = arith.constant 0 : index
    %c1 = arith.constant 1 : index
    %c0_11 = arith.constant 0 : index
    %c0_12 = arith.constant 0 : index
    %14 = vector.load %arg2[%c0_10, %c1, %c0_11, %c0_12] : memref<1x3x32x32xbf16, #tpu.memory_space<vmem>>, vector<1x1x32x32xbf16>
    %15 = vector.shape_cast %14 : vector<1x1x32x32xbf16> to vector<32x32xbf16>
    %cst_13 = arith.constant dense<0.000000e+00> : vector<16x32xf32>
    %16 = tpu.matmul %6, %15, %cst_13 {dimension_numbers = #tpu.dot_dimension_numbers<[1], [0], [0], [1], [0, 0, 1, 1], [], []>} : vector<16x32xbf16>, vector<32x32xbf16>, vector<16x32xf32> -> vector<16x32xf32>
    %c0_14 = arith.constant 0 : index
    %c1_15 = arith.constant 1 : index
    %c0_16 = arith.constant 0 : index
    %c0_17 = arith.constant 0 : index
    %17 = vector.load %arg3[%c0_14, %c1_15, %c0_16, %c0_17] : memref<1x3x1x32xf32, #tpu.memory_space<vmem>>, vector<1x1x1x32xf32>
    %18 = vector.shape_cast %17 : vector<1x1x1x32xf32> to vector<1x32xf32>
    %19 = vector.broadcast %18 : vector<1x32xf32> to vector<16x32xf32>
    %20 = arith.addf %16, %19 : vector<16x32xf32>
    %c0_18 = arith.constant 0 : index
    %c2 = arith.constant 2 : index
    %c0_19 = arith.constant 0 : index
    %c0_20 = arith.constant 0 : index
    %21 = vector.load %arg2[%c0_18, %c2, %c0_19, %c0_20] : memref<1x3x32x32xbf16, #tpu.memory_space<vmem>>, vector<1x1x32x32xbf16>
    %22 = vector.shape_cast %21 : vector<1x1x32x32xbf16> to vector<32x32xbf16>
    %cst_21 = arith.constant dense<0.000000e+00> : vector<16x32xf32>
    %23 = tpu.matmul %6, %22, %cst_21 {dimension_numbers = #tpu.dot_dimension_numbers<[1], [0], [0], [1], [0, 0, 1, 1], [], []>} : vector<16x32xbf16>, vector<32x32xbf16>, vector<16x32xf32> -> vector<16x32xf32>
    %c0_22 = arith.constant 0 : index
    %c2_23 = arith.constant 2 : index
    %c0_24 = arith.constant 0 : index
    %c0_25 = arith.constant 0 : index
    %24 = vector.load %arg3[%c0_22, %c2_23, %c0_24, %c0_25] : memref<1x3x1x32xf32, #tpu.memory_space<vmem>>, vector<1x1x1x32xf32>
    %25 = vector.shape_cast %24 : vector<1x1x1x32xf32> to vector<1x32xf32>
    %26 = vector.broadcast %25 : vector<1x32xf32> to vector<16x32xf32>
    %27 = arith.addf %23, %26 : vector<16x32xf32>
    %c0_26 = arith.constant 0 : index
    %c0_27 = arith.constant 0 : index
    %c0_28 = arith.constant 0 : index
    %28 = vector.load %arg4[%c0_26, %c0_27, %c0_28] : memref<1x32x32xbf16, #tpu.memory_space<vmem>>, vector<1x32x32xbf16>
    %29 = vector.shape_cast %28 : vector<1x32x32xbf16> to vector<32x32xbf16>
    %c0_29 = arith.constant 0 : index
    %c0_30 = arith.constant 0 : index
    %c0_31 = arith.constant 0 : index
    %30 = vector.load %arg5[%c0_29, %c0_30, %c0_31] : memref<1x1x32xf32, #tpu.memory_space<vmem>>, vector<1x1x32xf32>
    %31 = vector.shape_cast %30 : vector<1x1x32xf32> to vector<1x32xf32>
    %32 = arith.truncf %13 : vector<16x32xf32> to vector<16x32xbf16>
    %33 = vector.shape_cast %32 : vector<16x32xbf16> to vector<2x8x32xbf16>
    %34 = arith.truncf %20 : vector<16x32xf32> to vector<16x32xbf16>
    %35 = vector.shape_cast %34 : vector<16x32xbf16> to vector<2x8x32xbf16>
    %36 = arith.truncf %27 : vector<16x32xf32> to vector<16x32xbf16>
    %37 = vector.shape_cast %36 : vector<16x32xbf16> to vector<2x8x32xbf16>
    %38 = vector.extract_strided_slice %33 {offsets = [0, 0, 0], sizes = [2, 8, 8], strides = [1, 1, 1]} : vector<2x8x32xbf16> to vector<2x8x8xbf16>
    %39 = vector.extract_strided_slice %35 {offsets = [0, 0, 0], sizes = [2, 8, 8], strides = [1, 1, 1]} : vector<2x8x32xbf16> to vector<2x8x8xbf16>
    %cst_32 = arith.constant dense<0.000000e+00> : vector<2x8x8xf32>
    %40 = tpu.matmul %38, %39, %cst_32 {dimension_numbers = #tpu.dot_dimension_numbers<[2], [2], [1], [1], [0, 0, 0, 1, 1, 1], [0], [0]>} : vector<2x8x8xbf16>, vector<2x8x8xbf16>, vector<2x8x8xf32> -> vector<2x8x8xf32>
    %cst_33 = arith.constant 0.353553385 : f32
    %41 = vector.broadcast %cst_33 : f32 to vector<2x8x8xf32>
    %42 = arith.mulf %40, %41 : vector<2x8x8xf32>
    %cst_34 = arith.constant dense<0xFF800000> : vector<2x8xf32>
    %43 = vector.multi_reduction <maximumf>, %42, %cst_34 [2] : vector<2x8x8xf32> to vector<2x8xf32>
    %44 = vector.shape_cast %43 : vector<2x8xf32> to vector<2x8x1xf32>
    %45 = vector.broadcast %44 : vector<2x8x1xf32> to vector<2x8x8xf32>
    %46 = arith.subf %42, %45 : vector<2x8x8xf32>
    %47 = math.exp %46 : vector<2x8x8xf32>
    %cst_35 = arith.constant dense<0.000000e+00> : vector<2x8xf32>
    %48 = vector.multi_reduction <add>, %47, %cst_35 [2] : vector<2x8x8xf32> to vector<2x8xf32>
    %49 = vector.shape_cast %48 : vector<2x8xf32> to vector<2x8x1xf32>
    %50 = tpu.reciprocal %49 {approx = true} : vector<2x8x1xf32> -> vector<2x8x1xf32>
    %51 = vector.broadcast %50 : vector<2x8x1xf32> to vector<2x8x8xf32>
    %52 = arith.mulf %47, %51 : vector<2x8x8xf32>
    %53 = arith.truncf %52 : vector<2x8x8xf32> to vector<2x8x8xbf16>
    %54 = vector.extract_strided_slice %37 {offsets = [0, 0, 0], sizes = [2, 8, 8], strides = [1, 1, 1]} : vector<2x8x32xbf16> to vector<2x8x8xbf16>
    %cst_36 = arith.constant dense<0.000000e+00> : vector<2x8x8xf32>
    %55 = tpu.matmul %53, %54, %cst_36 {dimension_numbers = #tpu.dot_dimension_numbers<[2], [1], [1], [2], [0, 0, 0, 1, 1, 2], [0], [0]>} : vector<2x8x8xbf16>, vector<2x8x8xbf16>, vector<2x8x8xf32> -> vector<2x8x8xf32>
    %56 = arith.truncf %55 : vector<2x8x8xf32> to vector<2x8x8xbf16>
    %57 = vector.extract_strided_slice %29 {offsets = [0, 0], sizes = [8, 32], strides = [1, 1]} : vector<32x32xbf16> to vector<8x32xbf16>
    %cst_37 = arith.constant dense<0.000000e+00> : vector<2x8x32xf32>
    %58 = tpu.matmul %56, %57, %cst_37 {dimension_numbers = #tpu.dot_dimension_numbers<[2], [0], [0, 1], [1], [0, 0, 0, 1, 1, 1], [], []>} : vector<2x8x8xbf16>, vector<8x32xbf16>, vector<2x8x32xf32> -> vector<2x8x32xf32>
    %59 = vector.extract_strided_slice %33 {offsets = [0, 0, 8], sizes = [2, 8, 8], strides = [1, 1, 1]} : vector<2x8x32xbf16> to vector<2x8x8xbf16>
    %60 = vector.extract_strided_slice %35 {offsets = [0, 0, 8], sizes = [2, 8, 8], strides = [1, 1, 1]} : vector<2x8x32xbf16> to vector<2x8x8xbf16>
    %cst_38 = arith.constant dense<0.000000e+00> : vector<2x8x8xf32>
    %61 = tpu.matmul %59, %60, %cst_38 {dimension_numbers = #tpu.dot_dimension_numbers<[2], [2], [1], [1], [0, 0, 0, 1, 1, 1], [0], [0]>} : vector<2x8x8xbf16>, vector<2x8x8xbf16>, vector<2x8x8xf32> -> vector<2x8x8xf32>
    %cst_39 = arith.constant 0.353553385 : f32
    %62 = vector.broadcast %cst_39 : f32 to vector<2x8x8xf32>
    %63 = arith.mulf %61, %62 : vector<2x8x8xf32>
    %cst_40 = arith.constant dense<0xFF800000> : vector<2x8xf32>
    %64 = vector.multi_reduction <maximumf>, %63, %cst_40 [2] : vector<2x8x8xf32> to vector<2x8xf32>
    %65 = vector.shape_cast %64 : vector<2x8xf32> to vector<2x8x1xf32>
    %66 = vector.broadcast %65 : vector<2x8x1xf32> to vector<2x8x8xf32>
    %67 = arith.subf %63, %66 : vector<2x8x8xf32>
    %68 = math.exp %67 : vector<2x8x8xf32>
    %cst_41 = arith.constant dense<0.000000e+00> : vector<2x8xf32>
    %69 = vector.multi_reduction <add>, %68, %cst_41 [2] : vector<2x8x8xf32> to vector<2x8xf32>
    %70 = vector.shape_cast %69 : vector<2x8xf32> to vector<2x8x1xf32>
    %71 = tpu.reciprocal %70 {approx = true} : vector<2x8x1xf32> -> vector<2x8x1xf32>
    %72 = vector.broadcast %71 : vector<2x8x1xf32> to vector<2x8x8xf32>
    %73 = arith.mulf %68, %72 : vector<2x8x8xf32>
    %74 = arith.truncf %73 : vector<2x8x8xf32> to vector<2x8x8xbf16>
    %75 = vector.extract_strided_slice %37 {offsets = [0, 0, 8], sizes = [2, 8, 8], strides = [1, 1, 1]} : vector<2x8x32xbf16> to vector<2x8x8xbf16>
    %cst_42 = arith.constant dense<0.000000e+00> : vector<2x8x8xf32>
    %76 = tpu.matmul %74, %75, %cst_42 {dimension_numbers = #tpu.dot_dimension_numbers<[2], [1], [1], [2], [0, 0, 0, 1, 1, 2], [0], [0]>} : vector<2x8x8xbf16>, vector<2x8x8xbf16>, vector<2x8x8xf32> -> vector<2x8x8xf32>
    %77 = arith.truncf %76 : vector<2x8x8xf32> to vector<2x8x8xbf16>
    %78 = vector.extract_strided_slice %29 {offsets = [8, 0], sizes = [8, 32], strides = [1, 1]} : vector<32x32xbf16> to vector<8x32xbf16>
    %cst_43 = arith.constant dense<0.000000e+00> : vector<2x8x32xf32>
    %79 = tpu.matmul %77, %78, %cst_43 {dimension_numbers = #tpu.dot_dimension_numbers<[2], [0], [0, 1], [1], [0, 0, 0, 1, 1, 1], [], []>} : vector<2x8x8xbf16>, vector<8x32xbf16>, vector<2x8x32xf32> -> vector<2x8x32xf32>
    %80 = arith.addf %58, %79 : vector<2x8x32xf32>
    %81 = vector.extract_strided_slice %33 {offsets = [0, 0, 16], sizes = [2, 8, 8], strides = [1, 1, 1]} : vector<2x8x32xbf16> to vector<2x8x8xbf16>
    %82 = vector.extract_strided_slice %35 {offsets = [0, 0, 16], sizes = [2, 8, 8], strides = [1, 1, 1]} : vector<2x8x32xbf16> to vector<2x8x8xbf16>
    %cst_44 = arith.constant dense<0.000000e+00> : vector<2x8x8xf32>
    %83 = tpu.matmul %81, %82, %cst_44 {dimension_numbers = #tpu.dot_dimension_numbers<[2], [2], [1], [1], [0, 0, 0, 1, 1, 1], [0], [0]>} : vector<2x8x8xbf16>, vector<2x8x8xbf16>, vector<2x8x8xf32> -> vector<2x8x8xf32>
    %cst_45 = arith.constant 0.353553385 : f32
    %84 = vector.broadcast %cst_45 : f32 to vector<2x8x8xf32>
    %85 = arith.mulf %83, %84 : vector<2x8x8xf32>
    %cst_46 = arith.constant dense<0xFF800000> : vector<2x8xf32>
    %86 = vector.multi_reduction <maximumf>, %85, %cst_46 [2] : vector<2x8x8xf32> to vector<2x8xf32>
    %87 = vector.shape_cast %86 : vector<2x8xf32> to vector<2x8x1xf32>
    %88 = vector.broadcast %87 : vector<2x8x1xf32> to vector<2x8x8xf32>
    %89 = arith.subf %85, %88 : vector<2x8x8xf32>
    %90 = math.exp %89 : vector<2x8x8xf32>
    %cst_47 = arith.constant dense<0.000000e+00> : vector<2x8xf32>
    %91 = vector.multi_reduction <add>, %90, %cst_47 [2] : vector<2x8x8xf32> to vector<2x8xf32>
    %92 = vector.shape_cast %91 : vector<2x8xf32> to vector<2x8x1xf32>
    %93 = tpu.reciprocal %92 {approx = true} : vector<2x8x1xf32> -> vector<2x8x1xf32>
    %94 = vector.broadcast %93 : vector<2x8x1xf32> to vector<2x8x8xf32>
    %95 = arith.mulf %90, %94 : vector<2x8x8xf32>
    %96 = arith.truncf %95 : vector<2x8x8xf32> to vector<2x8x8xbf16>
    %97 = vector.extract_strided_slice %37 {offsets = [0, 0, 16], sizes = [2, 8, 8], strides = [1, 1, 1]} : vector<2x8x32xbf16> to vector<2x8x8xbf16>
    %cst_48 = arith.constant dense<0.000000e+00> : vector<2x8x8xf32>
    %98 = tpu.matmul %96, %97, %cst_48 {dimension_numbers = #tpu.dot_dimension_numbers<[2], [1], [1], [2], [0, 0, 0, 1, 1, 2], [0], [0]>} : vector<2x8x8xbf16>, vector<2x8x8xbf16>, vector<2x8x8xf32> -> vector<2x8x8xf32>
    %99 = arith.truncf %98 : vector<2x8x8xf32> to vector<2x8x8xbf16>
    %100 = vector.extract_strided_slice %29 {offsets = [16, 0], sizes = [8, 32], strides = [1, 1]} : vector<32x32xbf16> to vector<8x32xbf16>
    %cst_49 = arith.constant dense<0.000000e+00> : vector<2x8x32xf32>
    %101 = tpu.matmul %99, %100, %cst_49 {dimension_numbers = #tpu.dot_dimension_numbers<[2], [0], [0, 1], [1], [0, 0, 0, 1, 1, 1], [], []>} : vector<2x8x8xbf16>, vector<8x32xbf16>, vector<2x8x32xf32> -> vector<2x8x32xf32>
    %102 = arith.addf %80, %101 : vector<2x8x32xf32>
    %103 = vector.extract_strided_slice %33 {offsets = [0, 0, 24], sizes = [2, 8, 8], strides = [1, 1, 1]} : vector<2x8x32xbf16> to vector<2x8x8xbf16>
    %104 = vector.extract_strided_slice %35 {offsets = [0, 0, 24], sizes = [2, 8, 8], strides = [1, 1, 1]} : vector<2x8x32xbf16> to vector<2x8x8xbf16>
    %cst_50 = arith.constant dense<0.000000e+00> : vector<2x8x8xf32>
    %105 = tpu.matmul %103, %104, %cst_50 {dimension_numbers = #tpu.dot_dimension_numbers<[2], [2], [1], [1], [0, 0, 0, 1, 1, 1], [0], [0]>} : vector<2x8x8xbf16>, vector<2x8x8xbf16>, vector<2x8x8xf32> -> vector<2x8x8xf32>
    %cst_51 = arith.constant 0.353553385 : f32
    %106 = vector.broadcast %cst_51 : f32 to vector<2x8x8xf32>
    %107 = arith.mulf %105, %106 : vector<2x8x8xf32>
    %cst_52 = arith.constant dense<0xFF800000> : vector<2x8xf32>
    %108 = vector.multi_reduction <maximumf>, %107, %cst_52 [2] : vector<2x8x8xf32> to vector<2x8xf32>
    %109 = vector.shape_cast %108 : vector<2x8xf32> to vector<2x8x1xf32>
    %110 = vector.broadcast %109 : vector<2x8x1xf32> to vector<2x8x8xf32>
    %111 = arith.subf %107, %110 : vector<2x8x8xf32>
    %112 = math.exp %111 : vector<2x8x8xf32>
    %cst_53 = arith.constant dense<0.000000e+00> : vector<2x8xf32>
    %113 = vector.multi_reduction <add>, %112, %cst_53 [2] : vector<2x8x8xf32> to vector<2x8xf32>
    %114 = vector.shape_cast %113 : vector<2x8xf32> to vector<2x8x1xf32>
    %115 = tpu.reciprocal %114 {approx = true} : vector<2x8x1xf32> -> vector<2x8x1xf32>
    %116 = vector.broadcast %115 : vector<2x8x1xf32> to vector<2x8x8xf32>
    %117 = arith.mulf %112, %116 : vector<2x8x8xf32>
    %118 = arith.truncf %117 : vector<2x8x8xf32> to vector<2x8x8xbf16>
    %119 = vector.extract_strided_slice %37 {offsets = [0, 0, 24], sizes = [2, 8, 8], strides = [1, 1, 1]} : vector<2x8x32xbf16> to vector<2x8x8xbf16>
    %cst_54 = arith.constant dense<0.000000e+00> : vector<2x8x8xf32>
    %120 = tpu.matmul %118, %119, %cst_54 {dimension_numbers = #tpu.dot_dimension_numbers<[2], [1], [1], [2], [0, 0, 0, 1, 1, 2], [0], [0]>} : vector<2x8x8xbf16>, vector<2x8x8xbf16>, vector<2x8x8xf32> -> vector<2x8x8xf32>
    %121 = arith.truncf %120 : vector<2x8x8xf32> to vector<2x8x8xbf16>
    %122 = vector.extract_strided_slice %29 {offsets = [24, 0], sizes = [8, 32], strides = [1, 1]} : vector<32x32xbf16> to vector<8x32xbf16>
    %cst_55 = arith.constant dense<0.000000e+00> : vector<2x8x32xf32>
    %123 = tpu.matmul %121, %122, %cst_55 {dimension_numbers = #tpu.dot_dimension_numbers<[2], [0], [0, 1], [1], [0, 0, 0, 1, 1, 1], [], []>} : vector<2x8x8xbf16>, vector<8x32xbf16>, vector<2x8x32xf32> -> vector<2x8x32xf32>
    %124 = arith.addf %102, %123 : vector<2x8x32xf32>
    %125 = vector.shape_cast %124 : vector<2x8x32xf32> to vector<16x32xf32>
    %126 = vector.broadcast %31 : vector<1x32xf32> to vector<16x32xf32>
    %127 = arith.addf %125, %126 : vector<16x32xf32>
    %128 = arith.addf %5, %127 : vector<16x32xf32>
    %c0_56 = arith.constant 0 : index
    %c0_57 = arith.constant 0 : index
    %c0_58 = arith.constant 0 : index
    %129 = vector.load %arg6[%c0_56, %c0_57, %c0_58] : memref<1x1x32xf32, #tpu.memory_space<vmem>>, vector<1x1x32xf32>
    %130 = vector.shape_cast %129 : vector<1x1x32xf32> to vector<1x32xf32>
    %c0_59 = arith.constant 0 : index
    %c0_60 = arith.constant 0 : index
    %c0_61 = arith.constant 0 : index
    %131 = vector.load %arg7[%c0_59, %c0_60, %c0_61] : memref<1x1x32xf32, #tpu.memory_space<vmem>>, vector<1x1x32xf32>
    %132 = vector.shape_cast %131 : vector<1x1x32xf32> to vector<1x32xf32>
    %cst_62 = arith.constant dense<0.000000e+00> : vector<16xf32>
    %133 = vector.multi_reduction <add>, %128, %cst_62 [1] : vector<16x32xf32> to vector<16xf32>
    %134 = vector.shape_cast %133 : vector<16xf32> to vector<16x1xf32>
    %cst_63 = arith.constant 3.200000e+01 : f32
    %135 = vector.broadcast %cst_63 : f32 to vector<16x1xf32>
    %136 = arith.divf %134, %135 : vector<16x1xf32>
    %137 = vector.broadcast %136 : vector<16x1xf32> to vector<16x32xf32>
    %138 = arith.subf %128, %137 : vector<16x32xf32>
    %139 = arith.mulf %138, %138 : vector<16x32xf32>
    %cst_64 = arith.constant dense<0.000000e+00> : vector<16xf32>
    %140 = vector.multi_reduction <add>, %139, %cst_64 [1] : vector<16x32xf32> to vector<16xf32>
    %141 = vector.shape_cast %140 : vector<16xf32> to vector<16x1xf32>
    %cst_65 = arith.constant 3.200000e+01 : f32
    %142 = vector.broadcast %cst_65 : f32 to vector<16x1xf32>
    %143 = arith.divf %141, %142 : vector<16x1xf32>
    %144 = vector.broadcast %136 : vector<16x1xf32> to vector<16x32xf32>
    %145 = arith.subf %128, %144 : vector<16x32xf32>
    %cst_66 = arith.constant 9.99999974E-6 : f32
    %146 = vector.broadcast %cst_66 : f32 to vector<16x1xf32>
    %147 = arith.addf %143, %146 : vector<16x1xf32>
    %148 = math.rsqrt %147 : vector<16x1xf32>
    %149 = vector.broadcast %148 : vector<16x1xf32> to vector<16x32xf32>
    %150 = arith.mulf %145, %149 : vector<16x32xf32>
    %151 = vector.broadcast %130 : vector<1x32xf32> to vector<16x32xf32>
    %152 = arith.mulf %150, %151 : vector<16x32xf32>
    %153 = vector.broadcast %132 : vector<1x32xf32> to vector<16x32xf32>
    %154 = arith.addf %152, %153 : vector<16x32xf32>
    %c0_67 = arith.constant 0 : index
    %c0_68 = arith.constant 0 : index
    %155 = vector.load %arg29[%c0_67, %c0_68] : memref<16x32xf32, #tpu.memory_space<vmem>>, vector<16x32xf32>
    tpu.vector_store %arg29[%c0_67, %c0_68], %154 {strides = array<i32>} : memref<16x32xf32, #tpu.memory_space<vmem>>, vector<16x32xf32>,
    %c2_i32_69 = arith.constant 2 : i32
    %156 = arith.cmpi sge, %arg0, %c2_i32_69 : i32
    %157 = arith.extui %156 : i1 to i32
    %c0_i32_70 = arith.constant 0 : i32
    %158 = arith.cmpi ne, %157, %c0_i32_70 : i32
    scf.if %158 {
      %c0_137 = arith.constant 0 : index
      %c0_138 = arith.constant 0 : index
      %256 = vector.load %arg29[%c0_137, %c0_138] : memref<16x32xf32, #tpu.memory_space<vmem>>, vector<16x32xf32>
      %c0_139 = arith.constant 0 : index
      %c0_140 = arith.constant 0 : index
      %257 = vector.load %arg30[%c0_139, %c0_140] : memref<16x32xf32, #tpu.memory_space<vmem>>, vector<16x32xf32>
      %258 = arith.truncf %257 : vector<16x32xf32> to vector<16x32xbf16>
      %259 = arith.truncf %256 : vector<16x32xf32> to vector<16x32xbf16>
      %c0_141 = arith.constant 0 : index
      %c0_142 = arith.constant 0 : index
      %c0_143 = arith.constant 0 : index
      %260 = vector.load %arg14[%c0_141, %c0_142, %c0_143] : memref<1x32x32xbf16, #tpu.memory_space<vmem>>, vector<1x32x32xbf16>
      %261 = vector.shape_cast %260 : vector<1x32x32xbf16> to vector<32x32xbf16>
      %cst_144 = arith.constant dense<0.000000e+00> : vector<16x32xf32>
      %262 = tpu.matmul %259, %261, %cst_144 {dimension_numbers = #tpu.dot_dimension_numbers<[1], [0], [0], [1], [0, 0, 1, 1], [], []>} : vector<16x32xbf16>, vector<32x32xbf16>, vector<16x32xf32> -> vector<16x32xf32>
      %c0_145 = arith.constant 0 : index
      %c0_146 = arith.constant 0 : index
      %c0_147 = arith.constant 0 : index
      %263 = vector.load %arg15[%c0_145, %c0_146, %c0_147] : memref<1x1x32xf32, #tpu.memory_space<vmem>>, vector<1x1x32xf32>
      %264 = vector.shape_cast %263 : vector<1x1x32xf32> to vector<1x32xf32>
      %265 = vector.broadcast %264 : vector<1x32xf32> to vector<16x32xf32>
      %266 = arith.addf %262, %265 : vector<16x32xf32>
      %c0_148 = arith.constant 0 : index
      %c0_149 = arith.constant 0 : index
      %c0_150 = arith.constant 0 : index
      %c0_151 = arith.constant 0 : index
      %267 = vector.load %arg16[%c0_148, %c0_149, %c0_150, %c0_151] : memref<1x2x32x32xbf16, #tpu.memory_space<vmem>>, vector<1x1x32x32xbf16>
      %268 = vector.shape_cast %267 : vector<1x1x32x32xbf16> to vector<32x32xbf16>
      %cst_152 = arith.constant dense<0.000000e+00> : vector<16x32xf32>
      %269 = tpu.matmul %258, %268, %cst_152 {dimension_numbers = #tpu.dot_dimension_numbers<[1], [0], [0], [1], [0, 0, 1, 1], [], []>} : vector<16x32xbf16>, vector<32x32xbf16>, vector<16x32xf32> -> vector<16x32xf32>
      %c0_153 = arith.constant 0 : index
      %c0_154 = arith.constant 0 : index
      %c0_155 = arith.constant 0 : index
      %c0_156 = arith.constant 0 : index
      %270 = vector.load %arg17[%c0_153, %c0_154, %c0_155, %c0_156] : memref<1x2x1x32xf32, #tpu.memory_space<vmem>>, vector<1x1x1x32xf32>
      %271 = vector.shape_cast %270 : vector<1x1x1x32xf32> to vector<1x32xf32>
      %272 = vector.broadcast %271 : vector<1x32xf32> to vector<16x32xf32>
      %273 = arith.addf %269, %272 : vector<16x32xf32>
      %c0_157 = arith.constant 0 : index
      %c1_158 = arith.constant 1 : index
      %c0_159 = arith.constant 0 : index
      %c0_160 = arith.constant 0 : index
      %274 = vector.load %arg16[%c0_157, %c1_158, %c0_159, %c0_160] : memref<1x2x32x32xbf16, #tpu.memory_space<vmem>>, vector<1x1x32x32xbf16>
      %275 = vector.shape_cast %274 : vector<1x1x32x32xbf16> to vector<32x32xbf16>
      %cst_161 = arith.constant dense<0.000000e+00> : vector<16x32xf32>
      %276 = tpu.matmul %258, %275, %cst_161 {dimension_numbers = #tpu.dot_dimension_numbers<[1], [0], [0], [1], [0, 0, 1, 1], [], []>} : vector<16x32xbf16>, vector<32x32xbf16>, vector<16x32xf32> -> vector<16x32xf32>
      %c0_162 = arith.constant 0 : index
      %c1_163 = arith.constant 1 : index
      %c0_164 = arith.constant 0 : index
      %c0_165 = arith.constant 0 : index
      %277 = vector.load %arg17[%c0_162, %c1_163, %c0_164, %c0_165] : memref<1x2x1x32xf32, #tpu.memory_space<vmem>>, vector<1x1x1x32xf32>
      %278 = vector.shape_cast %277 : vector<1x1x1x32xf32> to vector<1x32xf32>
      %279 = vector.broadcast %278 : vector<1x32xf32> to vector<16x32xf32>
      %280 = arith.addf %276, %279 : vector<16x32xf32>
      %c0_166 = arith.constant 0 : index
      %c0_167 = arith.constant 0 : index
      %c0_168 = arith.constant 0 : index
      %281 = vector.load %arg18[%c0_166, %c0_167, %c0_168] : memref<1x32x32xbf16, #tpu.memory_space<vmem>>, vector<1x32x32xbf16>
      %282 = vector.shape_cast %281 : vector<1x32x32xbf16> to vector<32x32xbf16>
      %c0_169 = arith.constant 0 : index
      %c0_170 = arith.constant 0 : index
      %c0_171 = arith.constant 0 : index
      %283 = vector.load %arg19[%c0_169, %c0_170, %c0_171] : memref<1x1x32xf32, #tpu.memory_space<vmem>>, vector<1x1x32xf32>
      %284 = vector.shape_cast %283 : vector<1x1x32xf32> to vector<1x32xf32>
      %285 = arith.truncf %266 : vector<16x32xf32> to vector<16x32xbf16>
      %286 = vector.shape_cast %285 : vector<16x32xbf16> to vector<2x8x32xbf16>
      %287 = arith.truncf %273 : vector<16x32xf32> to vector<16x32xbf16>
      %288 = vector.shape_cast %287 : vector<16x32xbf16> to vector<2x8x32xbf16>
      %289 = arith.truncf %280 : vector<16x32xf32> to vector<16x32xbf16>
      %290 = vector.shape_cast %289 : vector<16x32xbf16> to vector<2x8x32xbf16>
      %291 = vector.extract_strided_slice %286 {offsets = [0, 0, 0], sizes = [2, 8, 8], strides = [1, 1, 1]} : vector<2x8x32xbf16> to vector<2x8x8xbf16>
      %292 = vector.extract_strided_slice %288 {offsets = [0, 0, 0], sizes = [2, 8, 8], strides = [1, 1, 1]} : vector<2x8x32xbf16> to vector<2x8x8xbf16>
      %cst_172 = arith.constant dense<0.000000e+00> : vector<2x8x8xf32>
      %293 = tpu.matmul %291, %292, %cst_172 {dimension_numbers = #tpu.dot_dimension_numbers<[2], [2], [1], [1], [0, 0, 0, 1, 1, 1], [0], [0]>} : vector<2x8x8xbf16>, vector<2x8x8xbf16>, vector<2x8x8xf32> -> vector<2x8x8xf32>
      %cst_173 = arith.constant 0.353553385 : f32
      %294 = vector.broadcast %cst_173 : f32 to vector<2x8x8xf32>
      %295 = arith.mulf %293, %294 : vector<2x8x8xf32>
      %cst_174 = arith.constant dense<0xFF800000> : vector<2x8xf32>
      %296 = vector.multi_reduction <maximumf>, %295, %cst_174 [2] : vector<2x8x8xf32> to vector<2x8xf32>
      %297 = vector.shape_cast %296 : vector<2x8xf32> to vector<2x8x1xf32>
      %298 = vector.broadcast %297 : vector<2x8x1xf32> to vector<2x8x8xf32>
      %299 = arith.subf %295, %298 : vector<2x8x8xf32>
      %300 = math.exp %299 : vector<2x8x8xf32>
      %cst_175 = arith.constant dense<0.000000e+00> : vector<2x8xf32>
      %301 = vector.multi_reduction <add>, %300, %cst_175 [2] : vector<2x8x8xf32> to vector<2x8xf32>
      %302 = vector.shape_cast %301 : vector<2x8xf32> to vector<2x8x1xf32>
      %303 = tpu.reciprocal %302 {approx = true} : vector<2x8x1xf32> -> vector<2x8x1xf32>
      %304 = vector.broadcast %303 : vector<2x8x1xf32> to vector<2x8x8xf32>
      %305 = arith.mulf %300, %304 : vector<2x8x8xf32>
      %306 = arith.truncf %305 : vector<2x8x8xf32> to vector<2x8x8xbf16>
      %307 = vector.extract_strided_slice %290 {offsets = [0, 0, 0], sizes = [2, 8, 8], strides = [1, 1, 1]} : vector<2x8x32xbf16> to vector<2x8x8xbf16>
      %cst_176 = arith.constant dense<0.000000e+00> : vector<2x8x8xf32>
      %308 = tpu.matmul %306, %307, %cst_176 {dimension_numbers = #tpu.dot_dimension_numbers<[2], [1], [1], [2], [0, 0, 0, 1, 1, 2], [0], [0]>} : vector<2x8x8xbf16>, vector<2x8x8xbf16>, vector<2x8x8xf32> -> vector<2x8x8xf32>
      %309 = arith.truncf %308 : vector<2x8x8xf32> to vector<2x8x8xbf16>
      %310 = vector.extract_strided_slice %282 {offsets = [0, 0], sizes = [8, 32], strides = [1, 1]} : vector<32x32xbf16> to vector<8x32xbf16>
      %cst_177 = arith.constant dense<0.000000e+00> : vector<2x8x32xf32>
      %311 = tpu.matmul %309, %310, %cst_177 {dimension_numbers = #tpu.dot_dimension_numbers<[2], [0], [0, 1], [1], [0, 0, 0, 1, 1, 1], [], []>} : vector<2x8x8xbf16>, vector<8x32xbf16>, vector<2x8x32xf32> -> vector<2x8x32xf32>
      %312 = vector.extract_strided_slice %286 {offsets = [0, 0, 8], sizes = [2, 8, 8], strides = [1, 1, 1]} : vector<2x8x32xbf16> to vector<2x8x8xbf16>
      %313 = vector.extract_strided_slice %288 {offsets = [0, 0, 8], sizes = [2, 8, 8], strides = [1, 1, 1]} : vector<2x8x32xbf16> to vector<2x8x8xbf16>
      %cst_178 = arith.constant dense<0.000000e+00> : vector<2x8x8xf32>
      %314 = tpu.matmul %312, %313, %cst_178 {dimension_numbers = #tpu.dot_dimension_numbers<[2], [2], [1], [1], [0, 0, 0, 1, 1, 1], [0], [0]>} : vector<2x8x8xbf16>, vector<2x8x8xbf16>, vector<2x8x8xf32> -> vector<2x8x8xf32>
      %cst_179 = arith.constant 0.353553385 : f32
      %315 = vector.broadcast %cst_179 : f32 to vector<2x8x8xf32>
      %316 = arith.mulf %314, %315 : vector<2x8x8xf32>
      %cst_180 = arith.constant dense<0xFF800000> : vector<2x8xf32>
      %317 = vector.multi_reduction <maximumf>, %316, %cst_180 [2] : vector<2x8x8xf32> to vector<2x8xf32>
      %318 = vector.shape_cast %317 : vector<2x8xf32> to vector<2x8x1xf32>
      %319 = vector.broadcast %318 : vector<2x8x1xf32> to vector<2x8x8xf32>
      %320 = arith.subf %316, %319 : vector<2x8x8xf32>
      %321 = math.exp %320 : vector<2x8x8xf32>
      %cst_181 = arith.constant dense<0.000000e+00> : vector<2x8xf32>
      %322 = vector.multi_reduction <add>, %321, %cst_181 [2] : vector<2x8x8xf32> to vector<2x8xf32>
      %323 = vector.shape_cast %322 : vector<2x8xf32> to vector<2x8x1xf32>
      %324 = tpu.reciprocal %323 {approx = true} : vector<2x8x1xf32> -> vector<2x8x1xf32>
      %325 = vector.broadcast %324 : vector<2x8x1xf32> to vector<2x8x8xf32>
      %326 = arith.mulf %321, %325 : vector<2x8x8xf32>
      %327 = arith.truncf %326 : vector<2x8x8xf32> to vector<2x8x8xbf16>
      %328 = vector.extract_strided_slice %290 {offsets = [0, 0, 8], sizes = [2, 8, 8], strides = [1, 1, 1]} : vector<2x8x32xbf16> to vector<2x8x8xbf16>
      %cst_182 = arith.constant dense<0.000000e+00> : vector<2x8x8xf32>
      %329 = tpu.matmul %327, %328, %cst_182 {dimension_numbers = #tpu.dot_dimension_numbers<[2], [1], [1], [2], [0, 0, 0, 1, 1, 2], [0], [0]>} : vector<2x8x8xbf16>, vector<2x8x8xbf16>, vector<2x8x8xf32> -> vector<2x8x8xf32>
      %330 = arith.truncf %329 : vector<2x8x8xf32> to vector<2x8x8xbf16>
      %331 = vector.extract_strided_slice %282 {offsets = [8, 0], sizes = [8, 32], strides = [1, 1]} : vector<32x32xbf16> to vector<8x32xbf16>
      %cst_183 = arith.constant dense<0.000000e+00> : vector<2x8x32xf32>
      %332 = tpu.matmul %330, %331, %cst_183 {dimension_numbers = #tpu.dot_dimension_numbers<[2], [0], [0, 1], [1], [0, 0, 0, 1, 1, 1], [], []>} : vector<2x8x8xbf16>, vector<8x32xbf16>, vector<2x8x32xf32> -> vector<2x8x32xf32>
      %333 = arith.addf %311, %332 : vector<2x8x32xf32>
      %334 = vector.extract_strided_slice %286 {offsets = [0, 0, 16], sizes = [2, 8, 8], strides = [1, 1, 1]} : vector<2x8x32xbf16> to vector<2x8x8xbf16>
      %335 = vector.extract_strided_slice %288 {offsets = [0, 0, 16], sizes = [2, 8, 8], strides = [1, 1, 1]} : vector<2x8x32xbf16> to vector<2x8x8xbf16>
      %cst_184 = arith.constant dense<0.000000e+00> : vector<2x8x8xf32>
      %336 = tpu.matmul %334, %335, %cst_184 {dimension_numbers = #tpu.dot_dimension_numbers<[2], [2], [1], [1], [0, 0, 0, 1, 1, 1], [0], [0]>} : vector<2x8x8xbf16>, vector<2x8x8xbf16>, vector<2x8x8xf32> -> vector<2x8x8xf32>
      %cst_185 = arith.constant 0.353553385 : f32
      %337 = vector.broadcast %cst_185 : f32 to vector<2x8x8xf32>
      %338 = arith.mulf %336, %337 : vector<2x8x8xf32>
      %cst_186 = arith.constant dense<0xFF800000> : vector<2x8xf32>
      %339 = vector.multi_reduction <maximumf>, %338, %cst_186 [2] : vector<2x8x8xf32> to vector<2x8xf32>
      %340 = vector.shape_cast %339 : vector<2x8xf32> to vector<2x8x1xf32>
      %341 = vector.broadcast %340 : vector<2x8x1xf32> to vector<2x8x8xf32>
      %342 = arith.subf %338, %341 : vector<2x8x8xf32>
      %343 = math.exp %342 : vector<2x8x8xf32>
      %cst_187 = arith.constant dense<0.000000e+00> : vector<2x8xf32>
      %344 = vector.multi_reduction <add>, %343, %cst_187 [2] : vector<2x8x8xf32> to vector<2x8xf32>
      %345 = vector.shape_cast %344 : vector<2x8xf32> to vector<2x8x1xf32>
      %346 = tpu.reciprocal %345 {approx = true} : vector<2x8x1xf32> -> vector<2x8x1xf32>
      %347 = vector.broadcast %346 : vector<2x8x1xf32> to vector<2x8x8xf32>
      %348 = arith.mulf %343, %347 : vector<2x8x8xf32>
      %349 = arith.truncf %348 : vector<2x8x8xf32> to vector<2x8x8xbf16>
      %350 = vector.extract_strided_slice %290 {offsets = [0, 0, 16], sizes = [2, 8, 8], strides = [1, 1, 1]} : vector<2x8x32xbf16> to vector<2x8x8xbf16>
      %cst_188 = arith.constant dense<0.000000e+00> : vector<2x8x8xf32>
      %351 = tpu.matmul %349, %350, %cst_188 {dimension_numbers = #tpu.dot_dimension_numbers<[2], [1], [1], [2], [0, 0, 0, 1, 1, 2], [0], [0]>} : vector<2x8x8xbf16>, vector<2x8x8xbf16>, vector<2x8x8xf32> -> vector<2x8x8xf32>
      %352 = arith.truncf %351 : vector<2x8x8xf32> to vector<2x8x8xbf16>
      %353 = vector.extract_strided_slice %282 {offsets = [16, 0], sizes = [8, 32], strides = [1, 1]} : vector<32x32xbf16> to vector<8x32xbf16>
      %cst_189 = arith.constant dense<0.000000e+00> : vector<2x8x32xf32>
      %354 = tpu.matmul %352, %353, %cst_189 {dimension_numbers = #tpu.dot_dimension_numbers<[2], [0], [0, 1], [1], [0, 0, 0, 1, 1, 1], [], []>} : vector<2x8x8xbf16>, vector<8x32xbf16>, vector<2x8x32xf32> -> vector<2x8x32xf32>
      %355 = arith.addf %333, %354 : vector<2x8x32xf32>
      %356 = vector.extract_strided_slice %286 {offsets = [0, 0, 24], sizes = [2, 8, 8], strides = [1, 1, 1]} : vector<2x8x32xbf16> to vector<2x8x8xbf16>
      %357 = vector.extract_strided_slice %288 {offsets = [0, 0, 24], sizes = [2, 8, 8], strides = [1, 1, 1]} : vector<2x8x32xbf16> to vector<2x8x8xbf16>
      %cst_190 = arith.constant dense<0.000000e+00> : vector<2x8x8xf32>
      %358 = tpu.matmul %356, %357, %cst_190 {dimension_numbers = #tpu.dot_dimension_numbers<[2], [2], [1], [1], [0, 0, 0, 1, 1, 1], [0], [0]>} : vector<2x8x8xbf16>, vector<2x8x8xbf16>, vector<2x8x8xf32> -> vector<2x8x8xf32>
      %cst_191 = arith.constant 0.353553385 : f32
      %359 = vector.broadcast %cst_191 : f32 to vector<2x8x8xf32>
      %360 = arith.mulf %358, %359 : vector<2x8x8xf32>
      %cst_192 = arith.constant dense<0xFF800000> : vector<2x8xf32>
      %361 = vector.multi_reduction <maximumf>, %360, %cst_192 [2] : vector<2x8x8xf32> to vector<2x8xf32>
      %362 = vector.shape_cast %361 : vector<2x8xf32> to vector<2x8x1xf32>
      %363 = vector.broadcast %362 : vector<2x8x1xf32> to vector<2x8x8xf32>
      %364 = arith.subf %360, %363 : vector<2x8x8xf32>
      %365 = math.exp %364 : vector<2x8x8xf32>
      %cst_193 = arith.constant dense<0.000000e+00> : vector<2x8xf32>
      %366 = vector.multi_reduction <add>, %365, %cst_193 [2] : vector<2x8x8xf32> to vector<2x8xf32>
      %367 = vector.shape_cast %366 : vector<2x8xf32> to vector<2x8x1xf32>
      %368 = tpu.reciprocal %367 {approx = true} : vector<2x8x1xf32> -> vector<2x8x1xf32>
      %369 = vector.broadcast %368 : vector<2x8x1xf32> to vector<2x8x8xf32>
      %370 = arith.mulf %365, %369 : vector<2x8x8xf32>
      %371 = arith.truncf %370 : vector<2x8x8xf32> to vector<2x8x8xbf16>
      %372 = vector.extract_strided_slice %290 {offsets = [0, 0, 24], sizes = [2, 8, 8], strides = [1, 1, 1]} : vector<2x8x32xbf16> to vector<2x8x8xbf16>
      %cst_194 = arith.constant dense<0.000000e+00> : vector<2x8x8xf32>
      %373 = tpu.matmul %371, %372, %cst_194 {dimension_numbers = #tpu.dot_dimension_numbers<[2], [1], [1], [2], [0, 0, 0, 1, 1, 2], [0], [0]>} : vector<2x8x8xbf16>, vector<2x8x8xbf16>, vector<2x8x8xf32> -> vector<2x8x8xf32>
      %374 = arith.truncf %373 : vector<2x8x8xf32> to vector<2x8x8xbf16>
      %375 = vector.extract_strided_slice %282 {offsets = [24, 0], sizes = [8, 32], strides = [1, 1]} : vector<32x32xbf16> to vector<8x32xbf16>
      %cst_195 = arith.constant dense<0.000000e+00> : vector<2x8x32xf32>
      %376 = tpu.matmul %374, %375, %cst_195 {dimension_numbers = #tpu.dot_dimension_numbers<[2], [0], [0, 1], [1], [0, 0, 0, 1, 1, 1], [], []>} : vector<2x8x8xbf16>, vector<8x32xbf16>, vector<2x8x32xf32> -> vector<2x8x32xf32>
      %377 = arith.addf %355, %376 : vector<2x8x32xf32>
      %378 = vector.shape_cast %377 : vector<2x8x32xf32> to vector<16x32xf32>
      %379 = vector.broadcast %284 : vector<1x32xf32> to vector<16x32xf32>
      %380 = arith.addf %378, %379 : vector<16x32xf32>
      %381 = arith.addf %256, %380 : vector<16x32xf32>
      %c0_196 = arith.constant 0 : index
      %c0_197 = arith.constant 0 : index
      %c0_198 = arith.constant 0 : index
      %382 = vector.load %arg20[%c0_196, %c0_197, %c0_198] : memref<1x1x32xf32, #tpu.memory_space<vmem>>, vector<1x1x32xf32>
      %383 = vector.shape_cast %382 : vector<1x1x32xf32> to vector<1x32xf32>
      %c0_199 = arith.constant 0 : index
      %c0_200 = arith.constant 0 : index
      %c0_201 = arith.constant 0 : index
      %384 = vector.load %arg21[%c0_199, %c0_200, %c0_201] : memref<1x1x32xf32, #tpu.memory_space<vmem>>, vector<1x1x32xf32>
      %385 = vector.shape_cast %384 : vector<1x1x32xf32> to vector<1x32xf32>
      %cst_202 = arith.constant dense<0.000000e+00> : vector<16xf32>
      %386 = vector.multi_reduction <add>, %381, %cst_202 [1] : vector<16x32xf32> to vector<16xf32>
      %387 = vector.shape_cast %386 : vector<16xf32> to vector<16x1xf32>
      %cst_203 = arith.constant 3.200000e+01 : f32
      %388 = vector.broadcast %cst_203 : f32 to vector<16x1xf32>
      %389 = arith.divf %387, %388 : vector<16x1xf32>
      %390 = vector.broadcast %389 : vector<16x1xf32> to vector<16x32xf32>
      %391 = arith.subf %381, %390 : vector<16x32xf32>
      %392 = arith.mulf %391, %391 : vector<16x32xf32>
      %cst_204 = arith.constant dense<0.000000e+00> : vector<16xf32>
      %393 = vector.multi_reduction <add>, %392, %cst_204 [1] : vector<16x32xf32> to vector<16xf32>
      %394 = vector.shape_cast %393 : vector<16xf32> to vector<16x1xf32>
      %cst_205 = arith.constant 3.200000e+01 : f32
      %395 = vector.broadcast %cst_205 : f32 to vector<16x1xf32>
      %396 = arith.divf %394, %395 : vector<16x1xf32>
      %397 = vector.broadcast %389 : vector<16x1xf32> to vector<16x32xf32>
      %398 = arith.subf %381, %397 : vector<16x32xf32>
      %cst_206 = arith.constant 9.99999974E-6 : f32
      %399 = vector.broadcast %cst_206 : f32 to vector<16x1xf32>
      %400 = arith.addf %396, %399 : vector<16x1xf32>
      %401 = math.rsqrt %400 : vector<16x1xf32>
      %402 = vector.broadcast %401 : vector<16x1xf32> to vector<16x32xf32>
      %403 = arith.mulf %398, %402 : vector<16x32xf32>
      %404 = vector.broadcast %383 : vector<1x32xf32> to vector<16x32xf32>
      %405 = arith.mulf %403, %404 : vector<16x32xf32>
      %406 = vector.broadcast %385 : vector<1x32xf32> to vector<16x32xf32>
      %407 = arith.addf %405, %406 : vector<16x32xf32>
      %c0_207 = arith.constant 0 : index
      %c0_208 = arith.constant 0 : index
      %408 = vector.load %arg29[%c0_207, %c0_208] : memref<16x32xf32, #tpu.memory_space<vmem>>, vector<16x32xf32>
      tpu.vector_store %arg29[%c0_207, %c0_208], %407 {strides = array<i32>} : memref<16x32xf32, #tpu.memory_space<vmem>>, vector<16x32xf32>,
    } else {
    }
    %c0_71 = arith.constant 0 : index
    %c0_72 = arith.constant 0 : index
    %159 = vector.load %arg29[%c0_71, %c0_72] : memref<16x32xf32, #tpu.memory_space<vmem>>, vector<16x32xf32>
    %160 = arith.truncf %159 : vector<16x32xf32> to vector<16x32xbf16>
    %cst_73 = arith.constant 0.000000e+00 : f32
    %161 = vector.broadcast %cst_73 : f32 to vector<16x32xf32>
    %c0_74 = arith.constant 0 : index
    %c0_75 = arith.constant 0 : index
    %c0_76 = arith.constant 0 : index
    %162 = vector.load %arg8[%c0_74, %c0_75, %c0_76] : memref<1x32x2048xbf16, #tpu.memory_space<vmem>>, vector<1x32x512xbf16>
    %163 = vector.shape_cast %162 : vector<1x32x512xbf16> to vector<32x512xbf16>
    %cst_77 = arith.constant dense<0.000000e+00> : vector<16x512xf32>
    %164 = tpu.matmul %160, %163, %cst_77 {dimension_numbers = #tpu.dot_dimension_numbers<[1], [0], [0], [1], [0, 0, 1, 1], [], []>} : vector<16x32xbf16>, vector<32x512xbf16>, vector<16x512xf32> -> vector<16x512xf32>
    %c0_78 = arith.constant 0 : index
    %c0_79 = arith.constant 0 : index
    %c0_80 = arith.constant 0 : index
    %165 = vector.load %arg9[%c0_78, %c0_79, %c0_80] : memref<1x1x2048xf32, #tpu.memory_space<vmem>>, vector<1x1x512xf32>
    %166 = vector.shape_cast %165 : vector<1x1x512xf32> to vector<1x512xf32>
    %167 = vector.broadcast %166 : vector<1x512xf32> to vector<16x512xf32>
    %168 = arith.addf %164, %167 : vector<16x512xf32>
    %cst_81 = arith.constant 0.000000e+00 : f32
    %169 = vector.broadcast %cst_81 : f32 to vector<16x512xf32>
    %170 = arith.maximumf %168, %169 : vector<16x512xf32>
    %171 = arith.truncf %170 : vector<16x512xf32> to vector<16x512xbf16>
    %c0_82 = arith.constant 0 : index
    %c0_83 = arith.constant 0 : index
    %c0_84 = arith.constant 0 : index
    %172 = vector.load %arg10[%c0_82, %c0_83, %c0_84] : memref<1x2048x32xbf16, #tpu.memory_space<vmem>>, vector<1x512x32xbf16>
    %173 = vector.shape_cast %172 : vector<1x512x32xbf16> to vector<512x32xbf16>
    %cst_85 = arith.constant dense<0.000000e+00> : vector<16x32xf32>
    %174 = tpu.matmul %171, %173, %cst_85 {dimension_numbers = #tpu.dot_dimension_numbers<[1], [0], [0], [1], [0, 0, 1, 1], [], []>} : vector<16x512xbf16>, vector<512x32xbf16>, vector<16x32xf32> -> vector<16x32xf32>
    %175 = arith.addf %161, %174 : vector<16x32xf32>
    %c0_86 = arith.constant 0 : index
    %c0_87 = arith.constant 0 : index
    %c512 = arith.constant 512 : index
    %176 = vector.load %arg8[%c0_86, %c0_87, %c512] : memref<1x32x2048xbf16, #tpu.memory_space<vmem>>, vector<1x32x512xbf16>
    %177 = vector.shape_cast %176 : vector<1x32x512xbf16> to vector<32x512xbf16>
    %cst_88 = arith.constant dense<0.000000e+00> : vector<16x512xf32>
    %178 = tpu.matmul %160, %177, %cst_88 {dimension_numbers = #tpu.dot_dimension_numbers<[1], [0], [0], [1], [0, 0, 1, 1], [], []>} : vector<16x32xbf16>, vector<32x512xbf16>, vector<16x512xf32> -> vector<16x512xf32>
    %c0_89 = arith.constant 0 : index
    %c0_90 = arith.constant 0 : index
    %c512_91 = arith.constant 512 : index
    %179 = vector.load %arg9[%c0_89, %c0_90, %c512_91] : memref<1x1x2048xf32, #tpu.memory_space<vmem>>, vector<1x1x512xf32>
    %180 = vector.shape_cast %179 : vector<1x1x512xf32> to vector<1x512xf32>
    %181 = vector.broadcast %180 : vector<1x512xf32> to vector<16x512xf32>
    %182 = arith.addf %178, %181 : vector<16x512xf32>
    %cst_92 = arith.constant 0.000000e+00 : f32
    %183 = vector.broadcast %cst_92 : f32 to vector<16x512xf32>
    %184 = arith.maximumf %182, %183 : vector<16x512xf32>
    %185 = arith.truncf %184 : vector<16x512xf32> to vector<16x512xbf16>
    %c0_93 = arith.constant 0 : index
    %c512_94 = arith.constant 512 : index
    %c0_95 = arith.constant 0 : index
    %186 = vector.load %arg10[%c0_93, %c512_94, %c0_95] : memref<1x2048x32xbf16, #tpu.memory_space<vmem>>, vector<1x512x32xbf16>
    %187 = vector.shape_cast %186 : vector<1x512x32xbf16> to vector<512x32xbf16>
    %cst_96 = arith.constant dense<0.000000e+00> : vector<16x32xf32>
    %188 = tpu.matmul %185, %187, %cst_96 {dimension_numbers = #tpu.dot_dimension_numbers<[1], [0], [0], [1], [0, 0, 1, 1], [], []>} : vector<16x512xbf16>, vector<512x32xbf16>, vector<16x32xf32> -> vector<16x32xf32>
    %189 = arith.addf %175, %188 : vector<16x32xf32>
    %c0_97 = arith.constant 0 : index
    %c0_98 = arith.constant 0 : index
    %c1024 = arith.constant 1024 : index
    %190 = vector.load %arg8[%c0_97, %c0_98, %c1024] : memref<1x32x2048xbf16, #tpu.memory_space<vmem>>, vector<1x32x512xbf16>
    %191 = vector.shape_cast %190 : vector<1x32x512xbf16> to vector<32x512xbf16>
    %cst_99 = arith.constant dense<0.000000e+00> : vector<16x512xf32>
    %192 = tpu.matmul %160, %191, %cst_99 {dimension_numbers = #tpu.dot_dimension_numbers<[1], [0], [0], [1], [0, 0, 1, 1], [], []>} : vector<16x32xbf16>, vector<32x512xbf16>, vector<16x512xf32> -> vector<16x512xf32>
    %c0_100 = arith.constant 0 : index
    %c0_101 = arith.constant 0 : index
    %c1024_102 = arith.constant 1024 : index
    %193 = vector.load %arg9[%c0_100, %c0_101, %c1024_102] : memref<1x1x2048xf32, #tpu.memory_space<vmem>>, vector<1x1x512xf32>
    %194 = vector.shape_cast %193 : vector<1x1x512xf32> to vector<1x512xf32>
    %195 = vector.broadcast %194 : vector<1x512xf32> to vector<16x512xf32>
    %196 = arith.addf %192, %195 : vector<16x512xf32>
    %cst_103 = arith.constant 0.000000e+00 : f32
    %197 = vector.broadcast %cst_103 : f32 to vector<16x512xf32>
    %198 = arith.maximumf %196, %197 : vector<16x512xf32>
    %199 = arith.truncf %198 : vector<16x512xf32> to vector<16x512xbf16>
    %c0_104 = arith.constant 0 : index
    %c1024_105 = arith.constant 1024 : index
    %c0_106 = arith.constant 0 : index
    %200 = vector.load %arg10[%c0_104, %c1024_105, %c0_106] : memref<1x2048x32xbf16, #tpu.memory_space<vmem>>, vector<1x512x32xbf16>
    %201 = vector.shape_cast %200 : vector<1x512x32xbf16> to vector<512x32xbf16>
    %cst_107 = arith.constant dense<0.000000e+00> : vector<16x32xf32>
    %202 = tpu.matmul %199, %201, %cst_107 {dimension_numbers = #tpu.dot_dimension_numbers<[1], [0], [0], [1], [0, 0, 1, 1], [], []>} : vector<16x512xbf16>, vector<512x32xbf16>, vector<16x32xf32> -> vector<16x32xf32>
    %203 = arith.addf %189, %202 : vector<16x32xf32>
    %c0_108 = arith.constant 0 : index
    %c0_109 = arith.constant 0 : index
    %c1536 = arith.constant 1536 : index
    %204 = vector.load %arg8[%c0_108, %c0_109, %c1536] : memref<1x32x2048xbf16, #tpu.memory_space<vmem>>, vector<1x32x512xbf16>
    %205 = vector.shape_cast %204 : vector<1x32x512xbf16> to vector<32x512xbf16>
    %cst_110 = arith.constant dense<0.000000e+00> : vector<16x512xf32>
    %206 = tpu.matmul %160, %205, %cst_110 {dimension_numbers = #tpu.dot_dimension_numbers<[1], [0], [0], [1], [0, 0, 1, 1], [], []>} : vector<16x32xbf16>, vector<32x512xbf16>, vector<16x512xf32> -> vector<16x512xf32>
    %c0_111 = arith.constant 0 : index
    %c0_112 = arith.constant 0 : index
    %c1536_113 = arith.constant 1536 : index
    %207 = vector.load %arg9[%c0_111, %c0_112, %c1536_113] : memref<1x1x2048xf32, #tpu.memory_space<vmem>>, vector<1x1x512xf32>
    %208 = vector.shape_cast %207 : vector<1x1x512xf32> to vector<1x512xf32>
    %209 = vector.broadcast %208 : vector<1x512xf32> to vector<16x512xf32>
    %210 = arith.addf %206, %209 : vector<16x512xf32>
    %cst_114 = arith.constant 0.000000e+00 : f32
    %211 = vector.broadcast %cst_114 : f32 to vector<16x512xf32>
    %212 = arith.maximumf %210, %211 : vector<16x512xf32>
    %213 = arith.truncf %212 : vector<16x512xf32> to vector<16x512xbf16>
    %c0_115 = arith.constant 0 : index
    %c1536_116 = arith.constant 1536 : index
    %c0_117 = arith.constant 0 : index
    %214 = vector.load %arg10[%c0_115, %c1536_116, %c0_117] : memref<1x2048x32xbf16, #tpu.memory_space<vmem>>, vector<1x512x32xbf16>
    %215 = vector.shape_cast %214 : vector<1x512x32xbf16> to vector<512x32xbf16>
    %cst_118 = arith.constant dense<0.000000e+00> : vector<16x32xf32>
    %216 = tpu.matmul %213, %215, %cst_118 {dimension_numbers = #tpu.dot_dimension_numbers<[1], [0], [0], [1], [0, 0, 1, 1], [], []>} : vector<16x512xbf16>, vector<512x32xbf16>, vector<16x32xf32> -> vector<16x32xf32>
    %217 = arith.addf %203, %216 : vector<16x32xf32>
    %218 = arith.addf %159, %217 : vector<16x32xf32>
    %c0_119 = arith.constant 0 : index
    %c0_120 = arith.constant 0 : index
    %c0_121 = arith.constant 0 : index
    %219 = vector.load %arg11[%c0_119, %c0_120, %c0_121] : memref<1x1x32xf32, #tpu.memory_space<vmem>>, vector<1x1x32xf32>
    %220 = vector.shape_cast %219 : vector<1x1x32xf32> to vector<1x32xf32>
    %221 = vector.broadcast %220 : vector<1x32xf32> to vector<16x32xf32>
    %222 = arith.addf %218, %221 : vector<16x32xf32>
    %c0_122 = arith.constant 0 : index
    %c0_123 = arith.constant 0 : index
    %c0_124 = arith.constant 0 : index
    %223 = vector.load %arg12[%c0_122, %c0_123, %c0_124] : memref<1x1x32xf32, #tpu.memory_space<vmem>>, vector<1x1x32xf32>
    %224 = vector.shape_cast %223 : vector<1x1x32xf32> to vector<1x32xf32>
    %c0_125 = arith.constant 0 : index
    %c0_126 = arith.constant 0 : index
    %c0_127 = arith.constant 0 : index
    %225 = vector.load %arg13[%c0_125, %c0_126, %c0_127] : memref<1x1x32xf32, #tpu.memory_space<vmem>>, vector<1x1x32xf32>
    %226 = vector.shape_cast %225 : vector<1x1x32xf32> to vector<1x32xf32>
    %cst_128 = arith.constant dense<0.000000e+00> : vector<16xf32>
    %227 = vector.multi_reduction <add>, %222, %cst_128 [1] : vector<16x32xf32> to vector<16xf32>
    %228 = vector.shape_cast %227 : vector<16xf32> to vector<16x1xf32>
    %cst_129 = arith.constant 3.200000e+01 : f32
    %229 = vector.broadcast %cst_129 : f32 to vector<16x1xf32>
    %230 = arith.divf %228, %229 : vector<16x1xf32>
    %231 = vector.broadcast %230 : vector<16x1xf32> to vector<16x32xf32>
    %232 = arith.subf %222, %231 : vector<16x32xf32>
    %233 = arith.mulf %232, %232 : vector<16x32xf32>
    %cst_130 = arith.constant dense<0.000000e+00> : vector<16xf32>
    %234 = vector.multi_reduction <add>, %233, %cst_130 [1] : vector<16x32xf32> to vector<16xf32>
    %235 = vector.shape_cast %234 : vector<16xf32> to vector<16x1xf32>
    %cst_131 = arith.constant 3.200000e+01 : f32
    %236 = vector.broadcast %cst_131 : f32 to vector<16x1xf32>
    %237 = arith.divf %235, %236 : vector<16x1xf32>
    %238 = vector.broadcast %230 : vector<16x1xf32> to vector<16x32xf32>
    %239 = arith.subf %222, %238 : vector<16x32xf32>
    %cst_132 = arith.constant 9.99999974E-6 : f32
    %240 = vector.broadcast %cst_132 : f32 to vector<16x1xf32>
    %241 = arith.addf %237, %240 : vector<16x1xf32>
    %242 = math.rsqrt %241 : vector<16x1xf32>
    %243 = vector.broadcast %242 : vector<16x1xf32> to vector<16x32xf32>
    %244 = arith.mulf %239, %243 : vector<16x32xf32>
    %245 = vector.broadcast %224 : vector<1x32xf32> to vector<16x32xf32>
    %246 = arith.mulf %244, %245 : vector<16x32xf32>
    %247 = vector.broadcast %226 : vector<1x32xf32> to vector<16x32xf32>
    %248 = arith.addf %246, %247 : vector<16x32xf32>
    %c0_133 = arith.constant 0 : index
    %c0_134 = arith.constant 0 : index
    %249 = vector.load %arg29[%c0_133, %c0_134] : memref<16x32xf32, #tpu.memory_space<vmem>>, vector<16x32xf32>
    tpu.vector_store %arg29[%c0_133, %c0_134], %248 {strides = array<i32>} : memref<16x32xf32, #tpu.memory_space<vmem>>, vector<16x32xf32>,
    %c1_i32 = arith.constant 1 : i32
    %250 = arith.cmpi eq, %arg0, %c1_i32 : i32
    %251 = arith.extui %250 : i1 to i32
    %c0_i32_135 = arith.constant 0 : i32
    %252 = arith.cmpi ne, %251, %c0_i32_135 : i32
    scf.if %252 {
      %c0_137 = arith.constant 0 : index
      %c0_138 = arith.constant 0 : index
      %256 = vector.load %arg22[%c0_137, %c0_138] : memref<1x32xf32, #tpu.memory_space<vmem>>, vector<1x32xf32>
      %c0_139 = arith.constant 0 : index
      %c0_140 = arith.constant 0 : index
      %257 = vector.load %arg23[%c0_139, %c0_140] : memref<1x32xf32, #tpu.memory_space<vmem>>, vector<1x32xf32>
      %cst_141 = arith.constant dense<0.000000e+00> : vector<16xf32>
      %258 = vector.multi_reduction <add>, %248, %cst_141 [1] : vector<16x32xf32> to vector<16xf32>
      %259 = vector.shape_cast %258 : vector<16xf32> to vector<16x1xf32>
      %cst_142 = arith.constant 3.200000e+01 : f32
      %260 = vector.broadcast %cst_142 : f32 to vector<16x1xf32>
      %261 = arith.divf %259, %260 : vector<16x1xf32>
      %262 = vector.broadcast %261 : vector<16x1xf32> to vector<16x32xf32>
      %263 = arith.subf %248, %262 : vector<16x32xf32>
      %264 = arith.mulf %263, %263 : vector<16x32xf32>
      %cst_143 = arith.constant dense<0.000000e+00> : vector<16xf32>
      %265 = vector.multi_reduction <add>, %264, %cst_143 [1] : vector<16x32xf32> to vector<16xf32>
      %266 = vector.shape_cast %265 : vector<16xf32> to vector<16x1xf32>
      %cst_144 = arith.constant 3.200000e+01 : f32
      %267 = vector.broadcast %cst_144 : f32 to vector<16x1xf32>
      %268 = arith.divf %266, %267 : vector<16x1xf32>
      %269 = vector.broadcast %261 : vector<16x1xf32> to vector<16x32xf32>
      %270 = arith.subf %248, %269 : vector<16x32xf32>
      %cst_145 = arith.constant 9.99999974E-6 : f32
      %271 = vector.broadcast %cst_145 : f32 to vector<16x1xf32>
      %272 = arith.addf %268, %271 : vector<16x1xf32>
      %273 = math.rsqrt %272 : vector<16x1xf32>
      %274 = vector.broadcast %273 : vector<16x1xf32> to vector<16x32xf32>
      %275 = arith.mulf %270, %274 : vector<16x32xf32>
      %276 = vector.broadcast %256 : vector<1x32xf32> to vector<16x32xf32>
      %277 = arith.mulf %275, %276 : vector<16x32xf32>
      %278 = vector.broadcast %257 : vector<1x32xf32> to vector<16x32xf32>
      %279 = arith.addf %277, %278 : vector<16x32xf32>
      %c0_146 = arith.constant 0 : index
      %c0_147 = arith.constant 0 : index
      %280 = vector.load %arg30[%c0_146, %c0_147] : memref<16x32xf32, #tpu.memory_space<vmem>>, vector<16x32xf32>
      tpu.vector_store %arg30[%c0_146, %c0_147], %279 {strides = array<i32>} : memref<16x32xf32, #tpu.memory_space<vmem>>, vector<16x32xf32>,
    } else {
    }
    %c7_i32 = arith.constant 7 : i32
    %253 = arith.cmpi eq, %arg0, %c7_i32 : i32
    %254 = arith.extui %253 : i1 to i32
    %c0_i32_136 = arith.constant 0 : i32
    %255 = arith.cmpi ne, %254, %c0_i32_136 : i32
    scf.if %255 {
      %c0_137 = arith.constant 0 : index
      %c0_138 = arith.constant 0 : index
      %256 = vector.load %arg24[%c0_137, %c0_138] : memref<1x32xf32, #tpu.memory_space<vmem>>, vector<1x32xf32>
      %c0_139 = arith.constant 0 : index
      %c0_140 = arith.constant 0 : index
      %257 = vector.load %arg25[%c0_139, %c0_140] : memref<1x32xf32, #tpu.memory_space<vmem>>, vector<1x32xf32>
      %cst_141 = arith.constant dense<0.000000e+00> : vector<16xf32>
      %258 = vector.multi_reduction <add>, %248, %cst_141 [1] : vector<16x32xf32> to vector<16xf32>
      %259 = vector.shape_cast %258 : vector<16xf32> to vector<16x1xf32>
      %cst_142 = arith.constant 3.200000e+01 : f32
      %260 = vector.broadcast %cst_142 : f32 to vector<16x1xf32>
      %261 = arith.divf %259, %260 : vector<16x1xf32>
      %262 = vector.broadcast %261 : vector<16x1xf32> to vector<16x32xf32>
      %263 = arith.subf %248, %262 : vector<16x32xf32>
      %264 = arith.mulf %263, %263 : vector<16x32xf32>
      %cst_143 = arith.constant dense<0.000000e+00> : vector<16xf32>
      %265 = vector.multi_reduction <add>, %264, %cst_143 [1] : vector<16x32xf32> to vector<16xf32>
      %266 = vector.shape_cast %265 : vector<16xf32> to vector<16x1xf32>
      %cst_144 = arith.constant 3.200000e+01 : f32
      %267 = vector.broadcast %cst_144 : f32 to vector<16x1xf32>
      %268 = arith.divf %266, %267 : vector<16x1xf32>
      %269 = vector.broadcast %261 : vector<16x1xf32> to vector<16x32xf32>
      %270 = arith.subf %248, %269 : vector<16x32xf32>
      %cst_145 = arith.constant 9.99999974E-6 : f32
      %271 = vector.broadcast %cst_145 : f32 to vector<16x1xf32>
      %272 = arith.addf %268, %271 : vector<16x1xf32>
      %273 = math.rsqrt %272 : vector<16x1xf32>
      %274 = vector.broadcast %273 : vector<16x1xf32> to vector<16x32xf32>
      %275 = arith.mulf %270, %274 : vector<16x32xf32>
      %276 = vector.broadcast %256 : vector<1x32xf32> to vector<16x32xf32>
      %277 = arith.mulf %275, %276 : vector<16x32xf32>
      %278 = vector.broadcast %257 : vector<1x32xf32> to vector<16x32xf32>
      %279 = arith.addf %277, %278 : vector<16x32xf32>
      %280 = vector.extract_strided_slice %279 {offsets = [7, 0], sizes = [1, 32], strides = [1, 1]} : vector<16x32xf32> to vector<1x32xf32>
      %281 = vector.extract_strided_slice %279 {offsets = [15, 0], sizes = [1, 32], strides = [1, 1]} : vector<16x32xf32> to vector<1x32xf32>
      %282 = tpu.concatenate %280, %281 in 0 : vector<1x32xf32>, vector<1x32xf32> -> vector<2x32xf32>
      %283 = arith.truncf %282 : vector<2x32xf32> to vector<2x32xbf16>
      %c0_146 = arith.constant 0 : index
      %c0_147 = arith.constant 0 : index
      %284 = vector.load %arg26[%c0_146, %c0_147] : memref<32x128xbf16, #tpu.memory_space<vmem>>, vector<32x128xbf16>
      %cst_148 = arith.constant dense<0.000000e+00> : vector<2x128xf32>
      %285 = tpu.matmul %283, %284, %cst_148 {dimension_numbers = #tpu.dot_dimension_numbers<[1], [0], [0], [1], [0, 0, 1, 1], [], []>} : vector<2x32xbf16>, vector<32x128xbf16>, vector<2x128xf32> -> vector<2x128xf32>
      %c0_149 = arith.constant 0 : index
      %c0_150 = arith.constant 0 : index
      %286 = vector.load %arg27[%c0_149, %c0_150] : memref<1x128xf32, #tpu.memory_space<vmem>>, vector<1x128xf32>
      %287 = vector.broadcast %286 : vector<1x128xf32> to vector<2x128xf32>
      %288 = arith.addf %285, %287 : vector<2x128xf32>
      %c0_151 = arith.constant 0 : index
      %c0_152 = arith.constant 0 : index
      %289 = vector.load %arg28[%c0_151, %c0_152] : memref<2x128xf32, #tpu.memory_space<vmem>>, vector<2x128xf32>
      tpu.vector_store %arg28[%c0_151, %c0_152], %288 {strides = array<i32>} : memref<2x128xf32, #tpu.memory_space<vmem>>, vector<2x128xf32>,
    } else {
    }
    return
  }
  func.func @transform_0(%arg0: i32) -> (i32, i32) {
    %c0_i32 = arith.constant 0 : i32
    %c0_i32_0 = arith.constant 0 : i32
    %c0_i32_1 = arith.constant 0 : i32
    return %c0_i32, %c0_i32_0 : i32, i32
  }
  func.func @transform_1(%arg0: i32) -> (i32, i32, i32, i32) {
    %c0_i32 = arith.constant 0 : i32
    %c0_i32_0 = arith.constant 0 : i32
    %c0_i32_1 = arith.constant 0 : i32
    %c0_i32_2 = arith.constant 0 : i32
    return %arg0, %c0_i32, %c0_i32_0, %c0_i32_1 : i32, i32, i32, i32
  }
  func.func @transform_2(%arg0: i32) -> (i32, i32, i32, i32) {
    %c0_i32 = arith.constant 0 : i32
    %c0_i32_0 = arith.constant 0 : i32
    %c0_i32_1 = arith.constant 0 : i32
    %c0_i32_2 = arith.constant 0 : i32
    return %arg0, %c0_i32, %c0_i32_0, %c0_i32_1 : i32, i32, i32, i32
  }
  func.func @transform_3(%arg0: i32) -> (i32, i32, i32) {
    %c0_i32 = arith.constant 0 : i32
    %c0_i32_0 = arith.constant 0 : i32
    %c0_i32_1 = arith.constant 0 : i32
    return %arg0, %c0_i32, %c0_i32_0 : i32, i32, i32
  }
  func.func @transform_4(%arg0: i32) -> (i32, i32, i32) {
    %c0_i32 = arith.constant 0 : i32
    %c0_i32_0 = arith.constant 0 : i32
    %c0_i32_1 = arith.constant 0 : i32
    return %arg0, %c0_i32, %c0_i32_0 : i32, i32, i32
  }
  func.func @transform_5(%arg0: i32) -> (i32, i32, i32) {
    %c0_i32 = arith.constant 0 : i32
    %c0_i32_0 = arith.constant 0 : i32
    %c0_i32_1 = arith.constant 0 : i32
    return %arg0, %c0_i32, %c0_i32_0 : i32, i32, i32
  }
  func.func @transform_6(%arg0: i32) -> (i32, i32, i32) {
    %c0_i32 = arith.constant 0 : i32
    %c0_i32_0 = arith.constant 0 : i32
    %c0_i32_1 = arith.constant 0 : i32
    return %arg0, %c0_i32, %c0_i32_0 : i32, i32, i32
  }
  func.func @transform_7(%arg0: i32) -> (i32, i32, i32) {
    %c0_i32 = arith.constant 0 : i32
    %c0_i32_0 = arith.constant 0 : i32
    %c0_i32_1 = arith.constant 0 : i32
    return %arg0, %c0_i32, %c0_i32_0 : i32, i32, i32
  }
  func.func @transform_8(%arg0: i32) -> (i32, i32, i32) {
    %c0_i32 = arith.constant 0 : i32
    %c0_i32_0 = arith.constant 0 : i32
    %c0_i32_1 = arith.constant 0 : i32
    return %arg0, %c0_i32, %c0_i32_0 : i32, i32, i32
  }
  func.func @transform_9(%arg0: i32) -> (i32, i32, i32) {
    %c0_i32 = arith.constant 0 : i32
    %c0_i32_0 = arith.constant 0 : i32
    %c0_i32_1 = arith.constant 0 : i32
    return %arg0, %c0_i32, %c0_i32_0 : i32, i32, i32
  }
  func.func @transform_10(%arg0: i32) -> (i32, i32, i32) {
    %c0_i32 = arith.constant 0 : i32
    %c0_i32_0 = arith.constant 0 : i32
    %c0_i32_1 = arith.constant 0 : i32
    return %arg0, %c0_i32, %c0_i32_0 : i32, i32, i32
  }
  func.func @transform_11(%arg0: i32) -> (i32, i32, i32) {
    %c0_i32 = arith.constant 0 : i32
    %c0_i32_0 = arith.constant 0 : i32
    %c0_i32_1 = arith.constant 0 : i32
    return %arg0, %c0_i32, %c0_i32_0 : i32, i32, i32
  }
  func.func @transform_12(%arg0: i32) -> (i32, i32, i32) {
    %c0_i32 = arith.constant 0 : i32
    %c0_i32_0 = arith.constant 0 : i32
    %c0_i32_1 = arith.constant 0 : i32
    return %arg0, %c0_i32, %c0_i32_0 : i32, i32, i32
  }
  func.func @transform_13(%arg0: i32) -> (i32, i32, i32) {
    %c2_i32 = arith.constant 2 : i32
    %0 = arith.subi %arg0, %c2_i32 : i32
    %c0_i32 = arith.constant 0 : i32
    %1 = arith.maxsi %0, %c0_i32 : i32
    %c0_i32_0 = arith.constant 0 : i32
    %c0_i32_1 = arith.constant 0 : i32
    %c0_i32_2 = arith.constant 0 : i32
    return %1, %c0_i32_0, %c0_i32_1 : i32, i32, i32
  }
  func.func @transform_14(%arg0: i32) -> (i32, i32, i32) {
    %c2_i32 = arith.constant 2 : i32
    %0 = arith.subi %arg0, %c2_i32 : i32
    %c0_i32 = arith.constant 0 : i32
    %1 = arith.maxsi %0, %c0_i32 : i32
    %c0_i32_0 = arith.constant 0 : i32
    %c0_i32_1 = arith.constant 0 : i32
    %c0_i32_2 = arith.constant 0 : i32
    return %1, %c0_i32_0, %c0_i32_1 : i32, i32, i32
  }
  func.func @transform_15(%arg0: i32) -> (i32, i32, i32, i32) {
    %c2_i32 = arith.constant 2 : i32
    %0 = arith.subi %arg0, %c2_i32 : i32
    %c0_i32 = arith.constant 0 : i32
    %1 = arith.maxsi %0, %c0_i32 : i32
    %c0_i32_0 = arith.constant 0 : i32
    %c0_i32_1 = arith.constant 0 : i32
    %c0_i32_2 = arith.constant 0 : i32
    %c0_i32_3 = arith.constant 0 : i32
    return %1, %c0_i32_0, %c0_i32_1, %c0_i32_2 : i32, i32, i32, i32
  }
  func.func @transform_16(%arg0: i32) -> (i32, i32, i32, i32) {
    %c2_i32 = arith.constant 2 : i32
    %0 = arith.subi %arg0, %c2_i32 : i32
    %c0_i32 = arith.constant 0 : i32
    %1 = arith.maxsi %0, %c0_i32 : i32
    %c0_i32_0 = arith.constant 0 : i32
    %c0_i32_1 = arith.constant 0 : i32
    %c0_i32_2 = arith.constant 0 : i32
    %c0_i32_3 = arith.constant 0 : i32
    return %1, %c0_i32_0, %c0_i32_1, %c0_i32_2 : i32, i32, i32, i32
  }
  func.func @transform_17(%arg0: i32) -> (i32, i32, i32) {
    %c2_i32 = arith.constant 2 : i32
    %0 = arith.subi %arg0, %c2_i32 : i32
    %c0_i32 = arith.constant 0 : i32
    %1 = arith.maxsi %0, %c0_i32 : i32
    %c0_i32_0 = arith.constant 0 : i32
    %c0_i32_1 = arith.constant 0 : i32
    %c0_i32_2 = arith.constant 0 : i32
    return %1, %c0_i32_0, %c0_i32_1 : i32, i32, i32
  }
  func.func @transform_18(%arg0: i32) -> (i32, i32, i32) {
    %c2_i32 = arith.constant 2 : i32
    %0 = arith.subi %arg0, %c2_i32 : i32
    %c0_i32 = arith.constant 0 : i32
    %1 = arith.maxsi %0, %c0_i32 : i32
    %c0_i32_0 = arith.constant 0 : i32
    %c0_i32_1 = arith.constant 0 : i32
    %c0_i32_2 = arith.constant 0 : i32
    return %1, %c0_i32_0, %c0_i32_1 : i32, i32, i32
  }
  func.func @transform_19(%arg0: i32) -> (i32, i32, i32) {
    %c2_i32 = arith.constant 2 : i32
    %0 = arith.subi %arg0, %c2_i32 : i32
    %c0_i32 = arith.constant 0 : i32
    %1 = arith.maxsi %0, %c0_i32 : i32
    %c0_i32_0 = arith.constant 0 : i32
    %c0_i32_1 = arith.constant 0 : i32
    %c0_i32_2 = arith.constant 0 : i32
    return %1, %c0_i32_0, %c0_i32_1 : i32, i32, i32
  }
  func.func @transform_20(%arg0: i32) -> (i32, i32, i32) {
    %c2_i32 = arith.constant 2 : i32
    %0 = arith.subi %arg0, %c2_i32 : i32
    %c0_i32 = arith.constant 0 : i32
    %1 = arith.maxsi %0, %c0_i32 : i32
    %c0_i32_0 = arith.constant 0 : i32
    %c0_i32_1 = arith.constant 0 : i32
    %c0_i32_2 = arith.constant 0 : i32
    return %1, %c0_i32_0, %c0_i32_1 : i32, i32, i32
  }
  func.func @transform_21(%arg0: i32) -> (i32, i32) {
    %c0_i32 = arith.constant 0 : i32
    %c0_i32_0 = arith.constant 0 : i32
    %c0_i32_1 = arith.constant 0 : i32
    return %c0_i32, %c0_i32_0 : i32, i32
  }
  func.func @transform_22(%arg0: i32) -> (i32, i32) {
    %c0_i32 = arith.constant 0 : i32
    %c0_i32_0 = arith.constant 0 : i32
    %c0_i32_1 = arith.constant 0 : i32
    return %c0_i32, %c0_i32_0 : i32, i32
  }
  func.func @transform_23(%arg0: i32) -> (i32, i32) {
    %c0_i32 = arith.constant 0 : i32
    %c0_i32_0 = arith.constant 0 : i32
    %c0_i32_1 = arith.constant 0 : i32
    return %c0_i32, %c0_i32_0 : i32, i32
  }
  func.func @transform_24(%arg0: i32) -> (i32, i32) {
    %c0_i32 = arith.constant 0 : i32
    %c0_i32_0 = arith.constant 0 : i32
    %c0_i32_1 = arith.constant 0 : i32
    return %c0_i32, %c0_i32_0 : i32, i32
  }
  func.func @transform_25(%arg0: i32) -> (i32, i32) {
    %c0_i32 = arith.constant 0 : i32
    %c0_i32_0 = arith.constant 0 : i32
    %c0_i32_1 = arith.constant 0 : i32
    return %c0_i32, %c0_i32_0 : i32, i32
  }
  func.func @transform_26(%arg0: i32) -> (i32, i32) {
    %c0_i32 = arith.constant 0 : i32
    %c0_i32_0 = arith.constant 0 : i32
    %c0_i32_1 = arith.constant 0 : i32
    return %c0_i32, %c0_i32_0 : i32, i32
  }
  func.func @transform_27(%arg0: i32) -> (i32, i32) {
    %c0_i32 = arith.constant 0 : i32
    %c0_i32_0 = arith.constant 0 : i32
    %c0_i32_1 = arith.constant 0 : i32
    return %c0_i32, %c0_i32_0 : i32, i32
  }
}

</mosaic_0001>

<bundles_post_ra>
// kernel: transformer_model_forward.1
= control target key start
LH: loop header
LB: loop body
LE: loop exit
PB: predicated region body
PF: predicated region fallthrough
CT: control target
= control target key end

     0   :  { %s8965_s0 = inlined_call_operand.vmem [shape: f32[16,32], index: 0, kind: input, shape index: {}]   ;;  %s8966_s1 = inlined_call_operand.vmem [shape: bf16[8,3,32,32], index: 1, kind: input, shape index: {}]   ;;  %s8967_s2 = inlined_call_operand.vmem [shape: f32[8,3,1,32], index: 2, kind: input, shape index: {}]   ;;  %s8968_s3 = inlined_call_operand.vmem [shape: bf16[8,32,32], index: 3, kind: input, shape index: {}]   ;;  %s8969_s4 = inlined_call_operand.vmem [shape: f32[8,1,32], index: 4, kind: input, shape index: {}]   ;;  %s8970_s5 = inlined_call_operand.vmem [shape: f32[8,1,32], index: 5, kind: input, shape index: {}]   ;;  %s8971_s6 = inlined_call_operand.vmem [shape: f32[8,1,32], index: 6, kind: input, shape index: {}]   ;;  %s8972_s7 = inlined_call_operand.vmem [shape: bf16[8,32,2048], index: 7, kind: input, shape index: {}]   ;;  %s8973_s8 = inlined_call_operand.vmem [shape: f32[8,1,2048], index: 8, kind: input, shape index: {}]   ;;  %s8974_s9 = inlined_call_operand.vmem [shape: bf16[8,2048,32], index: 9, kind: input, shape index: {}]   ;;  %s8975_s10 = inlined_call_operand.vmem [shape: f32[8,1,32], index: 10, kind: input, shape index: {}]   ;;  %s8976_s11 = inlined_call_operand.vmem [shape: f32[8,1,32], index: 11, kind: input, shape index: {}]   ;;  %s8977_s12 = inlined_call_operand.vmem [shape: f32[8,1,32], index: 12, kind: input, shape index: {}]   ;;  %s8978_s13 = inlined_call_operand.vmem [shape: bf16[6,32,32], index: 13, kind: input, shape index: {}]   ;;  %s8979_s14 = inlined_call_operand.vmem [shape: f32[6,1,32], index: 14, kind: input, shape index: {}]   ;;  %s8980_s15 = inlined_call_operand.vmem [shape: bf16[6,2,32,32], index: 15, kind: input, shape index: {}]   ;;  %s8981_s16 = inlined_call_operand.vmem [shape: f32[6,2,1,32], index: 16, kind: input, shape index: {}]   ;;  %s8982_s17 = inlined_call_operand.vmem [shape: bf16[6,32,32], index: 17, kind: input, shape index: {}]   ;;  %s8983_s18 = inlined_call_operand.vmem [shape: f32[6,1,32], index: 18, kind: input, shape index: {}]   ;;  %s8984_s19 = inlined_call_operand.vmem [shape: f32[6,1,32], index: 19, kind: input, shape index: {}]   ;;  %s8985_s20 = inlined_call_operand.vmem [shape: f32[6,1,32], index: 20, kind: input, shape index: {}]   ;;  %s8986_s21 = inlined_call_operand.vmem [shape: f32[1,32], index: 21, kind: input, shape index: {}]   ;;  %s8987_s22 = inlined_call_operand.vmem [shape: f32[1,32], index: 22, kind: input, shape index: {}]   ;;  %s8988_s23 = inlined_call_operand.vmem [shape: f32[1,32], index: 23, kind: input, shape index: {}]   ;;  %s8989_s24 = inlined_call_operand.vmem [shape: f32[1,32], index: 24, kind: input, shape index: {}]   ;;  %s8990_s25 = inlined_call_operand.vmem [shape: bf16[32,128], index: 25, kind: input, shape index: {}]   ;;  %s8991_s26 = inlined_call_operand.vmem [shape: f32[1,128], index: 26, kind: input, shape index: {}]   ;;  %s8992_s27 = inlined_call_operand.hbm [shape: f32[2,128], index: 27, kind: output, shape index: {}]  }
   0x1   :  { %8999 = sst [smem:[#allocation11_spill]] %s8965_s0 }
   0x2   :  { %9000 = sst [smem:[#allocation12_spill]] %s8966_s1 }
   0x3   :  { %9001 = sst [smem:[#allocation13_spill]] %s8967_s2 }
   0x4   :  { %9002 = sst [smem:[#allocation14_spill]] %s8968_s3 }
   0x5   :  { %9003 = sst [smem:[#allocation15_spill]] %s8969_s4 }
   0x6   :  { %9004 = sst [smem:[#allocation16_spill]] %s8970_s5 }
   0x7   :  { %9005 = sst [smem:[#allocation17_spill]] %s8971_s6 }
   0x8   :  { %9006 = sst [smem:[#allocation18_spill]] %s8972_s7 }
   0x9   :  { %9007 = sst [smem:[#allocation19_spill]] %s8973_s8 }
   0xa   :  { %9008 = sst [smem:[#allocation20_spill]] %s8974_s9 }
   0xb   :  { %9009 = sst [smem:[#allocation21_spill]] %s8975_s10 }
   0xc   :  { %9010 = sst [smem:[#allocation22_spill]] %s8976_s11 }
   0xd   :  { %9011 = sst [smem:[#allocation23_spill]] %s8977_s12 }
   0xe   :  { %9012 = sst [smem:[#allocation24_spill]] %s8978_s13 }
   0xf   :  { %9013 = sst [smem:[#allocation25_spill]] %s8980_s15 }
  0x10   :  { %9014 = sst [smem:[#allocation26_spill]] %s8981_s16 }
  0x11   :  { %9015 = sst [smem:[#allocation27_spill]] %s8982_s17 }
  0x12   :  { %9016 = sst [smem:[#allocation28_spill]] %s8983_s18 }
  0x13   :  { %9017 = sst [smem:[#allocation29_spill]] %s8984_s19 }
  0x14   :  { %9018 = sst [smem:[#allocation30_spill]] %s8985_s20 }
  0x15   :  { %9019 = sst [smem:[#allocation31_spill]] %s8986_s21 }
  0x16   :  { %9020 = sst [smem:[#allocation32_spill]] %s8987_s22 }
  0x17   :  { %9021 = sst [smem:[#allocation33_spill]] %s8988_s23 }
  0x18   :  { %9022 = sst [smem:[#allocation34_spill]] %s8989_s24 }
  0x19   :  { %9023 = sst [smem:[#allocation35_spill]] %s8990_s25 }
  0x1a   :  { %9024 = sst [smem:[#allocation36_spill]] %s8991_s26 }
  0x1b   :  { %9025 = sst [smem:[#allocation37_spill]] %s8992_s27 }
  0x1c   :  { %32 = vsyncpa [#allocation5], 0  ;;  %s8008_s7 = smov 0  }
  0x1d LB: > { %9026 = sst [smem:[#allocation7_spill]] %s7852_s7  ;;  %s8014_s4 = sadd.s32 4294967295, %s7852_s7   ;;  %s7852_s7 = sphi %s8008_s7, %s38_s7  }
  0x1e   : > { %p6590_p0 = scmp.ge.s32.totalorder %s7852_s7, 1  ;;  %p996_p1 = scmp.lt.s32.totalorder %s7852_s7, 9 }
  0x20   : > { %p997_p2 = pnand %p6590_p0, %p996_p1 }
  0x22   : > { %1000 = sbr.rel (%p997_p2) target bundleno = 8886 (0x22b6), region = 128 }
  0x27   : > { %p1159_p3 = scmp.lt.s32.totalorder %s8014_s4, 7  ;;  %s6599_s8 = sadd.s32 4294967294, %s8014_s4 }
  0x28   : > { %p1206_p4 = scmp.gt.s32.totalorder %s6599_s8, 0  ;;  %p6600_p5 = scmp.lt.s32.totalorder %s6599_s8, 5 }
  0x29   : > { %s8021_s30 = scalar_select %p1159_p3, %s8014_s4, 7 }
  0x2a   : > { %s1207_s9 = scalar_select %p1206_p4, %s6599_s8, 0 }
  0x2b   : > { %s7560_s5 = smul.u32 48, %s8021_s30  ;;  %s6945_s28 = sshll.u32 %s8021_s30, 4 }
  0x2c   : > { %s7561_s0 = smul.u32 3, %s8021_s30  ;;  %s9027_s1 = sld [smem:[#allocation14_spill]] }
  0x2d   : > { %s9029_s3 = sld [smem:[#allocation12_spill]]  ;;  %s6946_s2 = sshll.u32 %s8021_s30, 8 }
  0x2e   : > { %s9032_s21 = sld [smem:[#allocation13_spill]]  ;;  %s9078_s9 = smov (!%p6600_p5, %s1207_s9), 5 }
  0x2f   : > { %s9036_s27 = sld [smem:[#allocation19_spill]]  ;;  %p1285_p6 = scmp.eq.s32.totalorder %s8014_s4, 0 }
  0x30   : > { %s9039_s18 = sld [smem:[#allocation20_spill]]  ;;  %p1286_p7 = scmp.eq.s32.totalorder %s8014_s4, 2 }
  0x31   : > { %s9042_s13 = sld [smem:[#allocation24_spill]]  ;;  %s6955_s25 = sshll.u32 %s9078_s9, 5 }
  0x32   : > { %s8029_s6 = scalar_lea.vmem %s9027_s1, %s6945_s28  ;;  %s6950_s1 = sshll.u32 %s9078_s9, 4 }
  0x33   : > { %9028 = sst [smem:[#allocation8_spill]] %s8029_s6  ;;  %s8034_s7 = scalar_lea.vmem %s9029_s3, %s7560_s5 }
  0x34   : > { %9030 = sst [smem:[#allocation9_spill]] %s8034_s7  ;;  %s8043_s20 = scalar_lea.vmem %s9032_s21, %s7561_s0 }
  0x35   : > { %s9035_s7 = sld [smem:[#allocation18_spill]]  ;;  %s8062_s22 = scalar_lea.vmem %s9036_s27, %s6945_s28 }
  0x36   : > { %9037 = sst [smem:[#allocation10_spill]] %s8062_s22  ;;  %s6947_s21 = sshll.u32 %s8021_s30, 10 }
  0x37   : > { %s8072_s17 = scalar_lea.vmem %s9039_s18, %s6947_s21  ;;  %s8095_s8 = scalar_lea.vmem %s9042_s13, %s6950_s1 }
  0x38   : > { %s9043_s15 = sld [smem:[#allocation25_spill]]  ;;  %s6627_s18 = sshll.u32 %s9078_s9, 1 }
  0x39   : > { %s9045_s24 = sld [smem:[#allocation27_spill]]  ;;  %p1287_p8 = por %p1286_p7, %p1285_p6 }
  0x3a   : > { %s9046_s10 = sld [smem:[#allocation28_spill]]  ;;  %vm1293_vm0 = vcmask (%p1287_p8), 261120  }
  0x3b   : > { %s8057_s16 = scalar_lea.vmem %s9035_s7, %s6946_s2  ;;  %s9044_s2 = sld [smem:[#allocation26_spill]] }
  0x3c   : > { %s9047_s0 = sld [smem:[#allocation29_spill]] }
  0x3d   : > { %s9048_s12 = sld [smem:[#allocation30_spill]] }
  0x3e   : > { %s8101_s29 = scalar_lea.vmem %s9043_s15, %s6955_s25  ;;  %s9049_s28 = sld [smem:[#allocation11_spill]] (%p1287_p8) }
  0x3f   : > { %s8112_s7 = scalar_lea.vmem %s9045_s24, %s6950_s1  ;;  %1290 = sbr.rel (!%p1287_p8) target bundleno = 70 (0x46), region = 132 }
  0x40   : > { %s1262_s26 = scalar_lea.vmem %s9046_s10, %s9078_s9 }
  0x41   : > { %s8107_s3 = scalar_lea.vmem %s9044_s2, %s6627_s18 }
  0x42   : > { %s1271_s25 = scalar_lea.vmem %s9047_s0, %s9078_s9 }
  0x43   : > { %s1280_s22 = scalar_lea.vmem %s9048_s12, %s9078_s9 }
  0x44   : > { %v1291_v0 = vld [vmem:[%s9049_s28] sm:$0xff]  ;;  %v1292_v1 = vld [vmem:[%s9049_s28 + $0x8] sm:$0xff] }
  0x45   : > { %1294 = vst.msk [vmem:[#allocation2] sm:$0xff] %vm1293_vm0, %v1291_v0  ;;  %1295 = vst.msk [vmem:[#allocation2 + $0x8] sm:$0xff] %vm1293_vm0, %v1292_v1 }
  0x46 PF: > { %s9050_s13 = sld [smem:[#allocation9_spill]]  ;;  %v7854_v3 = vmov 0.0   ;;  %vm7855_vm1 = vmmov 0   ;;  %vm1322_vm2 = vcmask 261120   ;;  %v6663_v12 = vld [vmem:[%s8043_s20 + $0x1] ss:$0 sm:$0xff] }
  0x47   : > { %7272 = vmatprep.subr.bf16.mxu1 %v7854_v3  ;;  %7264 = vmatprep.subr.bf16.mxu0 %v7854_v3  ;;  %v6654_v17 = vld [vmem:[%s8043_s20] ss:$0 sm:$0xff]  ;;  %vm1522_vm3 = vcmask 64512   ;;  %s7856_s12 = smov 120   ;;  %v6672_v32 = vld [vmem:[%s8043_s20 + $0x2] ss:$0 sm:$0xff] }
  0x48   : > { %7276 = vmatprep.mubr.msk.bf16.mxu1 %vm7855_vm1, %v7854_v3  ;;  %7268 = vmatprep.mubr.msk.bf16.mxu0 %vm7855_vm1, %v7854_v3  ;;  %vm1644_vm4 = vcmask 1043456   ;;  %s7857_s15 = smov 112   ;;  %s9051_s20 = sld [smem:[#allocation8_spill]] }
  0x49   : > { %s7858_s23 = smov 104   ;;  %s9052_s11 = sld [smem:[#allocation15_spill]] }
  0x4a   : > { %s9054_s0 = sld [smem:[#allocation16_spill]]  ;;  %p6709_p9 = scmp.lt.s32.totalorder %s8014_s4, 2 }
  0x4b   : > { %s9056_s1 = sld [smem:[#allocation17_spill]] }
  0x4c   : > { %v7590_v2 = vld [vmem:[%s9050_s13 + $0x18] sm:$0xff]   ;;  %v7591_v4 = vld [vmem:[%s9050_s13 + $0x8] sm:$0xff]   ;;  %v7592_v5 = vld [vmem:[%s9050_s13 + $0x10] sm:$0xff]  }
  0x4d   : > { %7273 = vmatpush3.bf16.msra.mxu1 %v7590_v2  ;;  %7265 = vmatpush3.bf16.msra.mxu0 %v7591_v4  ;;  %v7593_v6 = vld [vmem:[%s9050_s13] sm:$0xff]   ;;  %v8146_v8 = vld [vmem:[#allocation2 + $0x8] sm:$0xff] }
  0x4e   : > { %7274 = vmatprep.subr.bf16.mxu1 %v7854_v3  ;;  %7266 = vmatprep.subr.bf16.mxu0 %v7854_v3  ;;  %v8144_v7 = vld [vmem:[#allocation2] sm:$0xff]  ;;  %v7594_v10 = vld [vmem:[%s9050_s13 + $0x28] sm:$0xff]  }
  0x4f   : > { %v1298_v9 = vpack.c.bf16 %v8146_v8, %v8144_v7  ;;  %v7595_v11 = vld [vmem:[%s9050_s13 + $0x20] sm:$0xff]   ;;  %s9053_s24 = scalar_lea.vmem %s9052_s11, %s8021_s30 }
  0x50   : > { %s9055_s19 = scalar_lea.vmem %s9054_s0, %s8021_s30 }
  0x51   : > { %7275 = vmatpush3.bf16.msra.mxu1 %v7592_v5  ;;  %7267 = vmatpush3.bf16.msra.mxu0 %v7593_v6  ;;  %s9057_s5 = scalar_lea.vmem %s9056_s1, %s8021_s30 }
  0x52   : > { %7288 = vmatprep.subr.bf16.mxu1 %v7854_v3  ;;  %7280 = vmatprep.subr.bf16.mxu0 %v7854_v3 }
  0x54   : > { %7277 = vmatmul.mubr.msk.bf16.vlgmr.msra.gmra.mxu1 %vm1322_vm2, %v1298_v9  ;;  %7269 = vmatmul.mubr.msk.bf16.vlgmr.msra.gmra.mxu0 %vm1322_vm2, %v1298_v9 }
  0x55   : > { %7290 = vmatprep.mubr.msk.bf16.mxu1 %vm7855_vm1, %v7854_v3  ;;  %7281 = vmatpush3.bf16.msra.mxu0 %v7594_v10 }
  0x56   : > { %7284 = vmatprep.mubr.msk.bf16.mxu0 %vm7855_vm1, %v7854_v3  ;;  %7282 = vmatprep.subr.bf16.mxu0 %v7854_v3 }
  0x59   : > { %7283 = vmatpush3.bf16.msra.mxu0 %v7595_v11 }
  0x5a   : > { %7294 = vmatprep.subr.bf16.mxu0 %v7854_v3 }
  0x5c   : > { %7285 = vmatmul.mubr.msk.bf16.vlgmr.msra.gmra.mxu0 %vm1322_vm2, %v1298_v9 }
  0x5d   : > { %7296 = vmatprep.mubr.msk.bf16.mxu0 %vm7855_vm1, %v7854_v3 }
 0x114   : > { %v1426_v13 = vpop.f32.mrf.mxu1  ;;  %v1360_v15 = vpop.f32.mrf.mxu0 }
 0x115   : > { %v1427_v14 = vadd.f32 %v6663_v12, %v1426_v13  ;;  %v1361_v21 = vadd.f32 %v6654_v17, %v1360_v15 }
 0x116   : > { %v7278_v16 = vpop.f32.mrf.mxu1  ;;  %v7270_v19 = vpop.f32.mrf.mxu0 }
 0x117   : > { %v8169_v18 = vpack.c.bf16 %v1427_v14, %v1427_v14  ;;  %v8176_v28 = vpack.c.bf16 %v1361_v21, %v1361_v21 }
 0x118   : > { %v1429_v20 = vpop.f32.mrf.mxu1  ;;  %v1363_v24 = vpop.f32.mrf.mxu0 }
 0x119   : > { %v1430_v22 = vadd.f32 %v6663_v12, %v1429_v20  ;;  %v1527_v23 = vsel %vm1522_vm3, %v8169_v18, 0  ;;  %v1364_v30 = vadd.f32 %v6654_v17, %v1363_v24 }
 0x11a   : > { %v7279_v25 = vpop.f32.mrf.mxu1  ;;  %7289 = vmatpush3.bf16.xpose.msra.mxu1 %v1527_v23  ;;  %v7271_v27 = vpop.f32.mrf.mxu0 }
 0x11b   : > { %v8173_v26 = vpack.c.bf16 %v1430_v22, %v1430_v22  ;;  %7300 = vmatprep.subr.bf16.mxu1 %v7854_v3  ;;  %v8187_v31 = vpack.c.bf16 %v1364_v30, %v1364_v30 }
 0x11c   : > { %v1492_v33 = vpop.f32.mrf.mxu0 }
 0x11d   : > { %1788 = vrot.lane.b32.xlu1 %v8173_v26, %s7856_s12  ;;  %v1573_v29 = vsel %vm1522_vm3, %v8173_v26, 0  ;;  %v1493_v35 = vadd.f32 %v6672_v32, %v1492_v33 }
 0x11e   : > { %7295 = vmatpush3.bf16.xpose.msra.mxu0 %v1573_v29  ;;  %v7286_v34 = vpop.f32.mrf.mxu0 }
 0x11f   : > { %7306 = vmatprep.subr.bf16.mxu0 %v7854_v3  ;;  %v8194_v39 = vpack.c.bf16 %v1493_v35, %v1493_v35 }
 0x120   : > { %v1495_v36 = vpop.f32.mrf.mxu0 }
 0x121   : > { %7291 = vmatmul.mubr.msk.bf16.vlgmr.msra.gmra.mxu1 %vm1522_vm3, %v8176_v28  ;;  %v1496_v37 = vadd.f32 %v6672_v32, %v1495_v36  ;;  %v1646_v41 = vsel %vm1644_vm4, %v8194_v39, 0 }
 0x122   : > { %7302 = vmatprep.mubr.msk.bf16.mxu1 %vm7855_vm1, %v7854_v3  ;;  %v7287_v38 = vpop.f32.mrf.mxu0  ;;  %7301 = vmatpush3.bf16.msra.mxu1 %v1646_v41 }
 0x123   : > { %v8196_v40 = vpack.c.bf16 %v1496_v37, %v1496_v37  ;;  %7312 = vmatprep.subr.bf16.mxu1 %v7854_v3 }
 0x125   : > { %7297 = vmatmul.mubr.msk.bf16.vlgmr.msra.gmra.mxu0 %vm1522_vm3, %v8187_v31  ;;  %v1692_v42 = vsel %vm1644_vm4, %v8196_v40, 0 }
 0x126   : > { %7308 = vmatprep.mubr.msk.bf16.mxu0 %vm7855_vm1, %v7854_v3  ;;  %7307 = vmatpush3.bf16.msra.mxu0 %v1692_v42 }
 0x127   : > { %7318 = vmatprep.subr.bf16.mxu0 %v7854_v3 }
 0x18f   : > { %v1789_v1 = vpop.permute.xlu1 %1788 }
 0x190   : > { %v1794_v15 = vsel %vm1522_vm3, %v1789_v1, 0  ;;  %v1499_v1 = vld [vmem:[%s9051_s20] sm:$0xf] }
 0x1e1   : > { %v1563_v43 = vpop.f32.mrf.mxu1 }
 0x1e2   : > { %v1615_v44 = vmul.f32 0.35355338, %v1563_v43 }
 0x1e3   : > { %v7292_v45 = vpop.f32.mrf.mxu1 }
 0x1e4   : > { %v1617_v46 = vsel %vm1522_vm3, %v1615_v44, -inf }
 0x1e5   : > { %1618 = vmax.xlane.f32.xlu0 %v1617_v46  ;;  %v1566_v47 = vpop.f32.mrf.mxu1  ;;  %v1609_v48 = vpop.f32.mrf.mxu0 }
 0x1e6   : > { %v1616_v49 = vmul.f32 0.35355338, %v1609_v48 }
 0x1e7   : > { %v7293_v50 = vpop.f32.mrf.mxu1  ;;  %v7298_v51 = vpop.f32.mrf.mxu0 }
 0x1e8   : > { %v1620_v52 = vsel %vm1522_vm3, %v1616_v49, -inf }
 0x1e9   : > { %1621 = vmax.xlane.f32.xlu0 %v1620_v52  ;;  %v1612_v53 = vpop.f32.mrf.mxu0 }
 0x1eb   : > { %v7299_v54 = vpop.f32.mrf.mxu0 }
 0x1ff   : > { %1738 = vrot.lane.b32.xlu0 %v8169_v18, %s7856_s12 }
 0x26e   : > { %v1619_v55 = vpop.xlane.xlu0 %1618 }
 0x26f   : > { %v1623_v56 = vsub.f32 %v1615_v44, %v1619_v55 }
 0x271   : > { %v1625_v57 = vmul.f32 1.442695, %v1623_v56 }
 0x272   : > { %v1622_v58 = vpop.xlane.xlu0 %1621 }
 0x273   : > { %7596 = vpow2.f32 %v1625_v57  ;;  %v1624_v59 = vsub.f32 %v1616_v49, %v1622_v58 }
 0x275   : > { %v1627_v60 = vmul.f32 1.442695, %v1624_v59 }
 0x276   : > { %v1739_v9 = vpop.permute.xlu0 %1738 }
 0x277   : > { %7598 = vpow2.f32 %v1627_v60  ;;  %v1744_v12 = vsel %vm1522_vm3, %v1739_v9, 0 }
 0x280   : > { %v7597_v61 = vpop.eup %7596 }
 0x281   : > { %v1629_v62 = vsel %vm1522_vm3, %v7597_v61, 0.0 }
 0x282   : > { %1630 = vadd.xlane.f32.xlu1 %v1629_v62 }
 0x284   : > { %v7599_v63 = vpop.eup %7598 }
 0x285   : > { %v1632_v0 = vsel %vm1522_vm3, %v7599_v63, 0.0 }
 0x286   : > { %1633 = vadd.xlane.f32.xlu1 %v1632_v0 }
 0x297   : > { %1736 = vrot.lane.b32.xlu1 %v8176_v28, %s7856_s12 }
 0x29b   : > { %1786 = vrot.lane.b32.xlu1 %v8187_v31, %s7856_s12 }
 0x30b   : > { %v1631_v2 = vpop.xlane.xlu1 %1630 }
 0x30c   : > { %7600 = vrcp.f32 %v1631_v2 }
 0x30f   : > { %v1634_v4 = vpop.xlane.xlu1 %1633 }
 0x310   : > { %7602 = vrcp.f32 %v1634_v4 }
 0x313   : > { %v1737_v16 = vpop.permute.xlu1 %1736 }
 0x317   : > { %v1787_v17 = vpop.permute.xlu1 %1786 }
 0x319   : > { %v7601_v5 = vpop.eup %7600 }
 0x31a   : > { %v1637_v6 = vmul.f32 %v7601_v5, %v7597_v61  ;;  %v2021_v5 = vsel %vm1644_vm4, %v1499_v1, 0 }
 0x31c   : > { %v1639_v10 = vpack.c.bf16 %v1637_v6, %v1637_v6 }
 0x31d   : > { %v7603_v11 = vpop.eup %7602 }
 0x31e   : > { %7303 = vmatmul.mubr.msk.bf16.vlgmr.msra.gmra.mxu1 %vm1522_vm3, %v1639_v10  ;;  %v1638_v13 = vmul.f32 %v7603_v11, %v7599_v63 }
 0x31f   : > { %7313 = vmatpush3.bf16.xpose.msra.mxu1 %v1744_v12  ;;  %7314 = vmatprep.mubr.msk.bf16.mxu1 %vm7855_vm1, %v7854_v3  ;;  %v1500_v12 = vld [vmem:[%s9051_s20 + $0x4] sm:$0xf] }
 0x320   : > { %v1640_v14 = vpack.c.bf16 %v1638_v13, %v1638_v13  ;;  %7324 = vmatprep.subr.bf16.mxu1 %v7854_v3  ;;  %v1969_v13 = vsel %vm1644_vm4, %v1500_v12, 0 }
 0x322   : > { %7309 = vmatmul.mubr.msk.bf16.vlgmr.msra.gmra.mxu0 %vm1522_vm3, %v1640_v14 }
 0x323   : > { %7319 = vmatpush3.bf16.xpose.msra.mxu0 %v1794_v15  ;;  %7320 = vmatprep.mubr.msk.bf16.mxu0 %vm7855_vm1, %v7854_v3 }
 0x324   : > { %7330 = vmatprep.subr.bf16.mxu0 %v7854_v3 }
 0x326   : > { %7315 = vmatmul.mubr.msk.bf16.vlgmr.msra.gmra.mxu1 %vm1522_vm3, %v1737_v16 }
 0x327   : > { %7326 = vmatprep.mubr.msk.bf16.mxu1 %vm7855_vm1, %v7854_v3 }
 0x32a   : > { %7321 = vmatmul.mubr.msk.bf16.vlgmr.msra.gmra.mxu0 %vm1522_vm3, %v1787_v17 }
 0x32b   : > { %7332 = vmatprep.mubr.msk.bf16.mxu0 %vm7855_vm1, %v7854_v3 }
 0x3de   : > { %v8230_v19 = vpop.f32.mrf.mxu1 }
 0x3e0   : > { %v7304_v20 = vpop.f32.mrf.mxu1 }
 0x3e2   : > { %v1685_v21 = vpop.f32.mrf.mxu1  ;;  %v8232_v22 = vpop.f32.mrf.mxu0 }
 0x3e3   : > { %v6974_v23 = vpack.c.bf16 %v8232_v22, %v8230_v19 }
 0x3e4   : > { %v7305_v24 = vpop.f32.mrf.mxu1  ;;  %v7310_v25 = vpop.f32.mrf.mxu0 }
 0x3e6   : > { %v1731_v27 = vpop.f32.mrf.mxu0  ;;  %v1780_v29 = vpop.f32.mrf.mxu1 }
 0x3e7   : > { %v1836_v30 = vmul.f32 0.35355338, %v1780_v29 }
 0x3e8   : > { %v7311_v32 = vpop.f32.mrf.mxu0  ;;  %v7316_v33 = vpop.f32.mrf.mxu1 }
 0x3e9   : > { %v1838_v34 = vsel %vm1522_vm3, %v1836_v30, -inf }
 0x3ea   : > { %1839 = vmax.xlane.f32.xlu0 %v1838_v34  ;;  %v1783_v35 = vpop.f32.mrf.mxu1  ;;  %v1830_v36 = vpop.f32.mrf.mxu0 }
 0x3eb   : > { %v1837_v37 = vmul.f32 0.35355338, %v1830_v36 }
 0x3ec   : > { %v7317_v38 = vpop.f32.mrf.mxu1  ;;  %v7322_v41 = vpop.f32.mrf.mxu0 }
 0x3ed   : > { %v1841_v42 = vsel %vm1522_vm3, %v1837_v37, -inf }
 0x3ee   : > { %1842 = vmax.xlane.f32.xlu1 %v1841_v42  ;;  %v1833_v43 = vpop.f32.mrf.mxu0 }
 0x3f0   : > { %v7323_v44 = vpop.f32.mrf.mxu0 }
 0x3ff   : > { %1910 = vrot.lane.b32.xlu1 %v8196_v40, %s7856_s12 }
 0x403   : > { %2066 = vrot.lane.b32.xlu1 %v8169_v18, %s7857_s15 }
 0x407   : > { %2116 = vrot.lane.b32.xlu1 %v8173_v26, %s7857_s15 }
 0x40b   : > { %2114 = vrot.lane.b32.xlu1 %v8187_v31, %s7857_s15 }
 0x473   : > { %v1840_v45 = vpop.xlane.xlu0 %1839 }
 0x474   : > { %v1844_v46 = vsub.f32 %v1836_v30, %v1840_v45 }
 0x476   : > { %v1846_v47 = vmul.f32 1.442695, %v1844_v46 }
 0x477   : > { %v1843_v48 = vpop.xlane.xlu1 %1842 }
 0x478   : > { %7604 = vpow2.f32 %v1846_v47  ;;  %v1845_v49 = vsub.f32 %v1837_v37, %v1843_v48 }
 0x47a   : > { %v1848_v50 = vmul.f32 1.442695, %v1845_v49 }
 0x47b   : > { %v1911_v51 = vpop.permute.xlu1 %1910 }
 0x47c   : > { %7606 = vpow2.f32 %v1848_v50  ;;  %v1916_v52 = vsel %vm1644_vm4, %v1911_v51, 0 }
 0x47d   : > { %7331 = vmatpush3.bf16.msra.mxu0 %v1916_v52 }
 0x47e   : > { %7342 = vmatprep.subr.bf16.mxu0 %v7854_v3 }
 0x47f   : > { %v2067_v6 = vpop.permute.xlu1 %2066 }
 0x480   : > { %v2072_v22 = vsel %vm1522_vm3, %v2067_v6, 0 }
 0x483   : > { %v2117_v9 = vpop.permute.xlu1 %2116 }
 0x484   : > { %v2122_v10 = vsel %vm1522_vm3, %v2117_v9, 0 }
 0x485   : > { %v7605_v53 = vpop.eup %7604 }
 0x486   : > { %v1850_v54 = vsel %vm1522_vm3, %v7605_v53, 0.0 }
 0x487   : > { %1851 = vadd.xlane.f32.xlu0 %v1850_v54  ;;  %v2115_v11 = vpop.permute.xlu1 %2114 }
 0x489   : > { %v7607_v55 = vpop.eup %7606 }
 0x48a   : > { %v1853_v56 = vsel %vm1522_vm3, %v7607_v55, 0.0 }
 0x48b   : > { %1854 = vadd.xlane.f32.xlu0 %v1853_v56 }
 0x4a1   : > { %1862 = vrot.lane.b32.xlu0 %v8194_v39, %s7856_s12  ;;  %s9058_s12 = scalar_lea.vmem (!%p6709_p9), %s8979_s14, %s9078_s9 }
 0x4a5   : > { %2064 = vrot.lane.b32.xlu0 %v8176_v28, %s7857_s15 }
 0x510   : > { %v1852_v57 = vpop.xlane.xlu0 %1851 }
 0x511   : > { %7608 = vrcp.f32 %v1852_v57 }
 0x514   : > { %v1855_v58 = vpop.xlane.xlu0 %1854 }
 0x515   : > { %7610 = vrcp.f32 %v1855_v58 }
 0x518   : > { %v1863_v59 = vpop.permute.xlu0 %1862 }
 0x519   : > { %v1868_v60 = vsel %vm1644_vm4, %v1863_v59, 0 }
 0x51a   : > { %7325 = vmatpush3.bf16.msra.mxu1 %v1868_v60 }
 0x51b   : > { %7336 = vmatprep.subr.bf16.mxu1 %v7854_v3 }
 0x51c   : > { %v2065_v27 = vpop.permute.xlu0 %2064 }
 0x51e   : > { %v7609_v61 = vpop.eup %7608 }
 0x51f   : > { %v1858_v62 = vmul.f32 %v7609_v61, %v7605_v53 }
 0x521   : > { %v1860_v63 = vpack.c.bf16 %v1858_v62, %v1858_v62 }
 0x522   : > { %v7611_v0 = vpop.eup %7610 }
 0x523   : > { %7327 = vmatmul.mubr.msk.bf16.vlgmr.msra.gmra.mxu1 %vm1522_vm3, %v1860_v63  ;;  %v1859_v2 = vmul.f32 %v7611_v0, %v7607_v55 }
 0x524   : > { %7338 = vmatprep.mubr.msk.bf16.mxu1 %vm7855_vm1, %v7854_v3  ;;  %7337 = vmatpush3.bf16.msra.mxu1 %v1969_v13 }
 0x525   : > { %v1861_v4 = vpack.c.bf16 %v1859_v2, %v1859_v2  ;;  %7348 = vmatprep.subr.bf16.mxu1 %v7854_v3 }
 0x527   : > { %7333 = vmatmul.mubr.msk.bf16.vlgmr.msra.gmra.mxu0 %vm1522_vm3, %v1861_v4 }
 0x528   : > { %7343 = vmatpush3.bf16.msra.mxu0 %v2021_v5  ;;  %7344 = vmatprep.mubr.msk.bf16.mxu0 %vm7855_vm1, %v7854_v3 }
 0x529   : > { %7354 = vmatprep.subr.bf16.mxu0 %v7854_v3 }
 0x52f   : > { %7345 = vmatmul.mubr.msk.bf16.vlgmr.msra.gmra.mxu0 %vm1522_vm3, %v6974_v23 }
 0x530   : > { %7355 = vmatpush3.bf16.xpose.msra.mxu0 %v2122_v10  ;;  %7356 = vmatprep.mubr.msk.bf16.mxu0 %vm7855_vm1, %v7854_v3 }
 0x531   : > { %7366 = vmatprep.subr.bf16.mxu0 %v7854_v3 }
 0x537   : > { %7357 = vmatmul.mubr.msk.bf16.vlgmr.msra.gmra.mxu0 %vm1522_vm3, %v2115_v11 }
 0x538   : > { %7368 = vmatprep.mubr.msk.bf16.mxu0 %vm7855_vm1, %v7854_v3 }
 0x5e3   : > { %v1904_v14 = vpop.f32.mrf.mxu1 }
 0x5e5   : > { %v7328_v15 = vpop.f32.mrf.mxu1 }
 0x5e6   : > { %v1501_v15 = vld [vmem:[%s9051_s20 + $0x8] sm:$0xf] }
 0x5e7   : > { %v1907_v16 = vpop.f32.mrf.mxu1  ;;  %v1952_v17 = vpop.f32.mrf.mxu0 }
 0x5e8   : > { %v6973_v19 = vpack.c.bf16 %v1952_v17, %v1904_v14  ;;  %v2297_v16 = vsel %vm1644_vm4, %v1501_v15, 0 }
 0x5e9   : > { %v7329_v20 = vpop.f32.mrf.mxu1  ;;  %v7334_v21 = vpop.f32.mrf.mxu0 }
 0x5ea   : > { %7339 = vmatmul.mubr.msk.bf16.vlgmr.msra.gmra.mxu1 %vm1522_vm3, %v6973_v19 }
 0x5eb   : > { %7349 = vmatpush3.bf16.xpose.msra.mxu1 %v2072_v22  ;;  %v1955_v23 = vpop.f32.mrf.mxu0  ;;  %7350 = vmatprep.mubr.msk.bf16.mxu1 %vm7855_vm1, %v7854_v3 }
 0x5ec   : > { %7360 = vmatprep.subr.bf16.mxu1 %v7854_v3 }
 0x5ed   : > { %v7335_v24 = vpop.f32.mrf.mxu0 }
 0x5ef   : > { %v8284_v25 = vpop.f32.mrf.mxu0 }
 0x5f1   : > { %v7346_v29 = vpop.f32.mrf.mxu0 }
 0x5f2   : > { %7351 = vmatmul.mubr.msk.bf16.vlgmr.msra.gmra.mxu1 %vm1522_vm3, %v2065_v27 }
 0x5f3   : > { %v8287_v30 = vpop.f32.mrf.mxu0  ;;  %7362 = vmatprep.mubr.msk.bf16.mxu1 %vm7855_vm1, %v7854_v3 }
 0x5f5   : > { %v7347_v32 = vpop.f32.mrf.mxu0 }
 0x5f7   : > { %v2158_v33 = vpop.f32.mrf.mxu0 }
 0x5f8   : > { %v2165_v34 = vmul.f32 0.35355338, %v2158_v33 }
 0x5f9   : > { %v7358_v35 = vpop.f32.mrf.mxu0 }
 0x5fa   : > { %v2169_v36 = vsel %vm1522_vm3, %v2165_v34, -inf }
 0x5fb   : > { %2170 = vmax.xlane.f32.xlu1 %v2169_v36  ;;  %v2161_v37 = vpop.f32.mrf.mxu0 }
 0x5fd   : > { %v7359_v38 = vpop.f32.mrf.mxu0 }
 0x60c   : > { %2238 = vrot.lane.b32.xlu1 %v8196_v40, %s7857_s15 }
 0x610   : > { %2344 = vrot.lane.b32.xlu1 %v8169_v18, %s7858_s23 }
 0x614   : > { %2394 = vrot.lane.b32.xlu1 %v8173_v26, %s7858_s23 }
 0x618   : > { %2392 = vrot.lane.b32.xlu1 %v8187_v31, %s7858_s23 }
 0x684   : > { %v2171_v41 = vpop.xlane.xlu1 %2170 }
 0x685   : > { %v2173_v44 = vsub.f32 %v2165_v34, %v2171_v41 }
 0x687   : > { %v2176_v45 = vmul.f32 1.442695, %v2173_v44 }
 0x688   : > { %v2239_v42 = vpop.permute.xlu1 %2238 }
 0x689   : > { %v2244_v43 = vsel %vm1644_vm4, %v2239_v42, 0  ;;  %7612 = vpow2.f32 %v2176_v45 }
 0x68a   : > { %7367 = vmatpush3.bf16.msra.mxu0 %v2244_v43 }
 0x68b   : > { %7378 = vmatprep.subr.bf16.mxu0 %v7854_v3 }
 0x68c   : > { %v2345_v63 = vpop.permute.xlu1 %2344 }
 0x68d   : > { %v2350_v1 = vsel %vm1522_vm3, %v2345_v63, 0 }
 0x690   : > { %v2395_v24 = vpop.permute.xlu1 %2394 }
 0x691   : > { %v2400_v33 = vsel %vm1522_vm3, %v2395_v24, 0 }
 0x694   : > { %v2393_v36 = vpop.permute.xlu1 %2392 }
 0x696   : > { %v7613_v51 = vpop.eup %7612 }
 0x697   : > { %v2181_v54 = vsel %vm1522_vm3, %v7613_v51, 0.0 }
 0x6aa   : > { %v8302_v46 = vpop.f32.mrf.mxu1 }
 0x6ab   : > { %v2058_v44 = vadd.f32 %v8284_v25, %v8302_v46 }
 0x6ac   : > { %v7340_v47 = vpop.f32.mrf.mxu1 }
 0x6ae   : > { %v8304_v18 = vpop.f32.mrf.mxu1 }
 0x6b0   : > { %v7341_v48 = vpop.f32.mrf.mxu1 }
 0x6b2   : > { %v2108_v26 = vpop.f32.mrf.mxu1 }
 0x6b3   : > { %v2164_v49 = vmul.f32 0.35355338, %v2108_v26  ;;  %v2061_v26 = vadd.f32 %v8287_v30, %v8304_v18 }
 0x6b4   : > { %v7352_v50 = vpop.f32.mrf.mxu1 }
 0x6b5   : > { %v2166_v31 = vsel %vm1522_vm3, %v2164_v49, -inf }
 0x6b6   : > { %2167 = vmax.xlane.f32.xlu0 %v2166_v31  ;;  %v2111_v52 = vpop.f32.mrf.mxu1 }
 0x6b8   : > { %v7353_v53 = vpop.f32.mrf.mxu1 }
 0x6ba   : > { %2182 = vadd.xlane.f32.xlu0 %v2181_v54 }
 0x73f   : > { %v2168_v55 = vpop.xlane.xlu0 %2167 }
 0x740   : > { %v2172_v56 = vsub.f32 %v2164_v49, %v2168_v55 }
 0x742   : > { %v2174_v57 = vmul.f32 1.442695, %v2172_v56 }
 0x743   : > { %v2183_v58 = vpop.xlane.xlu0 %2182 }
 0x744   : > { %7614 = vpow2.f32 %v2174_v57 }
 0x745   : > { %7616 = vrcp.f32 %v2183_v58 }
 0x751   : > { %v7615_v59 = vpop.eup %7614 }
 0x752   : > { %v7617_v60 = vpop.eup %7616  ;;  %v2178_v61 = vsel %vm1522_vm3, %v7615_v59, 0.0 }
 0x753   : > { %2179 = vadd.xlane.f32.xlu0 %v2178_v61  ;;  %v2187_v62 = vmul.f32 %v7617_v60, %v7613_v51 }
 0x755   : > { %v2189_v0 = vpack.c.bf16 %v2187_v62, %v2187_v62 }
 0x757   : > { %7369 = vmatmul.mubr.msk.bf16.vlgmr.msra.gmra.mxu0 %vm1522_vm3, %v2189_v0 }
 0x758   : > { %7379 = vmatpush3.bf16.xpose.msra.mxu0 %v2350_v1  ;;  %7380 = vmatprep.mubr.msk.bf16.mxu0 %vm7855_vm1, %v7854_v3 }
 0x759   : > { %7390 = vmatprep.subr.bf16.mxu0 %v7854_v3 }
 0x769   : > { %2190 = vrot.lane.b32.xlu0 %v8194_v39, %s7857_s15  ;;  %s7863_s15 = smov (!%p6709_p9), 104  }
 0x76d   : > { %2342 = vrot.lane.b32.xlu0 %v8176_v28, %s7858_s23 }
 0x7dc   : > { %v2180_v2 = vpop.xlane.xlu0 %2179 }
 0x7dd   : > { %7618 = vrcp.f32 %v2180_v2 }
 0x7e0   : > { %v2191_v4 = vpop.permute.xlu0 %2190 }
 0x7e1   : > { %v2196_v5 = vsel %vm1644_vm4, %v2191_v4, 0 }
 0x7e2   : > { %7361 = vmatpush3.bf16.msra.mxu1 %v2196_v5  ;;  %v1502_v5 = vld [vmem:[%s9051_s20 + $0xc] sm:$0xf] }
 0x7e3   : > { %7372 = vmatprep.subr.bf16.mxu1 %v7854_v3 }
 0x7e4   : > { %v2343_v6 = vpop.permute.xlu0 %2342 }
 0x7e5   : > { %7381 = vmatmul.mubr.msk.bf16.vlgmr.msra.gmra.mxu0 %vm1522_vm3, %v2343_v6  ;;  %v2575_v6 = vsel %vm1644_vm4, %v1502_v5, 0 }
 0x7e6   : > { %7392 = vmatprep.mubr.msk.bf16.mxu0 %vm7855_vm1, %v7854_v3 }
 0x7ea   : > { %v7619_v9 = vpop.eup %7618 }
 0x7eb   : > { %v2186_v10 = vmul.f32 %v7619_v9, %v7615_v59 }
 0x7ed   : > { %v2188_v11 = vpack.c.bf16 %v2186_v10, %v2186_v10 }
 0x7ef   : > { %7363 = vmatmul.mubr.msk.bf16.vlgmr.msra.gmra.mxu1 %vm1522_vm3, %v2188_v11 }
 0x7f0   : > { %7374 = vmatprep.mubr.msk.bf16.mxu1 %vm7855_vm1, %v7854_v3  ;;  %7373 = vmatpush3.bf16.msra.mxu1 %v2297_v16  ;;  %v6706_v16 = vld [vmem:[%s9053_s24] ss:$0 sm:$0xff] }
 0x7f1   : > { %7384 = vmatprep.subr.bf16.mxu1 %v7854_v3 }
 0x817   : > { %v2280_v28 = vpop.f32.mrf.mxu0 }
 0x819   : > { %v7370_v12 = vpop.f32.mrf.mxu0 }
 0x81b   : > { %v2283_v13 = vpop.f32.mrf.mxu0 }
 0x81d   : > { %v7371_v14 = vpop.f32.mrf.mxu0 }
 0x8a5   : > { %v2386_v17 = vpop.f32.mrf.mxu0 }
 0x8a6   : > { %v2442_v19 = vmul.f32 0.35355338, %v2386_v17 }
 0x8a7   : > { %v7382_v20 = vpop.f32.mrf.mxu0 }
 0x8a8   : > { %v2444_v21 = vsel %vm1522_vm3, %v2442_v19, -inf }
 0x8a9   : > { %2445 = vmax.xlane.f32.xlu0 %v2444_v21  ;;  %v2389_v22 = vpop.f32.mrf.mxu0 }
 0x8ab   : > { %v7383_v23 = vpop.f32.mrf.mxu0 }
 0x8af   : > { %v2232_v27 = vpop.f32.mrf.mxu1 }
 0x8b0   : > { %v6975_v29 = vpack.c.bf16 %v2280_v28, %v2232_v27 }
 0x8b1   : > { %v7364_v32 = vpop.f32.mrf.mxu1 }
 0x8b2   : > { %7375 = vmatmul.mubr.msk.bf16.vlgmr.msra.gmra.mxu1 %vm1522_vm3, %v6975_v29 }
 0x8b3   : > { %7385 = vmatpush3.bf16.xpose.msra.mxu1 %v2400_v33  ;;  %v2235_v34 = vpop.f32.mrf.mxu1  ;;  %7386 = vmatprep.mubr.msk.bf16.mxu1 %vm7855_vm1, %v7854_v3 }
 0x8b4   : > { %7396 = vmatprep.subr.bf16.mxu1 %v7854_v3 }
 0x8b5   : > { %v7365_v35 = vpop.f32.mrf.mxu1 }
 0x8ba   : > { %7387 = vmatmul.mubr.msk.bf16.vlgmr.msra.gmra.mxu1 %vm1522_vm3, %v2393_v36 }
 0x8bb   : > { %7398 = vmatprep.mubr.msk.bf16.mxu1 %vm7855_vm1, %v7854_v3 }
 0x932   : > { %v2446_v37 = vpop.xlane.xlu0 %2445 }
 0x933   : > { %v2450_v38 = vsub.f32 %v2442_v19, %v2446_v37 }
 0x935   : > { %v2452_v41 = vmul.f32 1.442695, %v2450_v38 }
 0x937   : > { %7620 = vpow2.f32 %v2452_v41 }
 0x944   : > { %v7621_v42 = vpop.eup %7620 }
 0x945   : > { %v2456_v43 = vsel %vm1522_vm3, %v7621_v42, 0.0 }
 0x946   : > { %2457 = vadd.xlane.f32.xlu0 %v2456_v43 }
 0x972   : > { %v2333_v45 = vpop.f32.mrf.mxu1 }
 0x973   : > { %v2340_v47 = vadd.f32 %v2333_v45, %v2058_v44 }
 0x974   : > { %v7376_v48 = vpop.f32.mrf.mxu1 }
 0x976   : > { %v2336_v49 = vpop.f32.mrf.mxu1 }
 0x977   : > { %v2341_v50 = vadd.f32 %v2336_v49, %v2061_v26 }
 0x978   : > { %v7377_v31 = vpop.f32.mrf.mxu1 }
 0x97a   : > { %v2436_v51 = vpop.f32.mrf.mxu1 }
 0x97b   : > { %v2443_v52 = vmul.f32 0.35355338, %v2436_v51  ;;  %v6707_v51 = vld [vmem:[%s9055_s19] ss:$0 sm:$0xff] }
 0x97c   : > { %v7388_v53 = vpop.f32.mrf.mxu1 }
 0x97d   : > { %v2447_v54 = vsel %vm1522_vm3, %v2443_v52, -inf  ;;  %v6708_v53 = vld [vmem:[%s9057_s5] ss:$0 sm:$0xff] }
 0x97e   : > { %2448 = vmax.xlane.f32.xlu1 %v2447_v54  ;;  %v2439_v55 = vpop.f32.mrf.mxu1 }
 0x980   : > { %v7389_v56 = vpop.f32.mrf.mxu1 }
 0x98f   : > { %2516 = vrot.lane.b32.xlu1 %v8196_v40, %s7858_s23 }
 0x9cf   : > { %v2458_v60 = vpop.xlane.xlu0 %2457 }
 0xa07   : > { %v2449_v25 = vpop.xlane.xlu1 %2448 }
 0xa08   : > { %v2451_v46 = vsub.f32 %v2443_v52, %v2449_v25 }
 0xa0a   : > { %v2454_v57 = vmul.f32 1.442695, %v2451_v46 }
 0xa0b   : > { %v2517_v58 = vpop.permute.xlu1 %2516 }
 0xa0c   : > { %7622 = vpow2.f32 %v2454_v57  ;;  %v2522_v30 = vsel %vm1644_vm4, %v2517_v58, 0 }
 0xa0d   : > { %7397 = vmatpush3.bf16.msra.mxu1 %v2522_v30  ;;  %7624 = vrcp.f32 %v2458_v60 }
 0xa19   : > { %v7623_v18 = vpop.eup %7622 }
 0xa1a   : > { %v2459_v59 = vsel %vm1522_vm3, %v7623_v18, 0.0  ;;  %v7625_v61 = vpop.eup %7624 }
 0xa1b   : > { %2460 = vadd.xlane.f32.xlu0 %v2459_v59  ;;  %v2464_v62 = vmul.f32 %v7625_v61, %v7621_v42 }
 0xa1d   : > { %v2466_v1 = vpack.c.bf16 %v2464_v62, %v2464_v62 }
 0xa31   : > { %2468 = vrot.lane.b32.xlu0 %v8194_v39, %s7858_s23 }
 0xaa4   : > { %v2461_v40 = vpop.xlane.xlu0 %2460 }
 0xaa5   : > { %7626 = vrcp.f32 %v2461_v40 }
 0xaa8   : > { %v2469_v63 = vpop.permute.xlu0 %2468 }
 0xaa9   : > { %v2474_v0 = vsel %vm1644_vm4, %v2469_v63, 0 }
 0xaaa   : > { %7391 = vmatpush3.bf16.msra.mxu0 %v2474_v0 }
 0xaab   : > { %7402 = vmatprep.subr.bf16.mxu0 %v7854_v3 }
 0xaad   : > { %7393 = vmatmul.mubr.msk.bf16.vlgmr.msra.gmra.mxu0 %vm1522_vm3, %v2466_v1 }
 0xaae   : > { %7404 = vmatprep.mubr.msk.bf16.mxu0 %vm7855_vm1, %v7854_v3  ;;  %7403 = vmatpush3.bf16.msra.mxu0 %v2575_v6 }
 0xab2   : > { %v7627_v39 = vpop.eup %7626 }
 0xab3   : > { %v2465_v2 = vmul.f32 %v7627_v39, %v7623_v18 }
 0xab5   : > { %v2467_v4 = vpack.c.bf16 %v2465_v2, %v2465_v2 }
 0xab7   : > { %7399 = vmatmul.mubr.msk.bf16.vlgmr.msra.gmra.mxu1 %vm1522_vm3, %v2467_v4 }
 0xb6d   : > { %v2510_v9 = vpop.f32.mrf.mxu0 }
 0xb6f   : > { %v7394_v10 = vpop.f32.mrf.mxu0 }
 0xb71   : > { %v2513_v11 = vpop.f32.mrf.mxu0 }
 0xb73   : > { %v7395_v28 = vpop.f32.mrf.mxu0 }
 0xb77   : > { %v2558_v12 = vpop.f32.mrf.mxu1 }
 0xb78   : > { %v6976_v13 = vpack.c.bf16 %v2558_v12, %v2510_v9 }
 0xb79   : > { %v7400_v14 = vpop.f32.mrf.mxu1 }
 0xb7a   : > { %7405 = vmatmul.mubr.msk.bf16.vlgmr.msra.gmra.mxu0 %vm1522_vm3, %v6976_v13 }
 0xb7b   : > { %v2561_v3 = vpop.f32.mrf.mxu1 }
 0xb7d   : > { %v7401_v15 = vpop.f32.mrf.mxu1 }
 0xc3a   : > { %v2611_v17 = vpop.f32.mrf.mxu0 }
 0xc3b   : > { %v2618_v19 = vadd.f32 %v2611_v17, %v2340_v47 }
 0xc3c   : > { %v7406_v20 = vpop.f32.mrf.mxu0 }
 0xc3d   : > { %v2626_v21 = vadd.f32 %v6706_v16, %v2618_v19 }
 0xc3e   : > { %v2614_v22 = vpop.f32.mrf.mxu0 }
 0xc3f   : > { %v2619_v23 = vadd.f32 %v2614_v22, %v2341_v50  ;;  %v2628_v24 = vadd.f32 %v2626_v21, %v8144_v7 }
 0xc40   : > { %v7407_v27 = vpop.f32.mrf.mxu0 }
 0xc41   : > { %v2627_v29 = vadd.f32 %v6706_v16, %v2619_v23  ;;  %v2632_v32 = vsel %vm1322_vm2, %v2628_v24, 0.0 }
 0xc42   : > { %2633 = vadd.xlane.f32.xlu1 %v2632_v32 }
 0xc43   : > { %v2629_v33 = vadd.f32 %v2627_v29, %v8146_v8 }
 0xc45   : > { %v2635_v34 = vsel %vm1322_vm2, %v2629_v33, 0.0 }
 0xc46   : > { %2636 = vadd.xlane.f32.xlu0 %v2635_v34 }
 0xccb   : > { %v2634_v35 = vpop.xlane.xlu1 %2633 }
 0xccc   : > { %v2639_v36 = vmul.f32 0.03125, %v2634_v35 }
 0xcce   : > { %v2641_v37 = vsub.f32 %v2628_v24, %v2639_v36 }
 0xccf   : > { %v2637_v38 = vpop.xlane.xlu0 %2636 }
 0xcd0   : > { %v2640_v41 = vmul.f32 0.03125, %v2637_v38  ;;  %v2643_v42 = vmul.f32 %v2641_v37, %v2641_v37 }
 0xcd2   : > { %v2642_v43 = vsub.f32 %v2629_v33, %v2640_v41  ;;  %v2645_v7 = vsel %vm1322_vm2, %v2643_v42, 0.0 }
 0xcd3   : > { %2646 = vadd.xlane.f32.xlu0 %v2645_v7 }
 0xcd4   : > { %v2644_v44 = vmul.f32 %v2642_v43, %v2642_v43 }
 0xcd6   : > { %v2648_v45 = vsel %vm1322_vm2, %v2644_v44, 0.0 }
 0xcd7   : > { %2649 = vadd.xlane.f32.xlu1 %v2648_v45 }
 0xd5c   : > { %v2647_v8 = vpop.xlane.xlu0 %2646 }
 0xd5d   : > { %v2651_v47 = vmul.f32 0.03125, %v2647_v8 }
 0xd5f   : > { %v2653_v48 = vadd.f32 1e-05, %v2651_v47 }
 0xd60   : > { %v2650_v26 = vpop.xlane.xlu1 %2649 }
 0xd61   : > { %7628 = vrsqrt.f32 %v2653_v48  ;;  %v2652_v49 = vmul.f32 0.03125, %v2650_v26 }
 0xd63   : > { %v2654_v50 = vadd.f32 1e-05, %v2652_v49 }
 0xd65   : > { %7630 = vrsqrt.f32 %v2654_v50 }
 0xd6e   : > { %v7629_v31 = vpop.eup %7628 }
 0xd6f   : > { %v2657_v52 = vmul.f32 %v7629_v31, %v2641_v37 }
 0xd71   : > { %v2665_v54 = vmul.f32 %v6707_v51, %v2657_v52 }
 0xd72   : > { %v7631_v55 = vpop.eup %7630 }
 0xd73   : > { %v2673_v56 = vadd.f32 %v6708_v53, %v2665_v54  ;;  %v2658_v25 = vmul.f32 %v7631_v55, %v2642_v43 }
 0xd75   : > { %2675 = vst.msk [vmem:[#allocation2] sm:$0xff] %vm1322_vm2, %v2673_v56  ;;  %v2666_v46 = vmul.f32 %v6707_v51, %v2658_v25  ;;  %2680 = sbr.rel (%p6709_p9) target bundleno = 6825 (0x1aa9), region = 136 }
 0xd77   : > { %v2674_v57 = vadd.f32 %v6708_v53, %v2666_v46 }
 0xd79   : > { %2676 = vst.msk [vmem:[#allocation2 + $0x8] sm:$0xff] %vm1322_vm2, %v2674_v57 }
 0xd7a   : > { %v7632_v58 = vld [vmem:[%s8101_s29 + $0x8] sm:$0xff]   ;;  %v7859_v30 = vmov 0.0   ;;  %v7634_v59 = vld [vmem:[%s8101_s29] sm:$0xff]   ;;  %vm7860_vm5 = vmmov 0   ;;  %v2683_v61 = vld [vmem:[#allocation3] sm:$0xff] }
 0xd7b   : > { %7416 = vmatprep.subr.bf16.mxu1 %v7859_v30  ;;  %7408 = vmatprep.subr.bf16.mxu0 %v7859_v30  ;;  %v7633_v18 = vld [vmem:[%s8095_s8 + $0x8] sm:$0xff]   ;;  %v7635_v60 = vld [vmem:[%s8095_s8] sm:$0xff]   ;;  %v2684_v40 = vld [vmem:[#allocation3 + $0x8] sm:$0xff] }
 0xd7c   : > { %7417 = vmatpush3.bf16.msra.mxu1 %v7632_v58  ;;  %7420 = vmatprep.mubr.msk.bf16.mxu1 %vm7860_vm5, %v7859_v30  ;;  %v8395_v62 = vld [vmem:[#allocation2] sm:$0xff]  ;;  %v2685_v63 = vpack.c.bf16 %v2684_v40, %v2683_v61  ;;  %v7636_v39 = vld [vmem:[%s8101_s29 + $0x18] sm:$0xff]   ;;  %v7637_v2 = vld [vmem:[%s8101_s29 + $0x10] sm:$0xff]   ;;  %s7861_s29 = smov 120  }
 0xd7d   : > { %7409 = vmatpush3.bf16.msra.mxu0 %v7633_v18  ;;  %7418 = vmatprep.subr.bf16.mxu1 %v7859_v30  ;;  %v6714_v4 = vld [vmem:[%s8107_s3] ss:$0 sm:$0xff]  ;;  %v6723_v27 = vld [vmem:[%s8107_s3 + $0x1] ss:$0 sm:$0xff]  ;;  %s7862_s3 = smov 112  }
 0xd7e   : > { %7410 = vmatprep.subr.bf16.mxu0 %v7859_v30  ;;  %7412 = vmatprep.mubr.msk.bf16.mxu0 %vm7860_vm5, %v7859_v30  ;;  %v6710_v11 = vld [vmem:[%s9058_s12] ss:$0 sm:$0xff] }
 0xd80   : > { %v8397_v0 = vld [vmem:[#allocation2 + $0x8] sm:$0xff]  ;;  %7419 = vmatpush3.bf16.msra.mxu1 %v7634_v59 }
 0xd81   : > { %v2686_v1 = vpack.c.bf16 %v8397_v0, %v8395_v62  ;;  %7411 = vmatpush3.bf16.msra.mxu0 %v7635_v60  ;;  %7432 = vmatprep.subr.bf16.mxu1 %v7859_v30 }
 0xd82   : > { %7424 = vmatprep.subr.bf16.mxu0 %v7859_v30 }
 0xd83   : > { %7421 = vmatmul.mubr.msk.bf16.vlgmr.msra.gmra.mxu1 %vm1322_vm2, %v2685_v63 }
 0xd84   : > { %7413 = vmatmul.mubr.msk.bf16.vlgmr.msra.gmra.mxu0 %vm1322_vm2, %v2686_v1  ;;  %7434 = vmatprep.mubr.msk.bf16.mxu1 %vm7860_vm5, %v7859_v30 }
 0xd85   : > { %7425 = vmatpush3.bf16.msra.mxu0 %v7636_v39  ;;  %7428 = vmatprep.mubr.msk.bf16.mxu0 %vm7860_vm5, %v7859_v30 }
 0xd86   : > { %7426 = vmatprep.subr.bf16.mxu0 %v7859_v30 }
 0xd89   : > { %7427 = vmatpush3.bf16.msra.mxu0 %v7637_v2 }
 0xd8a   : > { %7438 = vmatprep.subr.bf16.mxu0 %v7859_v30 }
 0xd8c   : > { %7429 = vmatmul.mubr.msk.bf16.vlgmr.msra.gmra.mxu0 %vm1322_vm2, %v2685_v63 }
 0xd8d   : > { %7440 = vmatprep.mubr.msk.bf16.mxu0 %vm7860_vm5, %v7859_v30 }
 0xe43   : > { %v2814_v5 = vpop.f32.mrf.mxu1 }
 0xe44   : > { %v2815_v6 = vadd.f32 %v6714_v4, %v2814_v5  ;;  %v2747_v9 = vpop.f32.mrf.mxu0 }
 0xe45   : > { %v7422_v10 = vpop.f32.mrf.mxu1  ;;  %v2748_v14 = vadd.f32 %v6710_v11, %v2747_v9 }
 0xe46   : > { %v8422_v28 = vpack.c.bf16 %v2815_v6, %v2815_v6  ;;  %v7414_v12 = vpop.f32.mrf.mxu0 }
 0xe47   : > { %v2817_v13 = vpop.f32.mrf.mxu1  ;;  %v8429_v21 = vpack.c.bf16 %v2748_v14, %v2748_v14 }
 0xe48   : > { %v2818_v3 = vadd.f32 %v6714_v4, %v2817_v13  ;;  %v2914_v15 = vsel %vm1522_vm3, %v8422_v28, 0  ;;  %v2750_v16 = vpop.f32.mrf.mxu0 }
 0xe49   : > { %v7423_v17 = vpop.f32.mrf.mxu1  ;;  %7433 = vmatpush3.bf16.xpose.msra.mxu1 %v2914_v15  ;;  %v2751_v23 = vadd.f32 %v6710_v11, %v2750_v16 }
 0xe4a   : > { %v8426_v19 = vpack.c.bf16 %v2818_v3, %v2818_v3  ;;  %v7415_v20 = vpop.f32.mrf.mxu0  ;;  %7444 = vmatprep.subr.bf16.mxu1 %v7859_v30 }
 0xe4b   : > { %v8440_v24 = vpack.c.bf16 %v2751_v23, %v2751_v23 }
 0xe4c   : > { %3174 = vrot.lane.b32.xlu1 %v8426_v19, %s7861_s29  ;;  %v2960_v22 = vsel %vm1522_vm3, %v8426_v19, 0  ;;  %v2880_v29 = vpop.f32.mrf.mxu0 }
 0xe4d   : > { %7439 = vmatpush3.bf16.xpose.msra.mxu0 %v2960_v22  ;;  %v2881_v33 = vadd.f32 %v6723_v27, %v2880_v29 }
 0xe4e   : > { %7450 = vmatprep.subr.bf16.mxu0 %v7859_v30  ;;  %v7430_v32 = vpop.f32.mrf.mxu0 }
 0xe4f   : > { %v8447_v37 = vpack.c.bf16 %v2881_v33, %v2881_v33 }
 0xe50   : > { %7435 = vmatmul.mubr.msk.bf16.vlgmr.msra.gmra.mxu1 %vm1522_vm3, %v8429_v21  ;;  %v2883_v34 = vpop.f32.mrf.mxu0 }
 0xe51   : > { %7446 = vmatprep.mubr.msk.bf16.mxu1 %vm7860_vm5, %v7859_v30  ;;  %v2884_v35 = vadd.f32 %v6723_v27, %v2883_v34  ;;  %v3032_v41 = vsel %vm1644_vm4, %v8447_v37, 0 }
 0xe52   : > { %v7431_v36 = vpop.f32.mrf.mxu0  ;;  %7445 = vmatpush3.bf16.msra.mxu1 %v3032_v41 }
 0xe53   : > { %v8449_v38 = vpack.c.bf16 %v2884_v35, %v2884_v35  ;;  %7456 = vmatprep.subr.bf16.mxu1 %v7859_v30 }
 0xe54   : > { %7441 = vmatmul.mubr.msk.bf16.vlgmr.msra.gmra.mxu0 %vm1522_vm3, %v8440_v24 }
 0xe55   : > { %7452 = vmatprep.mubr.msk.bf16.mxu0 %vm7860_vm5, %v7859_v30  ;;  %v3078_v42 = vsel %vm1644_vm4, %v8449_v38, 0 }
 0xe56   : > { %7451 = vmatpush3.bf16.msra.mxu0 %v3078_v42 }
 0xe57   : > { %7462 = vmatprep.subr.bf16.mxu0 %v7859_v30 }
 0xebe   : > { %v3175_v59 = vpop.permute.xlu1 %3174 }
 0xebf   : > { %v3180_v9 = vsel %vm1522_vm3, %v3175_v59, 0  ;;  %v2887_v59 = vld [vmem:[%s8112_s7] sm:$0xf] }
 0xf10   : > { %v2950_v43 = vpop.f32.mrf.mxu1 }
 0xf11   : > { %v3002_v7 = vmul.f32 0.35355338, %v2950_v43 }
 0xf12   : > { %v7436_v44 = vpop.f32.mrf.mxu1 }
 0xf13   : > { %v3004_v45 = vsel %vm1522_vm3, %v3002_v7, -inf }
 0xf14   : > { %3005 = vmax.xlane.f32.xlu0 %v3004_v45  ;;  %v2953_v8 = vpop.f32.mrf.mxu1  ;;  %v2996_v47 = vpop.f32.mrf.mxu0 }
 0xf15   : > { %v3003_v48 = vmul.f32 0.35355338, %v2996_v47 }
 0xf16   : > { %v7437_v26 = vpop.f32.mrf.mxu1  ;;  %v7442_v49 = vpop.f32.mrf.mxu0 }
 0xf17   : > { %v3007_v50 = vsel %vm1522_vm3, %v3003_v48, -inf }
 0xf18   : > { %3008 = vmax.xlane.f32.xlu0 %v3007_v50  ;;  %v2999_v31 = vpop.f32.mrf.mxu0 }
 0xf1a   : > { %v7443_v51 = vpop.f32.mrf.mxu0 }
 0xf2e   : > { %3124 = vrot.lane.b32.xlu0 %v8422_v28, %s7861_s29 }
 0xf9d   : > { %v3006_v52 = vpop.xlane.xlu0 %3005 }
 0xf9e   : > { %v3010_v53 = vsub.f32 %v3002_v7, %v3006_v52 }
 0xfa0   : > { %v3012_v54 = vmul.f32 1.442695, %v3010_v53 }
 0xfa1   : > { %v3009_v55 = vpop.xlane.xlu0 %3008 }
 0xfa2   : > { %7638 = vpow2.f32 %v3012_v54  ;;  %v3011_v56 = vsub.f32 %v3003_v48, %v3009_v55 }
 0xfa4   : > { %v3014_v25 = vmul.f32 1.442695, %v3011_v56 }
 0xfa5   : > { %v3125_v1 = vpop.permute.xlu0 %3124 }
 0xfa6   : > { %7640 = vpow2.f32 %v3014_v25  ;;  %v3130_v4 = vsel %vm1522_vm3, %v3125_v1, 0 }
 0xfaf   : > { %v7639_v46 = vpop.eup %7638 }
 0xfb0   : > { %v3016_v57 = vsel %vm1522_vm3, %v7639_v46, 0.0 }
 0xfb1   : > { %3017 = vadd.xlane.f32.xlu1 %v3016_v57 }
 0xfb3   : > { %v7641_v58 = vpop.eup %7640 }
 0xfb4   : > { %v3019_v18 = vsel %vm1522_vm3, %v7641_v58, 0.0 }
 0xfb5   : > { %3020 = vadd.xlane.f32.xlu1 %v3019_v18 }
 0xfc6   : > { %3122 = vrot.lane.b32.xlu1 %v8429_v21, %s7861_s29 }
 0xfca   : > { %3172 = vrot.lane.b32.xlu1 %v8440_v24, %s7861_s29 }
0x103a   : > { %v3018_v60 = vpop.xlane.xlu1 %3017 }
0x103b   : > { %7642 = vrcp.f32 %v3018_v60 }
0x103e   : > { %v3021_v61 = vpop.xlane.xlu1 %3020 }
0x103f   : > { %7644 = vrcp.f32 %v3021_v61 }
0x1042   : > { %v3123_v10 = vpop.permute.xlu1 %3122 }
0x1046   : > { %v3173_v11 = vpop.permute.xlu1 %3172 }
0x1048   : > { %v7643_v40 = vpop.eup %7642 }
0x1049   : > { %v3024_v63 = vmul.f32 %v7643_v40, %v7639_v46  ;;  %v3407_v40 = vsel %vm1644_vm4, %v2887_v59, 0 }
0x104b   : > { %v3026_v39 = vpack.c.bf16 %v3024_v63, %v3024_v63 }
0x104c   : > { %v7645_v2 = vpop.eup %7644 }
0x104d   : > { %7447 = vmatmul.mubr.msk.bf16.vlgmr.msra.gmra.mxu1 %vm1522_vm3, %v3026_v39  ;;  %v3025_v5 = vmul.f32 %v7645_v2, %v7641_v58 }
0x104e   : > { %7457 = vmatpush3.bf16.xpose.msra.mxu1 %v3130_v4  ;;  %7458 = vmatprep.mubr.msk.bf16.mxu1 %vm7860_vm5, %v7859_v30  ;;  %v2888_v4 = vld [vmem:[%s8112_s7 + $0x4] sm:$0xf] }
0x104f   : > { %v3027_v6 = vpack.c.bf16 %v3025_v5, %v3025_v5  ;;  %7468 = vmatprep.subr.bf16.mxu1 %v7859_v30  ;;  %v3355_v5 = vsel %vm1644_vm4, %v2888_v4, 0 }
0x1051   : > { %7453 = vmatmul.mubr.msk.bf16.vlgmr.msra.gmra.mxu0 %vm1522_vm3, %v3027_v6 }
0x1052   : > { %7463 = vmatpush3.bf16.xpose.msra.mxu0 %v3180_v9  ;;  %7464 = vmatprep.mubr.msk.bf16.mxu0 %vm7860_vm5, %v7859_v30 }
0x1053   : > { %7474 = vmatprep.subr.bf16.mxu0 %v7859_v30 }
0x1055   : > { %7459 = vmatmul.mubr.msk.bf16.vlgmr.msra.gmra.mxu1 %vm1522_vm3, %v3123_v10 }
0x1056   : > { %7470 = vmatprep.mubr.msk.bf16.mxu1 %vm7860_vm5, %v7859_v30 }
0x1059   : > { %7465 = vmatmul.mubr.msk.bf16.vlgmr.msra.gmra.mxu0 %vm1522_vm3, %v3173_v11 }
0x105a   : > { %7476 = vmatprep.mubr.msk.bf16.mxu0 %vm7860_vm5, %v7859_v30 }
0x110d   : > { %v8483_v12 = vpop.f32.mrf.mxu1 }
0x110f   : > { %v7448_v13 = vpop.f32.mrf.mxu1 }
0x1111   : > { %v3071_v14 = vpop.f32.mrf.mxu1  ;;  %v8485_v3 = vpop.f32.mrf.mxu0 }
0x1112   : > { %v6984_v15 = vpack.c.bf16 %v8485_v3, %v8483_v12 }
0x1113   : > { %v7449_v16 = vpop.f32.mrf.mxu1  ;;  %v7454_v17 = vpop.f32.mrf.mxu0 }
0x1115   : > { %v3117_v20 = vpop.f32.mrf.mxu0  ;;  %v3166_v22 = vpop.f32.mrf.mxu1 }
0x1116   : > { %v3222_v23 = vmul.f32 0.35355338, %v3166_v22 }
0x1117   : > { %v7455_v27 = vpop.f32.mrf.mxu0  ;;  %v7460_v29 = vpop.f32.mrf.mxu1 }
0x1118   : > { %v3224_v32 = vsel %vm1522_vm3, %v3222_v23, -inf }
0x1119   : > { %3225 = vmax.xlane.f32.xlu0 %v3224_v32  ;;  %v3169_v33 = vpop.f32.mrf.mxu1  ;;  %v3216_v34 = vpop.f32.mrf.mxu0 }
0x111a   : > { %v3223_v35 = vmul.f32 0.35355338, %v3216_v34 }
0x111b   : > { %v7461_v36 = vpop.f32.mrf.mxu1  ;;  %v7466_v41 = vpop.f32.mrf.mxu0 }
0x111c   : > { %v3227_v42 = vsel %vm1522_vm3, %v3223_v35, -inf }
0x111d   : > { %3228 = vmax.xlane.f32.xlu1 %v3227_v42  ;;  %v3219_v43 = vpop.f32.mrf.mxu0 }
0x111f   : > { %v7467_v7 = vpop.f32.mrf.mxu0 }
0x112e   : > { %3296 = vrot.lane.b32.xlu1 %v8449_v38, %s7861_s29 }
0x1132   : > { %3452 = vrot.lane.b32.xlu1 %v8422_v28, %s7862_s3 }
0x1136   : > { %3502 = vrot.lane.b32.xlu1 %v8426_v19, %s7862_s3 }
0x113a   : > { %3500 = vrot.lane.b32.xlu1 %v8440_v24, %s7862_s3 }
0x11a2   : > { %v3226_v44 = vpop.xlane.xlu0 %3225 }
0x11a3   : > { %v3230_v45 = vsub.f32 %v3222_v23, %v3226_v44 }
0x11a5   : > { %v3232_v8 = vmul.f32 1.442695, %v3230_v45 }
0x11a6   : > { %v3229_v47 = vpop.xlane.xlu1 %3228 }
0x11a7   : > { %7646 = vpow2.f32 %v3232_v8  ;;  %v3231_v48 = vsub.f32 %v3223_v35, %v3229_v47 }
0x11a9   : > { %v3234_v26 = vmul.f32 1.442695, %v3231_v48 }
0x11aa   : > { %v3297_v49 = vpop.permute.xlu1 %3296 }
0x11ab   : > { %7648 = vpow2.f32 %v3234_v26  ;;  %v3302_v50 = vsel %vm1644_vm4, %v3297_v49, 0 }
0x11ac   : > { %7475 = vmatpush3.bf16.msra.mxu0 %v3302_v50 }
0x11ad   : > { %7486 = vmatprep.subr.bf16.mxu0 %v7859_v30 }
0x11ae   : > { %v3453_v63 = vpop.permute.xlu1 %3452 }
0x11af   : > { %v3458_v3 = vsel %vm1522_vm3, %v3453_v63, 0 }
0x11b2   : > { %v3503_v1 = vpop.permute.xlu1 %3502 }
0x11b3   : > { %v3508_v39 = vsel %vm1522_vm3, %v3503_v1, 0 }
0x11b4   : > { %v7647_v31 = vpop.eup %7646 }
0x11b5   : > { %v3236_v51 = vsel %vm1522_vm3, %v7647_v31, 0.0 }
0x11b6   : > { %3237 = vadd.xlane.f32.xlu0 %v3236_v51  ;;  %v3501_v2 = vpop.permute.xlu1 %3500 }
0x11b8   : > { %v7649_v52 = vpop.eup %7648 }
0x11b9   : > { %v3239_v53 = vsel %vm1522_vm3, %v7649_v52, 0.0 }
0x11ba   : > { %3240 = vadd.xlane.f32.xlu0 %v3239_v53 }
0x11d0   : > { %3248 = vrot.lane.b32.xlu0 %v8447_v37, %s7861_s29 }
0x11d4   : > { %3450 = vrot.lane.b32.xlu0 %v8429_v21, %s7862_s3 }
0x123f   : > { %v3238_v54 = vpop.xlane.xlu0 %3237 }
0x1240   : > { %7650 = vrcp.f32 %v3238_v54 }
0x1243   : > { %v3241_v55 = vpop.xlane.xlu0 %3240 }
0x1244   : > { %7652 = vrcp.f32 %v3241_v55 }
0x1247   : > { %v3249_v56 = vpop.permute.xlu0 %3248 }
0x1248   : > { %v3254_v25 = vsel %vm1644_vm4, %v3249_v56, 0 }
0x1249   : > { %7469 = vmatpush3.bf16.msra.mxu1 %v3254_v25 }
0x124a   : > { %7480 = vmatprep.subr.bf16.mxu1 %v7859_v30 }
0x124b   : > { %v3451_v20 = vpop.permute.xlu0 %3450 }
0x124d   : > { %v7651_v46 = vpop.eup %7650 }
0x124e   : > { %v3244_v57 = vmul.f32 %v7651_v46, %v7647_v31 }
0x1250   : > { %v3246_v58 = vpack.c.bf16 %v3244_v57, %v3244_v57 }
0x1251   : > { %v7653_v18 = vpop.eup %7652 }
0x1252   : > { %7471 = vmatmul.mubr.msk.bf16.vlgmr.msra.gmra.mxu1 %vm1522_vm3, %v3246_v58  ;;  %v3245_v60 = vmul.f32 %v7653_v18, %v7649_v52 }
0x1253   : > { %7482 = vmatprep.mubr.msk.bf16.mxu1 %vm7860_vm5, %v7859_v30  ;;  %7481 = vmatpush3.bf16.msra.mxu1 %v3355_v5 }
0x1254   : > { %v3247_v61 = vpack.c.bf16 %v3245_v60, %v3245_v60  ;;  %7492 = vmatprep.subr.bf16.mxu1 %v7859_v30 }
0x1256   : > { %7477 = vmatmul.mubr.msk.bf16.vlgmr.msra.gmra.mxu0 %vm1522_vm3, %v3247_v61 }
0x1257   : > { %7487 = vmatpush3.bf16.msra.mxu0 %v3407_v40  ;;  %7488 = vmatprep.mubr.msk.bf16.mxu0 %vm7860_vm5, %v7859_v30 }
0x1258   : > { %7498 = vmatprep.subr.bf16.mxu0 %v7859_v30 }
0x125e   : > { %7489 = vmatmul.mubr.msk.bf16.vlgmr.msra.gmra.mxu0 %vm1522_vm3, %v6984_v15 }
0x125f   : > { %7499 = vmatpush3.bf16.xpose.msra.mxu0 %v3508_v39  ;;  %7500 = vmatprep.mubr.msk.bf16.mxu0 %vm7860_vm5, %v7859_v30 }
0x1260   : > { %7510 = vmatprep.subr.bf16.mxu0 %v7859_v30 }
0x1266   : > { %7501 = vmatmul.mubr.msk.bf16.vlgmr.msra.gmra.mxu0 %vm1522_vm3, %v3501_v2 }
0x1267   : > { %7512 = vmatprep.mubr.msk.bf16.mxu0 %vm7860_vm5, %v7859_v30 }
0x1312   : > { %v3290_v6 = vpop.f32.mrf.mxu1 }
0x1314   : > { %v7472_v9 = vpop.f32.mrf.mxu1 }
0x1315   : > { %v2889_v9 = vld [vmem:[%s8112_s7 + $0x8] sm:$0xf] }
0x1316   : > { %v3293_v10 = vpop.f32.mrf.mxu1  ;;  %v3338_v11 = vpop.f32.mrf.mxu0 }
0x1317   : > { %v6983_v12 = vpack.c.bf16 %v3338_v11, %v3290_v6  ;;  %v3683_v10 = vsel %vm1644_vm4, %v2889_v9, 0 }
0x1318   : > { %v7473_v13 = vpop.f32.mrf.mxu1  ;;  %v7478_v14 = vpop.f32.mrf.mxu0 }
0x1319   : > { %7483 = vmatmul.mubr.msk.bf16.vlgmr.msra.gmra.mxu1 %vm1522_vm3, %v6983_v12 }
0x131a   : > { %7493 = vmatpush3.bf16.xpose.msra.mxu1 %v3458_v3  ;;  %v3341_v15 = vpop.f32.mrf.mxu0  ;;  %7494 = vmatprep.mubr.msk.bf16.mxu1 %vm7860_vm5, %v7859_v30 }
0x131b   : > { %7504 = vmatprep.subr.bf16.mxu1 %v7859_v30 }
0x131c   : > { %v7479_v16 = vpop.f32.mrf.mxu0 }
0x131e   : > { %v8537_v17 = vpop.f32.mrf.mxu0 }
0x1320   : > { %v7490_v22 = vpop.f32.mrf.mxu0 }
0x1321   : > { %7495 = vmatmul.mubr.msk.bf16.vlgmr.msra.gmra.mxu1 %vm1522_vm3, %v3451_v20 }
0x1322   : > { %v8540_v23 = vpop.f32.mrf.mxu0  ;;  %7506 = vmatprep.mubr.msk.bf16.mxu1 %vm7860_vm5, %v7859_v30 }
0x1324   : > { %v7491_v27 = vpop.f32.mrf.mxu0 }
0x1326   : > { %v3544_v29 = vpop.f32.mrf.mxu0 }
0x1327   : > { %v3551_v32 = vmul.f32 0.35355338, %v3544_v29 }
0x1328   : > { %v7502_v33 = vpop.f32.mrf.mxu0 }
0x1329   : > { %v3555_v34 = vsel %vm1522_vm3, %v3551_v32, -inf }
0x132a   : > { %3556 = vmax.xlane.f32.xlu1 %v3555_v34  ;;  %v3547_v35 = vpop.f32.mrf.mxu0 }
0x132c   : > { %v7503_v36 = vpop.f32.mrf.mxu0 }
0x133b   : > { %3624 = vrot.lane.b32.xlu1 %v8449_v38, %s7862_s3 }
0x133f   : > { %3730 = vrot.lane.b32.xlu1 %v8422_v28, %s7863_s15 }
0x1343   : > { %3780 = vrot.lane.b32.xlu1 %v8426_v19, %s7863_s15 }
0x1347   : > { %3778 = vrot.lane.b32.xlu1 %v8440_v24, %s7863_s15 }
0x13b3   : > { %v3557_v41 = vpop.xlane.xlu1 %3556 }
0x13b4   : > { %v3559_v7 = vsub.f32 %v3551_v32, %v3557_v41 }
0x13b6   : > { %v3562_v44 = vmul.f32 1.442695, %v3559_v7 }
0x13b7   : > { %v3625_v42 = vpop.permute.xlu1 %3624 }
0x13b8   : > { %v3630_v43 = vsel %vm1644_vm4, %v3625_v42, 0  ;;  %7654 = vpow2.f32 %v3562_v44 }
0x13b9   : > { %7511 = vmatpush3.bf16.msra.mxu0 %v3630_v43 }
0x13ba   : > { %7522 = vmatprep.subr.bf16.mxu0 %v7859_v30 }
0x13bb   : > { %v3731_v58 = vpop.permute.xlu1 %3730 }
0x13bc   : > { %v3736_v59 = vsel %vm1522_vm3, %v3731_v58, 0 }
0x13bf   : > { %v3781_v16 = vpop.permute.xlu1 %3780 }
0x13c0   : > { %v3786_v29 = vsel %vm1522_vm3, %v3781_v16, 0 }
0x13c3   : > { %v3779_v34 = vpop.permute.xlu1 %3778 }
0x13c5   : > { %v7655_v49 = vpop.eup %7654 }
0x13c6   : > { %v3567_v51 = vsel %vm1522_vm3, %v7655_v49, 0.0 }
0x13d9   : > { %v8555_v45 = vpop.f32.mrf.mxu1 }
0x13da   : > { %v3444_v7 = vadd.f32 %v8537_v17, %v8555_v45 }
0x13db   : > { %v7484_v8 = vpop.f32.mrf.mxu1 }
0x13dd   : > { %v8557_v28 = vpop.f32.mrf.mxu1 }
0x13df   : > { %v7485_v47 = vpop.f32.mrf.mxu1 }
0x13e1   : > { %v3494_v19 = vpop.f32.mrf.mxu1 }
0x13e2   : > { %v3550_v48 = vmul.f32 0.35355338, %v3494_v19  ;;  %v3447_v19 = vadd.f32 %v8540_v23, %v8557_v28 }
0x13e3   : > { %v7496_v26 = vpop.f32.mrf.mxu1 }
0x13e4   : > { %v3552_v24 = vsel %vm1522_vm3, %v3550_v48, -inf }
0x13e5   : > { %3553 = vmax.xlane.f32.xlu0 %v3552_v24  ;;  %v3497_v50 = vpop.f32.mrf.mxu1 }
0x13e7   : > { %v7497_v31 = vpop.f32.mrf.mxu1 }
0x13e9   : > { %3568 = vadd.xlane.f32.xlu0 %v3567_v51 }
0x146e   : > { %v3554_v52 = vpop.xlane.xlu0 %3553 }
0x146f   : > { %v3558_v53 = vsub.f32 %v3550_v48, %v3554_v52 }
0x1471   : > { %v3560_v54 = vmul.f32 1.442695, %v3558_v53 }
0x1472   : > { %v3569_v55 = vpop.xlane.xlu0 %3568 }
0x1473   : > { %7656 = vpow2.f32 %v3560_v54 }
0x1474   : > { %7658 = vrcp.f32 %v3569_v55 }
0x1480   : > { %v7657_v56 = vpop.eup %7656 }
0x1481   : > { %v7659_v25 = vpop.eup %7658  ;;  %v3564_v46 = vsel %vm1522_vm3, %v7657_v56, 0.0 }
0x1482   : > { %3565 = vadd.xlane.f32.xlu0 %v3564_v46  ;;  %v3573_v57 = vmul.f32 %v7659_v25, %v7655_v49 }
0x1484   : > { %v3575_v18 = vpack.c.bf16 %v3573_v57, %v3573_v57 }
0x1486   : > { %7513 = vmatmul.mubr.msk.bf16.vlgmr.msra.gmra.mxu0 %vm1522_vm3, %v3575_v18 }
0x1487   : > { %7523 = vmatpush3.bf16.xpose.msra.mxu0 %v3736_v59  ;;  %7524 = vmatprep.mubr.msk.bf16.mxu0 %vm7860_vm5, %v7859_v30 }
0x1488   : > { %7534 = vmatprep.subr.bf16.mxu0 %v7859_v30 }
0x1498   : > { %3576 = vrot.lane.b32.xlu0 %v8447_v37, %s7862_s3 }
0x149c   : > { %3728 = vrot.lane.b32.xlu0 %v8429_v21, %s7863_s15 }
0x150b   : > { %v3566_v60 = vpop.xlane.xlu0 %3565 }
0x150c   : > { %7660 = vrcp.f32 %v3566_v60 }
0x150f   : > { %v3577_v61 = vpop.permute.xlu0 %3576 }
0x1510   : > { %v3582_v40 = vsel %vm1644_vm4, %v3577_v61, 0 }
0x1511   : > { %7505 = vmatpush3.bf16.msra.mxu1 %v3582_v40  ;;  %v2890_v40 = vld [vmem:[%s8112_s7 + $0xc] sm:$0xf] }
0x1512   : > { %7516 = vmatprep.subr.bf16.mxu1 %v7859_v30 }
0x1513   : > { %v3729_v63 = vpop.permute.xlu0 %3728 }
0x1514   : > { %7525 = vmatmul.mubr.msk.bf16.vlgmr.msra.gmra.mxu0 %vm1522_vm3, %v3729_v63  ;;  %v3961_v63 = vsel %vm1644_vm4, %v2890_v40, 0 }
0x1515   : > { %7536 = vmatprep.mubr.msk.bf16.mxu0 %vm7860_vm5, %v7859_v30 }
0x1519   : > { %v7661_v1 = vpop.eup %7660 }
0x151a   : > { %v3572_v39 = vmul.f32 %v7661_v1, %v7657_v56 }
0x151c   : > { %v3574_v2 = vpack.c.bf16 %v3572_v39, %v3572_v39 }
0x151e   : > { %7507 = vmatmul.mubr.msk.bf16.vlgmr.msra.gmra.mxu1 %vm1522_vm3, %v3574_v2 }
0x151f   : > { %7518 = vmatprep.mubr.msk.bf16.mxu1 %vm7860_vm5, %v7859_v30  ;;  %7517 = vmatpush3.bf16.msra.mxu1 %v3683_v10  ;;  %v6757_v10 = vld [vmem:[%s1262_s26] ss:$0 sm:$0xff] }
0x1520   : > { %7528 = vmatprep.subr.bf16.mxu1 %v7859_v30 }
0x1546   : > { %v3666_v21 = vpop.f32.mrf.mxu0 }
0x1548   : > { %v7514_v4 = vpop.f32.mrf.mxu0 }
0x154a   : > { %v3669_v5 = vpop.f32.mrf.mxu0 }
0x154c   : > { %v7515_v6 = vpop.f32.mrf.mxu0 }
0x15d4   : > { %v3772_v11 = vpop.f32.mrf.mxu0 }
0x15d5   : > { %v3828_v12 = vmul.f32 0.35355338, %v3772_v11 }
0x15d6   : > { %v7526_v13 = vpop.f32.mrf.mxu0 }
0x15d7   : > { %v3830_v14 = vsel %vm1522_vm3, %v3828_v12, -inf }
0x15d8   : > { %3831 = vmax.xlane.f32.xlu0 %v3830_v14  ;;  %v3775_v3 = vpop.f32.mrf.mxu0 }
0x15da   : > { %v7527_v15 = vpop.f32.mrf.mxu0 }
0x15de   : > { %v3618_v20 = vpop.f32.mrf.mxu1 }
0x15df   : > { %v6985_v22 = vpack.c.bf16 %v3666_v21, %v3618_v20 }
0x15e0   : > { %v7508_v27 = vpop.f32.mrf.mxu1 }
0x15e1   : > { %7519 = vmatmul.mubr.msk.bf16.vlgmr.msra.gmra.mxu1 %vm1522_vm3, %v6985_v22 }
0x15e2   : > { %7529 = vmatpush3.bf16.xpose.msra.mxu1 %v3786_v29  ;;  %v3621_v32 = vpop.f32.mrf.mxu1  ;;  %7530 = vmatprep.mubr.msk.bf16.mxu1 %vm7860_vm5, %v7859_v30 }
0x15e3   : > { %7540 = vmatprep.subr.bf16.mxu1 %v7859_v30 }
0x15e4   : > { %v7509_v33 = vpop.f32.mrf.mxu1 }
0x15e9   : > { %7531 = vmatmul.mubr.msk.bf16.vlgmr.msra.gmra.mxu1 %vm1522_vm3, %v3779_v34 }
0x15ea   : > { %7542 = vmatprep.mubr.msk.bf16.mxu1 %vm7860_vm5, %v7859_v30 }
0x1661   : > { %v3832_v35 = vpop.xlane.xlu0 %3831 }
0x1662   : > { %v3836_v36 = vsub.f32 %v3828_v12, %v3832_v35 }
0x1664   : > { %v3838_v41 = vmul.f32 1.442695, %v3836_v36 }
0x1666   : > { %7662 = vpow2.f32 %v3838_v41 }
0x1673   : > { %v7663_v42 = vpop.eup %7662 }
0x1674   : > { %v3842_v43 = vsel %vm1522_vm3, %v7663_v42, 0.0 }
0x1675   : > { %3843 = vadd.xlane.f32.xlu0 %v3842_v43 }
0x16a1   : > { %v3719_v44 = vpop.f32.mrf.mxu1 }
0x16a2   : > { %v3726_v8 = vadd.f32 %v3719_v44, %v3444_v7 }
0x16a3   : > { %v7520_v47 = vpop.f32.mrf.mxu1 }
0x16a5   : > { %v3722_v48 = vpop.f32.mrf.mxu1 }
0x16a6   : > { %v3727_v26 = vadd.f32 %v3722_v48, %v3447_v19 }
0x16a7   : > { %v7521_v24 = vpop.f32.mrf.mxu1 }
0x16a9   : > { %v3822_v49 = vpop.f32.mrf.mxu1 }
0x16aa   : > { %v3829_v50 = vmul.f32 0.35355338, %v3822_v49  ;;  %v6758_v49 = vld [vmem:[%s1271_s25] ss:$0 sm:$0xff] }
0x16ab   : > { %v7532_v31 = vpop.f32.mrf.mxu1 }
0x16ac   : > { %v3833_v51 = vsel %vm1522_vm3, %v3829_v50, -inf  ;;  %v6759_v31 = vld [vmem:[%s1280_s22] ss:$0 sm:$0xff] }
0x16ad   : > { %3834 = vmax.xlane.f32.xlu1 %v3833_v51  ;;  %v3825_v52 = vpop.f32.mrf.mxu1 }
0x16af   : > { %v7533_v53 = vpop.f32.mrf.mxu1 }
0x16be   : > { %3902 = vrot.lane.b32.xlu1 %v8449_v38, %s7863_s15 }
0x16fe   : > { %v3844_v25 = vpop.xlane.xlu0 %3843 }
0x1736   : > { %v3835_v17 = vpop.xlane.xlu1 %3834 }
0x1737   : > { %v3837_v45 = vsub.f32 %v3829_v50, %v3835_v17 }
0x1739   : > { %v3840_v54 = vmul.f32 1.442695, %v3837_v45 }
0x173a   : > { %v3903_v55 = vpop.permute.xlu1 %3902 }
0x173b   : > { %7664 = vpow2.f32 %v3840_v54  ;;  %v3908_v23 = vsel %vm1644_vm4, %v3903_v55, 0 }
0x173c   : > { %7541 = vmatpush3.bf16.msra.mxu1 %v3908_v23  ;;  %7666 = vrcp.f32 %v3844_v25 }
0x1748   : > { %v7665_v28 = vpop.eup %7664 }
0x1749   : > { %v3845_v56 = vsel %vm1522_vm3, %v7665_v28, 0.0  ;;  %v7667_v46 = vpop.eup %7666 }
0x174a   : > { %3846 = vadd.xlane.f32.xlu0 %v3845_v56  ;;  %v3850_v57 = vmul.f32 %v7667_v46, %v7663_v42 }
0x174c   : > { %v3852_v59 = vpack.c.bf16 %v3850_v57, %v3850_v57 }
0x1760   : > { %3854 = vrot.lane.b32.xlu0 %v8447_v37, %s7863_s15 }
0x17d3   : > { %v3847_v38 = vpop.xlane.xlu0 %3846 }
0x17d4   : > { %7668 = vrcp.f32 %v3847_v38 }
0x17d7   : > { %v3855_v58 = vpop.permute.xlu0 %3854 }
0x17d8   : > { %v3860_v18 = vsel %vm1644_vm4, %v3855_v58, 0 }
0x17d9   : > { %7535 = vmatpush3.bf16.msra.mxu0 %v3860_v18 }
0x17da   : > { %7546 = vmatprep.subr.bf16.mxu0 %v7859_v30 }
0x17dc   : > { %7537 = vmatmul.mubr.msk.bf16.vlgmr.msra.gmra.mxu0 %vm1522_vm3, %v3852_v59 }
0x17dd   : > { %7548 = vmatprep.mubr.msk.bf16.mxu0 %vm7860_vm5, %v7859_v30  ;;  %7547 = vmatpush3.bf16.msra.mxu0 %v3961_v63 }
0x17e1   : > { %v7669_v37 = vpop.eup %7668 }
0x17e2   : > { %v3851_v60 = vmul.f32 %v7669_v37, %v7665_v28 }
0x17e4   : > { %v3853_v61 = vpack.c.bf16 %v3851_v60, %v3851_v60 }
0x17e6   : > { %7543 = vmatmul.mubr.msk.bf16.vlgmr.msra.gmra.mxu1 %vm1522_vm3, %v3853_v61 }
0x189c   : > { %v3896_v1 = vpop.f32.mrf.mxu0 }
0x189e   : > { %v7538_v39 = vpop.f32.mrf.mxu0 }
0x18a0   : > { %v3899_v2 = vpop.f32.mrf.mxu0 }
0x18a2   : > { %v7539_v21 = vpop.f32.mrf.mxu0 }
0x18a6   : > { %v3944_v4 = vpop.f32.mrf.mxu1 }
0x18a7   : > { %v6986_v5 = vpack.c.bf16 %v3944_v4, %v3896_v1 }
0x18a8   : > { %v7544_v6 = vpop.f32.mrf.mxu1 }
0x18a9   : > { %7549 = vmatmul.mubr.msk.bf16.vlgmr.msra.gmra.mxu0 %vm1522_vm3, %v6986_v5 }
0x18aa   : > { %v3947_v30 = vpop.f32.mrf.mxu1 }
0x18ac   : > { %v7545_v9 = vpop.f32.mrf.mxu1 }
0x1969   : > { %v3997_v11 = vpop.f32.mrf.mxu0 }
0x196a   : > { %v4004_v12 = vadd.f32 %v3997_v11, %v3726_v8 }
0x196b   : > { %v7550_v13 = vpop.f32.mrf.mxu0 }
0x196c   : > { %v4012_v14 = vadd.f32 %v6757_v10, %v4004_v12 }
0x196d   : > { %v4000_v3 = vpop.f32.mrf.mxu0 }
0x196e   : > { %v4005_v15 = vadd.f32 %v4000_v3, %v3727_v26  ;;  %v4014_v16 = vadd.f32 %v4012_v14, %v8395_v62 }
0x196f   : > { %v7551_v20 = vpop.f32.mrf.mxu0 }
0x1970   : > { %v4013_v22 = vadd.f32 %v6757_v10, %v4005_v15  ;;  %v4018_v27 = vsel %vm1322_vm2, %v4014_v16, 0.0 }
0x1971   : > { %4019 = vadd.xlane.f32.xlu1 %v4018_v27 }
0x1972   : > { %v4015_v29 = vadd.f32 %v4013_v22, %v8397_v0 }
0x1974   : > { %v4021_v32 = vsel %vm1322_vm2, %v4015_v29, 0.0 }
0x1975   : > { %4022 = vadd.xlane.f32.xlu0 %v4021_v32 }
0x19fa   : > { %v4020_v33 = vpop.xlane.xlu1 %4019 }
0x19fb   : > { %v4024_v34 = vmul.f32 0.03125, %v4020_v33 }
0x19fd   : > { %v4026_v35 = vsub.f32 %v4014_v16, %v4024_v34 }
0x19fe   : > { %v4023_v36 = vpop.xlane.xlu0 %4022 }
0x19ff   : > { %v4025_v41 = vmul.f32 0.03125, %v4023_v36  ;;  %v4028_v42 = vmul.f32 %v4026_v35, %v4026_v35 }
0x1a01   : > { %v4027_v43 = vsub.f32 %v4015_v29, %v4025_v41  ;;  %v4030_v62 = vsel %vm1322_vm2, %v4028_v42, 0.0 }
0x1a02   : > { %4031 = vadd.xlane.f32.xlu0 %v4030_v62 }
0x1a03   : > { %v4029_v7 = vmul.f32 %v4027_v43, %v4027_v43 }
0x1a05   : > { %v4033_v44 = vsel %vm1322_vm2, %v4029_v7, 0.0 }
0x1a06   : > { %4034 = vadd.xlane.f32.xlu1 %v4033_v44 }
0x1a8b   : > { %v4032_v0 = vpop.xlane.xlu0 %4031 }
0x1a8c   : > { %v4036_v8 = vmul.f32 0.03125, %v4032_v0 }
0x1a8e   : > { %v4038_v47 = vadd.f32 1e-05, %v4036_v8 }
0x1a8f   : > { %v4035_v19 = vpop.xlane.xlu1 %4034 }
0x1a90   : > { %7670 = vrsqrt.f32 %v4038_v47  ;;  %v4037_v48 = vmul.f32 0.03125, %v4035_v19 }
0x1a92   : > { %v4039_v26 = vadd.f32 1e-05, %v4037_v48 }
0x1a94   : > { %7672 = vrsqrt.f32 %v4039_v26 }
0x1a9d   : > { %v7671_v24 = vpop.eup %7670 }
0x1a9e   : > { %v4042_v50 = vmul.f32 %v7671_v24, %v4026_v35 }
0x1aa0   : > { %v4050_v51 = vmul.f32 %v6758_v49, %v4042_v50 }
0x1aa1   : > { %v7673_v52 = vpop.eup %7672 }
0x1aa2   : > { %v4058_v53 = vadd.f32 %v6759_v31, %v4050_v51  ;;  %v4043_v17 = vmul.f32 %v7673_v52, %v4027_v43 }
0x1aa4   : > { %4060 = vst.msk [vmem:[#allocation2] sm:$0xff] %vm1322_vm2, %v4058_v53  ;;  %v4051_v45 = vmul.f32 %v6758_v49, %v4043_v17 }
0x1aa6   : > { %v4059_v54 = vadd.f32 %v6759_v31, %v4051_v45 }
0x1aa8   : > { %4061 = vst.msk [vmem:[#allocation2 + $0x8] sm:$0xff] %vm1322_vm2, %v4059_v54 }
0x1aa9 PF: > { %v4069_v55 = vld [vmem:[%s8057_s16 + $0x80] sm:$0xff]  ;;  %v4070_v28 = vld [vmem:[%s8057_s16 + $0x88] sm:$0xff]  ;;  %v7864_v58 = vmov 0   ;;  %v4304_v1 = vld [vmem:[%s8057_s16 + $0x90] sm:$0xff]  ;;  %s9062_s9 = sld [smem:[#allocation10_spill]]  ;;  %p6931_p10 = scmp.ne.s32.totalorder %s8014_s4, 1 }
0x1aaa   : > { %v4071_v23 = vld [vmem:[%s8057_s16 + $0xc0] sm:$0xff]  ;;  %v4072_v25 = vld [vmem:[%s8057_s16 + $0xc8] sm:$0xff]  ;;  %4170 = vmatprep.mubr.bf16.mxu0 %v7864_v58  ;;  %4213 = vmatprep.mubr.bf16.mxu1 %v7864_v58  ;;  %v4306_v39 = vld [vmem:[%s8057_s16 + $0xd0] sm:$0xff]  ;;  %s9065_s19 = sld [smem:[#allocation22_spill]] }
0x1aab   : > { %v6765_v56 = vcombine.high %v4069_v55, %v4071_v23  ;;  %v6764_v46 = vcombine.low %v4069_v55, %v4071_v23  ;;  %v4065_v38 = vld [vmem:[%s8057_s16] sm:$0xff]  ;;  %v6767_v18 = vcombine.high %v4070_v28, %v4072_v25  ;;  %v6766_v59 = vcombine.low %v4070_v28, %v4072_v25  ;;  %v4066_v60 = vld [vmem:[%s8057_s16 + $0x8] sm:$0xff]  ;;  %v4305_v4 = vld [vmem:[%s8057_s16 + $0x98] sm:$0xff]  ;;  %s9067_s5 = sld [smem:[#allocation23_spill]] }
0x1aac   : > { %v4067_v57 = vld [vmem:[%s8057_s16 + $0x40] sm:$0xff]  ;;  %v4068_v61 = vld [vmem:[%s8057_s16 + $0x48] sm:$0xff]  ;;  %v4307_v5 = vld [vmem:[%s8057_s16 + $0xd8] sm:$0xff]  ;;  %v6775_v30 = vcombine.high %v4304_v1, %v4306_v39  ;;  %v6774_v3 = vcombine.low %v4304_v1, %v4306_v39  ;;  %s9069_s12 = sld [smem:[#allocation31_spill]] (!%p6931_p10) }
0x1aad   : > { %v6761_v37 = vcombine.high %v4065_v38, %v4067_v57  ;;  %4150 = vmatprep.subr.bf16.mxu0 %v6765_v56  ;;  %v6763_v40 = vcombine.high %v4066_v60, %v4068_v61  ;;  %v4062_v63 = vld [vmem:[#allocation2] sm:$0xff]  ;;  %4193 = vmatprep.subr.bf16.mxu1 %v6767_v18  ;;  %v6760_v2 = vcombine.low %v4065_v38, %v4067_v57  ;;  %v4300_v9 = vld [vmem:[%s8057_s16 + $0x10] sm:$0xff]  ;;  %v4301_v12 = vld [vmem:[%s8057_s16 + $0x18] sm:$0xff]  ;;  %v4075_v38 = vlaneseq  ;;  %s9070_s15 = sld [smem:[#allocation32_spill]] (!%p6931_p10) }
0x1aae   : > { %4151 = vmatpush1.bf16.msra.mxu0 %v6764_v46  ;;  %4194 = vmatpush1.bf16.msra.mxu1 %v6766_v59  ;;  %v6762_v6 = vcombine.low %v4066_v60, %v4068_v61  ;;  %v4302_v10 = vld [vmem:[%s8057_s16 + $0x50] sm:$0xff]  ;;  %v6777_v11 = vcombine.high %v4305_v4, %v4307_v5  ;;  %v4303_v14 = vld [vmem:[%s8057_s16 + $0x58] sm:$0xff]  ;;  %v6776_v15 = vcombine.low %v4305_v4, %v4307_v5  ;;  %v7682_v43 = vld [vmem:[%s8072_s17 + $0x168] sm:$0xff]  }
0x1aaf   : > { %v4063_v21 = vld [vmem:[#allocation2 + $0x8] sm:$0xff]  ;;  %4152 = vmatprep.subr.bf16.mxu0 %v6761_v37  ;;  %4195 = vmatprep.subr.bf16.mxu1 %v6763_v40  ;;  %v6771_v16 = vcombine.high %v4300_v9, %v4302_v10  ;;  %v6773_v20 = vcombine.high %v4301_v12, %v4303_v14  ;;  %v6770_v22 = vcombine.low %v4300_v9, %v4302_v10  ;;  %v7674_v27 = vld [vmem:[%s8072_s17 + $0x178] sm:$0xff]   ;;  %v7678_v35 = vld [vmem:[%s8072_s17 + $0x170] sm:$0xff]   ;;  %v4076_v60 = vshrl.u32 %v4075_v38, 7 }
0x1ab0   : > { %v8652_v13 = vpack.c.bf16 %v4063_v21, %v4062_v63  ;;  %v6772_v29 = vcombine.low %v4301_v12, %v4303_v14  ;;  %v7675_v32 = vld [vmem:[%s8072_s17 + $0x1f8] sm:$0xff]   ;;  %v7679_v36 = vld [vmem:[%s8072_s17 + $0x1f0] sm:$0xff]   ;;  %v7683_v62 = vld [vmem:[%s8072_s17 + $0x1e8] sm:$0xff]   ;;  %s9066_s18 = scalar_lea.vmem %s9065_s19, %s8021_s30 }
0x1ab1   : > { %v7676_v33 = vld [vmem:[%s8072_s17 + $0x138] sm:$0xff]   ;;  %v7680_v41 = vld [vmem:[%s8072_s17 + $0x130] sm:$0xff]   ;;  %v7684_v7 = vld [vmem:[%s8072_s17 + $0x128] sm:$0xff]   ;;  %v8707_v1 = vsub.s32 1, %v4076_v60  ;;  %v8710_v21 = vsub.s32 0, %v4076_v60  ;;  %v8712_v4 = vsub.s32 3, %v4076_v60  ;;  %s9068_s8 = scalar_lea.vmem %s9067_s5, %s8021_s30 }
0x1ab2   : > { %4153 = vmatpush1.bf16.msra.mxu0 %v6760_v2  ;;  %4196 = vmatpush1.bf16.msra.mxu1 %v6762_v6  ;;  %v7677_v34 = vld [vmem:[%s8072_s17 + $0x1b8] sm:$0xff]   ;;  %v7681_v42 = vld [vmem:[%s8072_s17 + $0x1b0] sm:$0xff]   ;;  %v7685_v44 = vld [vmem:[%s8072_s17 + $0x1a8] sm:$0xff]   ;;  %v8714_v6 = vsub.s32 2, %v4076_v60 }
0x1ab3   : > { %4382 = vmatprep.subr.bf16.mxu0 %v6775_v30  ;;  %4425 = vmatprep.subr.bf16.mxu1 %v6777_v11  ;;  %v7686_v0 = vld [vmem:[%s8072_s17 + $0x160] sm:$0xff]   ;;  %v7690_v48 = vld [vmem:[%s8072_s17 + $0x158] sm:$0xff]   ;;  %v7694_v50 = vld [vmem:[%s8072_s17 + $0x150] sm:$0xff]  }
0x1ab4   : > { %v7687_v8 = vld [vmem:[%s8072_s17 + $0x1e0] sm:$0xff]   ;;  %v7691_v26 = vld [vmem:[%s8072_s17 + $0x1d8] sm:$0xff]   ;;  %v7695_v31 = vld [vmem:[%s8072_s17 + $0x1d0] sm:$0xff]  }
0x1ab5   : > { %6768 = vmatmul.mubr.msk.bf16.vlgmr.msra.gmra.mxu0 %vm1322_vm2, %v8652_v13  ;;  %6769 = vmatmul.mubr.msk.bf16.vlgmr.msra.gmra.mxu1 %vm1322_vm2, %v8652_v13  ;;  %v7688_v47 = vld [vmem:[%s8072_s17 + $0x120] sm:$0xff]   ;;  %v7692_v24 = vld [vmem:[%s8072_s17 + $0x118] sm:$0xff]   ;;  %v7696_v51 = vld [vmem:[%s8072_s17 + $0x110] sm:$0xff]  }
0x1ab6   : > { %4383 = vmatpush1.bf16.msra.mxu0 %v6774_v3  ;;  %4426 = vmatpush1.bf16.msra.mxu1 %v6776_v15  ;;  %v7689_v19 = vld [vmem:[%s8072_s17 + $0x1a0] sm:$0xff]   ;;  %v7693_v49 = vld [vmem:[%s8072_s17 + $0x198] sm:$0xff]   ;;  %v7697_v52 = vld [vmem:[%s8072_s17 + $0x190] sm:$0xff]  }
0x1ab7   : > { %4384 = vmatprep.subr.bf16.mxu0 %v6771_v16  ;;  %4427 = vmatprep.subr.bf16.mxu1 %v6773_v20  ;;  %v7698_v53 = vld [vmem:[%s8072_s17 + $0x148] sm:$0xff]   ;;  %v7702_v55 = vld [vmem:[%s8072_s17 + $0x140] sm:$0xff]   ;;  %v7706_v25 = vld [vmem:[%s8072_s17 + $0x78] sm:$0xff]  }
0x1ab8   : > { %4402 = vmatprep.mubr.bf16.mxu0 %v7864_v58  ;;  %4445 = vmatprep.mubr.bf16.mxu1 %v7864_v58  ;;  %v7699_v17 = vld [vmem:[%s8072_s17 + $0x1c8] sm:$0xff]   ;;  %v7703_v23 = vld [vmem:[%s8072_s17 + $0x1c0] sm:$0xff]   ;;  %v7707_v46 = vld [vmem:[%s8072_s17 + $0xf8] sm:$0xff]  }
0x1ab9   : > { %v7700_v45 = vld [vmem:[%s8072_s17 + $0x108] sm:$0xff]   ;;  %v7704_v28 = vld [vmem:[%s8072_s17 + $0x100] sm:$0xff]   ;;  %v7711_v38 = vld [vmem:[%s8072_s17 + $0xf0] sm:$0xff]  }
0x1aba   : > { %4385 = vmatpush1.bf16.msra.mxu0 %v6770_v22  ;;  %4428 = vmatpush1.bf16.msra.mxu1 %v6772_v29  ;;  %v7701_v54 = vld [vmem:[%s8072_s17 + $0x188] sm:$0xff]   ;;  %v7705_v56 = vld [vmem:[%s8072_s17 + $0x180] sm:$0xff]   ;;  %v7713_v60 = vld [vmem:[%s8072_s17 + $0xb0] sm:$0xff]  }
0x1abb   : > { %7085 = vmatprep.subr.bf16.mxu0 %v7674_v27  ;;  %7107 = vmatprep.subr.bf16.mxu1 %v7675_v32  ;;  %v4308_v2 = vld [vmem:[%s9062_s9 + $0x4] sm:$0xf]  ;;  %v8720_v14 = vld [vmem:[%s9062_s9] sm:$0xf] }
0x1abc   : > { %v4317_v9 = vrot.slane %v4308_v2, %v8707_v1  ;;  %v4313_v10 = vrot.slane %v4308_v2, %v8710_v21  ;;  %v4325_v12 = vrot.slane %v4308_v2, %v8712_v4  ;;  %v4321_v3 = vrot.slane %v4308_v2, %v8714_v6  ;;  %v7716_v2 = vld [vmem:[%s8072_s17 + $0x28] sm:$0xff]  }
0x1abd   : > { %6778 = vmatmul.mubr.msk.bf16.vlgmr.msra.gmra.mxu0 %vm1322_vm2, %v8652_v13  ;;  %6779 = vmatmul.mubr.msk.bf16.vlgmr.msra.gmra.mxu1 %vm1322_vm2, %v8652_v13  ;;  %v4082_v16 = vrot.slane %v8720_v14, %v8707_v1  ;;  %v4090_v22 = vrot.slane %v8720_v14, %v8712_v4 }
0x1abe   : > { %7086 = vmatpush3.bf16.msra.mxu0 %v7676_v33  ;;  %7108 = vmatpush3.bf16.msra.mxu1 %v7677_v34 }
0x1abf   : > { %7087 = vmatprep.subr.bf16.mxu0 %v7678_v35  ;;  %7109 = vmatprep.subr.bf16.mxu1 %v7679_v36 }
0x1ac2   : > { %7088 = vmatpush3.bf16.msra.mxu0 %v7680_v41  ;;  %7110 = vmatpush3.bf16.msra.mxu1 %v7681_v42 }
0x1ac3   : > { %7089 = vmatprep.subr.bf16.mxu0 %v7682_v43  ;;  %7111 = vmatprep.subr.bf16.mxu1 %v7683_v62 }
0x1ac6   : > { %7090 = vmatpush3.bf16.msra.mxu0 %v7684_v7  ;;  %7112 = vmatpush3.bf16.msra.mxu1 %v7685_v44 }
0x1ac7   : > { %7091 = vmatprep.subr.bf16.mxu0 %v7686_v0  ;;  %7113 = vmatprep.subr.bf16.mxu1 %v7687_v8 }
0x1aca   : > { %7092 = vmatpush3.bf16.msra.mxu0 %v7688_v47  ;;  %7114 = vmatpush3.bf16.msra.mxu1 %v7689_v19 }
0x1acb   : > { %7093 = vmatprep.subr.bf16.mxu0 %v7690_v48  ;;  %7115 = vmatprep.subr.bf16.mxu1 %v7691_v26 }
0x1ace   : > { %7094 = vmatpush3.bf16.msra.mxu0 %v7692_v24  ;;  %7116 = vmatpush3.bf16.msra.mxu1 %v7693_v49 }
0x1acf   : > { %7095 = vmatprep.subr.bf16.mxu0 %v7694_v50  ;;  %7117 = vmatprep.subr.bf16.mxu1 %v7695_v31 }
0x1ad2   : > { %7096 = vmatpush3.bf16.msra.mxu0 %v7696_v51  ;;  %7118 = vmatpush3.bf16.msra.mxu1 %v7697_v52 }
0x1ad3   : > { %7097 = vmatprep.subr.bf16.mxu0 %v7698_v53  ;;  %7119 = vmatprep.subr.bf16.mxu1 %v7699_v17  ;;  %v7708_v17 = vld [vmem:[%s8072_s17 + $0x38] sm:$0xff]  }
0x1ad6   : > { %7098 = vmatpush3.bf16.msra.mxu0 %v7700_v45  ;;  %7120 = vmatpush3.bf16.msra.mxu1 %v7701_v54 }
0x1ad7   : > { %7099 = vmatprep.subr.bf16.mxu0 %v7702_v55  ;;  %7121 = vmatprep.subr.bf16.mxu1 %v7703_v23  ;;  %v7709_v23 = vld [vmem:[%s8072_s17 + $0xb8] sm:$0xff]  }
0x1ada   : > { %7100 = vmatpush3.bf16.msra.mxu0 %v7704_v28  ;;  %7122 = vmatpush3.bf16.msra.mxu1 %v7705_v56 }
0x1adb   : > { %7129 = vmatprep.subr.bf16.mxu0 %v7706_v25  ;;  %7151 = vmatprep.subr.bf16.mxu1 %v7707_v46  ;;  %v7710_v25 = vld [vmem:[%s8072_s17 + $0x70] sm:$0xff]  }
0x1b75   : > { %v8699_v57 = vpop.f32.mrf.mxu0  ;;  %v8701_v18 = vpop.f32.mrf.mxu1 }
0x1b77   : > { %v4174_v59 = vpop.f32.mrf.mxu0  ;;  %v4217_v37 = vpop.f32.mrf.mxu1 }
0x1b78   : > { %v4175_v44 = vadd.f32 %v4174_v59, %v4082_v16  ;;  %v4218_v47 = vadd.f32 %v4217_v37, %v4090_v22  ;;  %v7712_v37 = vld [vmem:[%s8072_s17 + $0x30] sm:$0xff]  }
0x1b79   : > { %v8703_v61 = vpop.f32.mrf.mxu0  ;;  %v8705_v40 = vpop.f32.mrf.mxu1 }
0x1b7a   : > { %v4225_v45 = vmax.f32 %v4175_v44, 0.0  ;;  %v4227_v28 = vmax.f32 %v4218_v47, 0.0  ;;  %v5084_v44 = vld [vmem:[%s8057_s16 + $0xa0] sm:$0xff]  ;;  %v5087_v47 = vld [vmem:[%s8057_s16 + $0xe8] sm:$0xff] }
0x1b7b   : > { %v4178_v63 = vpop.f32.mrf.mxu0  ;;  %v4221_v39 = vpop.f32.mrf.mxu1 }
0x1b7c   : > { %v4179_v33 = vadd.f32 %v4178_v63, %v4082_v16  ;;  %v4222_v42 = vadd.f32 %v4221_v39, %v4090_v22  ;;  %v7714_v63 = vld [vmem:[%s8072_s17 + $0x68] sm:$0xff]   ;;  %v7725_v16 = vld [vmem:[%s8072_s17 + $0x98] sm:$0xff]   ;;  %v7727_v22 = vld [vmem:[%s8072_s17 + $0xd0] sm:$0xff]  }
0x1b7d   : > { %v4404_v5 = vpop.f32.mrf.mxu0  ;;  %v4447_v30 = vpop.f32.mrf.mxu1  ;;  %v7715_v39 = vld [vmem:[%s8072_s17 + $0xe8] sm:$0xff]  }
0x1b7e   : > { %v4405_v34 = vadd.f32 %v4404_v5, %v4313_v10  ;;  %v4448_v43 = vadd.f32 %v4447_v30, %v4321_v3  ;;  %v4229_v24 = vmax.f32 %v4179_v33, 0.0  ;;  %v4231_v51 = vmax.f32 %v4222_v42, 0.0  ;;  %v7717_v5 = vld [vmem:[%s8072_s17 + $0xa8] sm:$0xff]   ;;  %v7718_v30 = vld [vmem:[%s8072_s17 + $0x60] sm:$0xff]  }
0x1b7f   : > { %v4406_v11 = vpop.f32.mrf.mxu0  ;;  %v4449_v15 = vpop.f32.mrf.mxu1  ;;  %v7731_v33 = vld [vmem:[%s8072_s17 + $0xc8] sm:$0xff]  }
0x1b80   : > { %v4407_v27 = vadd.f32 %v4406_v11, %v4317_v9  ;;  %v4450_v35 = vadd.f32 %v4449_v15, %v4325_v12  ;;  %v4456_v49 = vmax.f32 %v4405_v34, 0.0  ;;  %v4458_v52 = vmax.f32 %v4448_v43, 0.0  ;;  %v7721_v11 = vld [vmem:[%s8072_s17 + $0xa0] sm:$0xff]   ;;  %v7724_v15 = vld [vmem:[%s8072_s17 + $0x18] sm:$0xff]   ;;  %v7733_v42 = vld [vmem:[%s8072_s17 + $0x88] sm:$0xff]  }
0x1b81   : > { %v4408_v20 = vpop.f32.mrf.mxu0  ;;  %v4451_v32 = vpop.f32.mrf.mxu1  ;;  %v4233_v46 = vpack.c.bf16 %v4229_v24, %v4225_v45  ;;  %v4235_v59 = vpack.c.bf16 %v4231_v51, %v4227_v28  ;;  %v4078_v34 = vrot.slane %v8720_v14, %v8710_v21  ;;  %v7734_v43 = vld [vmem:[%s8072_s17 + $0x40] sm:$0xff]  }
0x1b82   : > { %v4409_v29 = vadd.f32 %v4408_v20, %v4313_v10  ;;  %v4452_v36 = vadd.f32 %v4451_v32, %v4321_v3  ;;  %v4457_v19 = vmax.f32 %v4407_v27, 0.0  ;;  %v4459_v50 = vmax.f32 %v4450_v35, 0.0  ;;  %v7720_v10 = vld [vmem:[%s8072_s17 + $0x20] sm:$0xff]   ;;  %v7723_v3 = vld [vmem:[%s8072_s17 + $0xd8] sm:$0xff]   ;;  %v7726_v20 = vld [vmem:[%s8072_s17 + $0x50] sm:$0xff]  }
0x1b83   : > { %v4410_v41 = vpop.f32.mrf.mxu0  ;;  %v4453_v7 = vpop.f32.mrf.mxu1  ;;  %v7728_v27 = vld [vmem:[%s8072_s17 + $0x10] sm:$0xff]   ;;  %v7730_v32 = vld [vmem:[%s8072_s17 + $0x48] sm:$0xff]   ;;  %v4086_v35 = vrot.slane %v8720_v14, %v8714_v6  ;;  %v4173_v14 = vadd.f32 %v8699_v57, %v4078_v34 }
0x1b84   : > { %v4411_v62 = vadd.f32 %v4410_v41, %v4317_v9  ;;  %v4460_v0 = vmax.f32 %v4409_v29, 0.0  ;;  %v4454_v8 = vadd.f32 %v4453_v7, %v4325_v12  ;;  %v4462_v48 = vmax.f32 %v4452_v36, 0.0  ;;  %v7719_v9 = vld [vmem:[%s8072_s17 + $0xe0] sm:$0xff]   ;;  %v7722_v12 = vld [vmem:[%s8072_s17 + $0x58] sm:$0xff]   ;;  %v7729_v29 = vld [vmem:[%s8072_s17 + $0x90] sm:$0xff]  }
0x1b85   : > { %v7732_v36 = vld [vmem:[%s8072_s17 + $0x8] sm:$0xff]   ;;  %v4177_v41 = vadd.f32 %v8703_v61, %v4078_v34  ;;  %v7735_v7 = vld [vmem:[%s8072_s17 + $0xc0] sm:$0xff]   ;;  %v4216_v61 = vadd.f32 %v8701_v18, %v4086_v35  ;;  %v4224_v51 = vmax.f32 %v4173_v14, 0.0  ;;  %v8818_v14 = vld [vmem:[%s8057_s16 + $0xb8] sm:$0xff] }
0x1b86   : > { %v4461_v26 = vmax.f32 %v4411_v62, 0.0  ;;  %v4463_v31 = vmax.f32 %v4454_v8, 0.0  ;;  %v4464_v54 = vpack.c.bf16 %v4460_v0, %v4456_v49  ;;  %v4466_v56 = vpack.c.bf16 %v4462_v48, %v4458_v52  ;;  %v5086_v0 = vld [vmem:[%s8057_s16 + $0xe0] sm:$0xff]  ;;  %v5085_v8 = vld [vmem:[%s8057_s16 + $0xa8] sm:$0xff] }
0x1b87   : > { %v4220_v62 = vadd.f32 %v8705_v40, %v4086_v35  ;;  %v4228_v48 = vmax.f32 %v4177_v41, 0.0  ;;  %v7737_v40 = vld [vmem:[%s8072_s17 + $0x80] sm:$0xff]   ;;  %v6851_v49 = vcombine.high %v5085_v8, %v5087_v47  ;;  %v5081_v57 = vld [vmem:[%s8057_s16 + $0x28] sm:$0xff]  ;;  %v6850_v18 = vcombine.low %v5085_v8, %v5087_v47  ;;  %v8823_v47 = vld [vmem:[%s8057_s16 + $0xf8] sm:$0xff] }
0x1b88   : > { %v4465_v53 = vpack.c.bf16 %v4461_v26, %v4457_v19  ;;  %v4467_v55 = vpack.c.bf16 %v4463_v31, %v4459_v50  ;;  %v7736_v19 = vld [vmem:[%s8072_s17] sm:$0xff]   ;;  %v6849_v26 = vcombine.high %v5084_v44, %v5086_v0  ;;  %v5083_v52 = vld [vmem:[%s8057_s16 + $0x68] sm:$0xff] }
0x1b89   : > { %v4230_v24 = vmax.f32 %v4220_v62, 0.0  ;;  %v5080_v50 = vld [vmem:[%s8057_s16 + $0x20] sm:$0xff]  ;;  %v4232_v45 = vpack.c.bf16 %v4228_v48, %v4224_v51  ;;  %v7762_v34 = vld [vmem:[%s8072_s17 + $0x248] sm:$0xff]   ;;  %v6893_v48 = vcombine.high %v8818_v14, %v8823_v47 }
0x1b8a   : > { %4756 = vmatprep.mubr.bf16.mxu0 %v4465_v53  ;;  %4797 = vmatprep.mubr.bf16.mxu1 %v4467_v55  ;;  %v5082_v31 = vld [vmem:[%s8057_s16 + $0x60] sm:$0xff]  ;;  %v4226_v53 = vmax.f32 %v4216_v61, 0.0  ;;  %v7763_v35 = vld [vmem:[%s8072_s17 + $0x2c8] sm:$0xff]  }
0x1b8b   : > { %4757 = vmatmul.mubr.bf16.vlgmr.msra.gmra.mxu0 %v4464_v54  ;;  %4798 = vmatmul.mubr.bf16.vlgmr.msra.gmra.mxu1 %v4466_v56  ;;  %v6845_v54 = vcombine.high %v5080_v50, %v5082_v31  ;;  %v6844_v28 = vcombine.low %v5080_v50, %v5082_v31  ;;  %v6846_v56 = vcombine.low %v5081_v57, %v5083_v52  ;;  %v7765_v41 = vld [vmem:[%s8072_s17 + $0x288] sm:$0xff]   ;;  %v7768_v62 = vld [vmem:[%s8072_s17 + $0x200] sm:$0xff]  }
0x1b8c   : > { %7130 = vmatpush3.bf16.msra.mxu0 %v7708_v17  ;;  %7152 = vmatpush3.bf16.msra.mxu1 %v7709_v23  ;;  %v6848_v17 = vcombine.low %v5084_v44, %v5086_v0  ;;  %v4234_v55 = vpack.c.bf16 %v4230_v24, %v4226_v53  ;;  %v6847_v23 = vcombine.high %v5081_v57, %v5083_v52  ;;  %v8812_v44 = vld [vmem:[%s8057_s16 + $0xb0] sm:$0xff] }
0x1b8d   : > { %5030 = vmatprep.mubr.bf16.mxu0 %v4233_v46  ;;  %5071 = vmatprep.mubr.bf16.mxu1 %v4235_v59  ;;  %v7739_v46 = vld [vmem:[%s8072_s17 + $0x2f8] sm:$0xff]   ;;  %v8815_v0 = vld [vmem:[%s8057_s16 + $0xf0] sm:$0xff] }
0x1b8e   : > { %7131 = vmatprep.subr.bf16.mxu0 %v7710_v25  ;;  %7153 = vmatprep.subr.bf16.mxu1 %v7711_v38  ;;  %v7738_v25 = vld [vmem:[%s8072_s17 + $0x278] sm:$0xff]   ;;  %v6891_v8 = vcombine.high %v8812_v44, %v8815_v0  ;;  %v6890_v61 = vcombine.low %v8812_v44, %v8815_v0 }
0x1b8f   : > { %v7740_v38 = vld [vmem:[%s8072_s17 + $0x238] sm:$0xff]  }
0x1b90   : > { %7132 = vmatpush3.bf16.msra.mxu0 %v7712_v37  ;;  %7154 = vmatpush3.bf16.msra.mxu1 %v7713_v60  ;;  %v7741_v59 = vld [vmem:[%s8072_s17 + $0x2b8] sm:$0xff]   ;;  %v7742_v37 = vld [vmem:[%s8072_s17 + $0x270] sm:$0xff]  }
0x1b91   : > { %7133 = vmatprep.subr.bf16.mxu0 %v7714_v63  ;;  %7155 = vmatprep.subr.bf16.mxu1 %v7715_v39  ;;  %v7743_v60 = vld [vmem:[%s8072_s17 + $0x2f0] sm:$0xff]   ;;  %v7772_v44 = vld [vmem:[%s8072_s17 + $0x338] sm:$0xff]  }
0x1b92   : > { %v7744_v63 = vld [vmem:[%s8072_s17 + $0x230] sm:$0xff]   ;;  %v7773_v0 = vld [vmem:[%s8072_s17 + $0x3b8] sm:$0xff]  }
0x1b93   : > { %v7745_v39 = vld [vmem:[%s8072_s17 + $0x2b0] sm:$0xff]  }
0x1b94   : > { %7134 = vmatpush3.bf16.msra.mxu0 %v7716_v2  ;;  %7156 = vmatpush3.bf16.msra.mxu1 %v7717_v5  ;;  %v7746_v2 = vld [vmem:[%s8072_s17 + $0x268] sm:$0xff]  }
0x1b95   : > { %7135 = vmatprep.subr.bf16.mxu0 %v7718_v30  ;;  %7157 = vmatprep.subr.bf16.mxu1 %v7719_v9  ;;  %v7747_v5 = vld [vmem:[%s8072_s17 + $0x2e8] sm:$0xff]  }
0x1b96   : > { %v7748_v30 = vld [vmem:[%s8072_s17 + $0x228] sm:$0xff]  }
0x1b97   : > { %v7749_v9 = vld [vmem:[%s8072_s17 + $0x2a8] sm:$0xff]  }
0x1b98   : > { %7136 = vmatpush3.bf16.msra.mxu0 %v7720_v10  ;;  %7158 = vmatpush3.bf16.msra.mxu1 %v7721_v11  ;;  %v7750_v10 = vld [vmem:[%s8072_s17 + $0x260] sm:$0xff]  }
0x1b99   : > { %7137 = vmatprep.subr.bf16.mxu0 %v7722_v12  ;;  %7159 = vmatprep.subr.bf16.mxu1 %v7723_v3  ;;  %v7751_v11 = vld [vmem:[%s8072_s17 + $0x2e0] sm:$0xff]  }
0x1b9a   : > { %v7752_v12 = vld [vmem:[%s8072_s17 + $0x220] sm:$0xff]  }
0x1b9b   : > { %v7753_v3 = vld [vmem:[%s8072_s17 + $0x2a0] sm:$0xff]  }
0x1b9c   : > { %7138 = vmatpush3.bf16.msra.mxu0 %v7724_v15  ;;  %7160 = vmatpush3.bf16.msra.mxu1 %v7725_v16  ;;  %v7754_v15 = vld [vmem:[%s8072_s17 + $0x258] sm:$0xff]  }
0x1b9d   : > { %7139 = vmatprep.subr.bf16.mxu0 %v7726_v20  ;;  %7161 = vmatprep.subr.bf16.mxu1 %v7727_v22  ;;  %v7755_v16 = vld [vmem:[%s8072_s17 + $0x2d8] sm:$0xff]  }
0x1b9e   : > { %v7756_v20 = vld [vmem:[%s8072_s17 + $0x218] sm:$0xff]  }
0x1b9f   : > { %v7757_v22 = vld [vmem:[%s8072_s17 + $0x298] sm:$0xff]  }
0x1ba0   : > { %7140 = vmatpush3.bf16.msra.mxu0 %v7728_v27  ;;  %7162 = vmatpush3.bf16.msra.mxu1 %v7729_v29  ;;  %v7758_v27 = vld [vmem:[%s8072_s17 + $0x250] sm:$0xff]  }
0x1ba1   : > { %7141 = vmatprep.subr.bf16.mxu0 %v7730_v32  ;;  %7163 = vmatprep.subr.bf16.mxu1 %v7731_v33  ;;  %v7759_v29 = vld [vmem:[%s8072_s17 + $0x2d0] sm:$0xff]  }
0x1ba2   : > { %v7760_v32 = vld [vmem:[%s8072_s17 + $0x210] sm:$0xff]  }
0x1ba3   : > { %v7761_v33 = vld [vmem:[%s8072_s17 + $0x290] sm:$0xff]  }
0x1ba4   : > { %7142 = vmatpush3.bf16.msra.mxu0 %v7732_v36  ;;  %7164 = vmatpush3.bf16.msra.mxu1 %v7733_v42  ;;  %v7764_v36 = vld [vmem:[%s8072_s17 + $0x208] sm:$0xff]   ;;  %v7766_v42 = vld [vmem:[%s8072_s17 + $0x240] sm:$0xff]  }
0x1ba5   : > { %7143 = vmatprep.subr.bf16.mxu0 %v7734_v43  ;;  %7165 = vmatprep.subr.bf16.mxu1 %v7735_v7  ;;  %v7767_v43 = vld [vmem:[%s8072_s17 + $0x2c0] sm:$0xff]  }
0x1ba6   : > { %v7769_v7 = vld [vmem:[%s8072_s17 + $0x280] sm:$0xff]  }
0x1ba8   : > { %7144 = vmatpush3.bf16.msra.mxu0 %v7736_v19  ;;  %7166 = vmatpush3.bf16.msra.mxu1 %v7737_v40  ;;  %v6892_v19 = vcombine.low %v8818_v14, %v8823_v47  ;;  %v7774_v14 = vld [vmem:[%s8072_s17 + $0x370] sm:$0xff]  }
0x1ba9   : > { %5162 = vmatprep.subr.bf16.mxu0 %v6849_v26  ;;  %5205 = vmatprep.subr.bf16.mxu1 %v6851_v49  ;;  %v7775_v47 = vld [vmem:[%s8072_s17 + $0x3f0] sm:$0xff]  }
0x1bab   : > { %5031 = vmatmul.mubr.bf16.vlgmr.msra.gmra.mxu0 %v4232_v45  ;;  %5072 = vmatmul.mubr.bf16.vlgmr.msra.gmra.mxu1 %v4234_v55 }
0x1bac   : > { %5163 = vmatpush1.bf16.msra.mxu0 %v6848_v17  ;;  %5206 = vmatpush1.bf16.msra.mxu1 %v6850_v18 }
0x1bad   : > { %5164 = vmatprep.subr.bf16.mxu0 %v6845_v54  ;;  %5207 = vmatprep.subr.bf16.mxu1 %v6847_v23 }
0x1bae   : > { %5182 = vmatprep.mubr.bf16.mxu0 %v7864_v58  ;;  %5225 = vmatprep.mubr.bf16.mxu1 %v7864_v58 }
0x1bb0   : > { %5165 = vmatpush1.bf16.msra.mxu0 %v6844_v28  ;;  %5208 = vmatpush1.bf16.msra.mxu1 %v6846_v56 }
0x1bb1   : > { %7173 = vmatprep.subr.bf16.mxu0 %v7738_v25  ;;  %7195 = vmatprep.subr.bf16.mxu1 %v7739_v46 }
0x1bb3   : > { %6852 = vmatmul.mubr.msk.bf16.vlgmr.msra.gmra.mxu0 %vm1322_vm2, %v8652_v13  ;;  %6853 = vmatmul.mubr.msk.bf16.vlgmr.msra.gmra.mxu1 %vm1322_vm2, %v8652_v13 }
0x1bb4   : > { %7174 = vmatpush3.bf16.msra.mxu0 %v7740_v38  ;;  %7196 = vmatpush3.bf16.msra.mxu1 %v7741_v59 }
0x1bb5   : > { %7175 = vmatprep.subr.bf16.mxu0 %v7742_v37  ;;  %7197 = vmatprep.subr.bf16.mxu1 %v7743_v60 }
0x1bb8   : > { %7176 = vmatpush3.bf16.msra.mxu0 %v7744_v63  ;;  %7198 = vmatpush3.bf16.msra.mxu1 %v7745_v39 }
0x1bb9   : > { %7177 = vmatprep.subr.bf16.mxu0 %v7746_v2  ;;  %7199 = vmatprep.subr.bf16.mxu1 %v7747_v5  ;;  %v5088_v5 = vld [vmem:[%s9062_s9 + $0x8] sm:$0xf] }
0x1bbc   : > { %7178 = vmatpush3.bf16.msra.mxu0 %v7748_v30  ;;  %7200 = vmatpush3.bf16.msra.mxu1 %v7749_v9 }
0x1bbd   : > { %7179 = vmatprep.subr.bf16.mxu0 %v7750_v10  ;;  %7201 = vmatprep.subr.bf16.mxu1 %v7751_v11 }
0x1bc0   : > { %7180 = vmatpush3.bf16.msra.mxu0 %v7752_v12  ;;  %7202 = vmatpush3.bf16.msra.mxu1 %v7753_v3  ;;  %v5097_v12 = vrot.slane %v5088_v5, %v8707_v1  ;;  %v5093_v3 = vrot.slane %v5088_v5, %v8710_v21 }
0x1bc1   : > { %7181 = vmatprep.subr.bf16.mxu0 %v7754_v15  ;;  %7203 = vmatprep.subr.bf16.mxu1 %v7755_v16  ;;  %v5105_v16 = vrot.slane %v5088_v5, %v8712_v4 }
0x1bc4   : > { %7182 = vmatpush3.bf16.msra.mxu0 %v7756_v20  ;;  %7204 = vmatpush3.bf16.msra.mxu1 %v7757_v22  ;;  %v5101_v22 = vrot.slane %v5088_v5, %v8714_v6  ;;  %v7785_v5 = vld [vmem:[%s8072_s17 + $0x3a0] sm:$0xff]  }
0x1bc5   : > { %7183 = vmatprep.subr.bf16.mxu0 %v7758_v27  ;;  %7205 = vmatprep.subr.bf16.mxu1 %v7759_v29 }
0x1bc8   : > { %7184 = vmatpush3.bf16.msra.mxu0 %v7760_v32  ;;  %7206 = vmatpush3.bf16.msra.mxu1 %v7761_v33 }
0x1bc9   : > { %7185 = vmatprep.subr.bf16.mxu0 %v7762_v34  ;;  %7207 = vmatprep.subr.bf16.mxu1 %v7763_v35 }
0x1bcc   : > { %7186 = vmatpush3.bf16.msra.mxu0 %v7764_v36  ;;  %7208 = vmatpush3.bf16.msra.mxu1 %v7765_v41 }
0x1bcd   : > { %7187 = vmatprep.subr.bf16.mxu0 %v7766_v42  ;;  %7209 = vmatprep.subr.bf16.mxu1 %v7767_v43 }
0x1bd0   : > { %7188 = vmatpush3.bf16.msra.mxu0 %v7768_v62  ;;  %7210 = vmatpush3.bf16.msra.mxu1 %v7769_v7 }
0x1bd1   : > { %5670 = vmatprep.subr.bf16.mxu0 %v6891_v8  ;;  %5713 = vmatprep.subr.bf16.mxu1 %v6893_v48 }
0x1c4b   : > { %v7101_v40 = vpop.f32.mrf.mxu0  ;;  %v7123_v26 = vpop.f32.mrf.mxu1 }
0x1c4d   : > { %v7102_v24 = vpop.f32.mrf.mxu0  ;;  %v7124_v50 = vpop.f32.mrf.mxu1 }
0x1c4e   : > { %v7103_v49 = vadd.f32 %v7102_v24, %v7101_v40  ;;  %v7125_v31 = vadd.f32 %v7124_v50, %v7123_v26  ;;  %v5590_v50 = vld [vmem:[%s8057_s16 + $0x70] sm:$0xff] }
0x1c4f   : > { %v7104_v51 = vpop.f32.mrf.mxu0  ;;  %v7126_v57 = vpop.f32.mrf.mxu1 }
0x1c50   : > { %v4800_v52 = vadd.f32 %v7125_v31, %v7103_v49  ;;  %v5588_v49 = vld [vmem:[%s8057_s16 + $0x30] sm:$0xff] }
0x1c51   : > { %v7105_v53 = vpop.f32.mrf.mxu0  ;;  %v7127_v45 = vpop.f32.mrf.mxu1 }
0x1c52   : > { %v7106_v17 = vadd.f32 %v7105_v53, %v7104_v51  ;;  %v7128_v18 = vadd.f32 %v7127_v45, %v7126_v57  ;;  %v5591_v53 = vld [vmem:[%s8057_s16 + $0x78] sm:$0xff] }
0x1c54   : > { %v4803_v54 = vadd.f32 %v7128_v18, %v7106_v17 }
0x1c6b   : > { %v7145_v55 = vpop.f32.mrf.mxu0  ;;  %v7167_v23 = vpop.f32.mrf.mxu1 }
0x1c6d   : > { %v7146_v28 = vpop.f32.mrf.mxu0  ;;  %v7168_v25 = vpop.f32.mrf.mxu1 }
0x1c6e   : > { %v7147_v56 = vadd.f32 %v7146_v28, %v7145_v55  ;;  %v7169_v46 = vadd.f32 %v7168_v25, %v7167_v23  ;;  %v6887_v55 = vcombine.high %v5588_v49, %v5590_v50 }
0x1c6f   : > { %v7148_v38 = vpop.f32.mrf.mxu0  ;;  %v7170_v37 = vpop.f32.mrf.mxu1 }
0x1c70   : > { %v5033_v59 = vadd.f32 %v7147_v56, %v4800_v52  ;;  %v5589_v52 = vld [vmem:[%s8057_s16 + $0x38] sm:$0xff]  ;;  %v6886_v56 = vcombine.low %v5588_v49, %v5590_v50 }
0x1c71   : > { %v7149_v60 = vpop.f32.mrf.mxu0  ;;  %v7171_v2 = vpop.f32.mrf.mxu1  ;;  %v6889_v28 = vcombine.high %v5589_v52, %v5591_v53  ;;  %v6888_v25 = vcombine.low %v5589_v52, %v5591_v53 }
0x1c72   : > { %v8831_v63 = vadd.f32 %v7169_v46, %v5033_v59  ;;  %v7150_v39 = vadd.f32 %v7149_v60, %v7148_v38  ;;  %v7172_v30 = vadd.f32 %v7171_v2, %v7170_v37  ;;  %v7770_v46 = vld [vmem:[%s8072_s17 + $0x378] sm:$0xff]   ;;  %v7779_v59 = vld [vmem:[%s8072_s17 + $0x3e8] sm:$0xff]   ;;  %v7782_v60 = vld [vmem:[%s8072_s17 + $0x360] sm:$0xff]  }
0x1c73   : > { %v5184_v9 = vpop.f32.mrf.mxu0  ;;  %v5227_v11 = vpop.f32.mrf.mxu1  ;;  %v7771_v38 = vld [vmem:[%s8072_s17 + $0x3f8] sm:$0xff]   ;;  %v7780_v37 = vld [vmem:[%s8072_s17 + $0x328] sm:$0xff]   ;;  %v7784_v2 = vld [vmem:[%s8072_s17 + $0x320] sm:$0xff]  }
0x1c74   : > { %v5036_v10 = vadd.f32 %v7150_v39, %v4803_v54  ;;  %v5185_v35 = vadd.f32 %v5184_v9, %v5093_v3  ;;  %v5228_v43 = vadd.f32 %v5227_v11, %v5101_v22  ;;  %v7783_v39 = vld [vmem:[%s8072_s17 + $0x3e0] sm:$0xff]   ;;  %v7787_v9 = vld [vmem:[%s8072_s17 + $0x3d8] sm:$0xff]  }
0x1c75   : > { %v5186_v15 = vpop.f32.mrf.mxu0  ;;  %v5229_v27 = vpop.f32.mrf.mxu1  ;;  %v7789_v11 = vld [vmem:[%s8072_s17 + $0x398] sm:$0xff]  }
0x1c76   : > { %v8837_v20 = vadd.f32 %v7172_v30, %v5036_v10  ;;  %v5187_v32 = vadd.f32 %v5186_v15, %v5097_v12  ;;  %v5230_v36 = vadd.f32 %v5229_v27, %v5105_v16  ;;  %v5236_v31 = vmax.f32 %v5185_v35, 0.0  ;;  %v7786_v30 = vld [vmem:[%s8072_s17 + $0x358] sm:$0xff]   ;;  %v7792_v15 = vld [vmem:[%s8072_s17 + $0x310] sm:$0xff]   ;;  %v7795_v27 = vld [vmem:[%s8072_s17 + $0x3c8] sm:$0xff]  }
0x1c77   : > { %v5188_v29 = vpop.f32.mrf.mxu0  ;;  %v5231_v34 = vpop.f32.mrf.mxu1  ;;  %v5238_v17 = vmax.f32 %v5228_v43, 0.0  ;;  %v7788_v10 = vld [vmem:[%s8072_s17 + $0x318] sm:$0xff]   ;;  %v7800_v35 = vld [vmem:[%s8072_s17 + $0x300] sm:$0xff]  }
0x1c78   : > { %v5189_v33 = vadd.f32 %v5188_v29, %v5093_v3  ;;  %v5232_v41 = vadd.f32 %v5231_v34, %v5101_v22  ;;  %v5237_v40 = vmax.f32 %v5187_v32, 0.0  ;;  %v5239_v51 = vmax.f32 %v5230_v36, 0.0  ;;  %v7791_v3 = vld [vmem:[%s8072_s17 + $0x3d0] sm:$0xff]   ;;  %v7794_v22 = vld [vmem:[%s8072_s17 + $0x348] sm:$0xff]   ;;  %v7799_v34 = vld [vmem:[%s8072_s17 + $0x3c0] sm:$0xff]  }
0x1c79   : > { %v5190_v42 = vpop.f32.mrf.mxu0  ;;  %v5233_v7 = vpop.f32.mrf.mxu1  ;;  %v7796_v29 = vld [vmem:[%s8072_s17 + $0x308] sm:$0xff]   ;;  %v7801_v36 = vld [vmem:[%s8072_s17 + $0x380] sm:$0xff]  }
0x1c7a   : > { %v5191_v62 = vadd.f32 %v5190_v42, %v5097_v12  ;;  %v5240_v8 = vmax.f32 %v5189_v33, 0.0  ;;  %v5234_v48 = vadd.f32 %v5233_v7, %v5105_v16  ;;  %v5242_v26 = vmax.f32 %v5232_v41, 0.0  ;;  %v7790_v12 = vld [vmem:[%s8072_s17 + $0x350] sm:$0xff]   ;;  %v7797_v32 = vld [vmem:[%s8072_s17 + $0x388] sm:$0xff]   ;;  %v7798_v33 = vld [vmem:[%s8072_s17 + $0x340] sm:$0xff]  }
0x1c7b   : > { %v7793_v16 = vld [vmem:[%s8072_s17 + $0x390] sm:$0xff]  }
0x1c7c   : > { %v5241_v24 = vmax.f32 %v5191_v62, 0.0  ;;  %v5243_v57 = vmax.f32 %v5234_v48, 0.0  ;;  %v5244_v18 = vpack.c.bf16 %v5240_v8, %v5236_v31  ;;  %v5246_v23 = vpack.c.bf16 %v5242_v26, %v5238_v17  ;;  %v5596_v31 = vld [vmem:[%s9062_s9 + $0xc] sm:$0xf] }
0x1c7d   : > { %v5605_v17 = vrot.slane %v5596_v31, %v8707_v1 }
0x1c7e   : > { %v5245_v45 = vpack.c.bf16 %v5241_v24, %v5237_v40  ;;  %v5247_v54 = vpack.c.bf16 %v5243_v57, %v5239_v51 }
0x1c80   : > { %5536 = vmatprep.mubr.bf16.mxu0 %v5245_v45  ;;  %5577 = vmatprep.mubr.bf16.mxu1 %v5247_v54 }
0x1c81   : > { %5537 = vmatmul.mubr.bf16.vlgmr.msra.gmra.mxu0 %v5244_v18  ;;  %5578 = vmatmul.mubr.bf16.vlgmr.msra.gmra.mxu1 %v5246_v23  ;;  %v5601_v18 = vrot.slane %v5596_v31, %v8710_v21  ;;  %v5609_v23 = vrot.slane %v5596_v31, %v8714_v6 }
0x1c82   : > { %5671 = vmatpush1.bf16.msra.mxu0 %v6890_v61  ;;  %5714 = vmatpush1.bf16.msra.mxu1 %v6892_v19  ;;  %v7777_v61 = vld [vmem:[%s8072_s17 + $0x3b0] sm:$0xff]   ;;  %v7778_v19 = vld [vmem:[%s8072_s17 + $0x368] sm:$0xff]  }
0x1c83   : > { %5672 = vmatprep.subr.bf16.mxu0 %v6887_v55  ;;  %5715 = vmatprep.subr.bf16.mxu1 %v6889_v28  ;;  %v5613_v55 = vrot.slane %v5596_v31, %v8712_v4 }
0x1c84   : > { %5690 = vmatprep.mubr.bf16.mxu0 %v7864_v58  ;;  %5733 = vmatprep.mubr.bf16.mxu1 %v7864_v58  ;;  %v7776_v58 = vld [vmem:[%s8072_s17 + $0x330] sm:$0xff]  }
0x1c86   : > { %5673 = vmatpush1.bf16.msra.mxu0 %v6886_v56  ;;  %5716 = vmatpush1.bf16.msra.mxu1 %v6888_v25 }
0x1c87   : > { %7217 = vmatprep.subr.bf16.mxu0 %v7770_v46  ;;  %7239 = vmatprep.subr.bf16.mxu1 %v7771_v38 }
0x1c89   : > { %6894 = vmatmul.mubr.msk.bf16.vlgmr.msra.gmra.mxu0 %vm1322_vm2, %v8652_v13  ;;  %6895 = vmatmul.mubr.msk.bf16.vlgmr.msra.gmra.mxu1 %vm1322_vm2, %v8652_v13  ;;  %v7781_v13 = vld [vmem:[%s8072_s17 + $0x3a8] sm:$0xff]   ;;  %s9063_s17 = sld [smem:[#allocation21_spill]] }
0x1c8a   : > { %7218 = vmatpush3.bf16.msra.mxu0 %v7772_v44  ;;  %7240 = vmatpush3.bf16.msra.mxu1 %v7773_v0 }
0x1c8b   : > { %7219 = vmatprep.subr.bf16.mxu0 %v7774_v14  ;;  %7241 = vmatprep.subr.bf16.mxu1 %v7775_v47 }
0x1c8e   : > { %7220 = vmatpush3.bf16.msra.mxu0 %v7776_v58  ;;  %7242 = vmatpush3.bf16.msra.mxu1 %v7777_v61 }
0x1c8f   : > { %7221 = vmatprep.subr.bf16.mxu0 %v7778_v19  ;;  %7243 = vmatprep.subr.bf16.mxu1 %v7779_v59  ;;  %s9064_s25 = scalar_lea.vmem %s9063_s17, %s8021_s30 }
0x1c92   : > { %7222 = vmatpush3.bf16.msra.mxu0 %v7780_v37  ;;  %7244 = vmatpush3.bf16.msra.mxu1 %v7781_v13 }
0x1c93   : > { %7223 = vmatprep.subr.bf16.mxu0 %v7782_v60  ;;  %7245 = vmatprep.subr.bf16.mxu1 %v7783_v39 }
0x1c96   : > { %7224 = vmatpush3.bf16.msra.mxu0 %v7784_v2  ;;  %7246 = vmatpush3.bf16.msra.mxu1 %v7785_v5 }
0x1c97   : > { %7225 = vmatprep.subr.bf16.mxu0 %v7786_v30  ;;  %7247 = vmatprep.subr.bf16.mxu1 %v7787_v9 }
0x1c9a   : > { %7226 = vmatpush3.bf16.msra.mxu0 %v7788_v10  ;;  %7248 = vmatpush3.bf16.msra.mxu1 %v7789_v11 }
0x1c9b   : > { %7227 = vmatprep.subr.bf16.mxu0 %v7790_v12  ;;  %7249 = vmatprep.subr.bf16.mxu1 %v7791_v3 }
0x1c9e   : > { %7228 = vmatpush3.bf16.msra.mxu0 %v7792_v15  ;;  %7250 = vmatpush3.bf16.msra.mxu1 %v7793_v16 }
0x1c9f   : > { %7229 = vmatprep.subr.bf16.mxu0 %v7794_v22  ;;  %7251 = vmatprep.subr.bf16.mxu1 %v7795_v27 }
0x1ca2   : > { %7230 = vmatpush3.bf16.msra.mxu0 %v7796_v29  ;;  %7252 = vmatpush3.bf16.msra.mxu1 %v7797_v32 }
0x1ca3   : > { %7231 = vmatprep.subr.bf16.mxu0 %v7798_v33  ;;  %7253 = vmatprep.subr.bf16.mxu1 %v7799_v34 }
0x1ca6   : > { %7232 = vmatpush3.bf16.msra.mxu0 %v7800_v35  ;;  %7254 = vmatpush3.bf16.msra.mxu1 %v7801_v36  ;;  %v6928_v36 = vld [vmem:[%s9064_s25] ss:$0 sm:$0xff] }
0x1d41   : > { %v7189_v41 = vpop.f32.mrf.mxu0  ;;  %v7211_v42 = vpop.f32.mrf.mxu1 }
0x1d43   : > { %v7190_v43 = vpop.f32.mrf.mxu0  ;;  %v7212_v7 = vpop.f32.mrf.mxu1 }
0x1d44   : > { %v7191_v62 = vadd.f32 %v7190_v43, %v7189_v41  ;;  %v7213_v8 = vadd.f32 %v7212_v7, %v7211_v42  ;;  %v7806_v42 = vld [vmem:[#allocation2] sm:$0xff] }
0x1d45   : > { %v7192_v48 = vpop.f32.mrf.mxu0  ;;  %v7214_v40 = vpop.f32.mrf.mxu1 }
0x1d46   : > { %v5580_v26 = vadd.f32 %v7213_v8, %v7191_v62 }
0x1d47   : > { %v7193_v24 = vpop.f32.mrf.mxu0  ;;  %v7215_v50 = vpop.f32.mrf.mxu1 }
0x1d48   : > { %v7194_v49 = vadd.f32 %v7193_v24, %v7192_v48  ;;  %v5586_v51 = vadd.f32 %v5580_v26, %v8831_v63  ;;  %v7216_v57 = vadd.f32 %v7215_v50, %v7214_v40  ;;  %v7807_v48 = vld [vmem:[#allocation2 + $0x8] sm:$0xff] }
0x1d49   : > { %v5692_v52 = vpop.f32.mrf.mxu0  ;;  %v5735_v53 = vpop.f32.mrf.mxu1 }
0x1d4a   : > { %v5583_v45 = vadd.f32 %v7216_v57, %v7194_v49  ;;  %v5693_v44 = vadd.f32 %v5692_v52, %v5601_v18  ;;  %v5736_v1 = vadd.f32 %v5735_v53, %v5609_v23 }
0x1d4b   : > { %v5694_v54 = vpop.f32.mrf.mxu0  ;;  %v5737_v28 = vpop.f32.mrf.mxu1 }
0x1d4c   : > { %v5587_v56 = vadd.f32 %v5583_v45, %v8837_v20  ;;  %v5695_v46 = vadd.f32 %v5694_v54, %v5605_v17  ;;  %v5738_v0 = vadd.f32 %v5737_v28, %v5613_v55  ;;  %v5744_v6 = vmax.f32 %v5693_v44, 0.0  ;;  %v6930_v44 = vld [vmem:[%s9068_s8] ss:$0 sm:$0xff] }
0x1d4d   : > { %v5696_v25 = vpop.f32.mrf.mxu0  ;;  %v5739_v63 = vpop.f32.mrf.mxu1  ;;  %v5746_v20 = vmax.f32 %v5736_v1, 0.0 }
0x1d4e   : > { %v5697_v38 = vadd.f32 %v5696_v25, %v5601_v18  ;;  %v5740_v14 = vadd.f32 %v5739_v63, %v5609_v23  ;;  %v5745_v59 = vmax.f32 %v5695_v46, 0.0  ;;  %v5747_v13 = vmax.f32 %v5738_v0, 0.0 }
0x1d4f   : > { %v5698_v47 = vpop.f32.mrf.mxu0  ;;  %v5741_v61 = vpop.f32.mrf.mxu1 }
0x1d50   : > { %v5699_v58 = vadd.f32 %v5698_v47, %v5605_v17  ;;  %v5748_v21 = vmax.f32 %v5697_v38, 0.0  ;;  %v5742_v19 = vadd.f32 %v5741_v61, %v5613_v55  ;;  %v5750_v4 = vmax.f32 %v5740_v14, 0.0  ;;  %v6929_v38 = vld [vmem:[%s9066_s18] ss:$0 sm:$0xff] }
0x1d52   : > { %v5749_v37 = vmax.f32 %v5699_v58, 0.0  ;;  %v5751_v60 = vmax.f32 %v5742_v19, 0.0  ;;  %v5752_v2 = vpack.c.bf16 %v5748_v21, %v5744_v6  ;;  %v5754_v30 = vpack.c.bf16 %v5750_v4, %v5746_v20 }
0x1d54   : > { %v5753_v39 = vpack.c.bf16 %v5749_v37, %v5745_v59  ;;  %v5755_v5 = vpack.c.bf16 %v5751_v60, %v5747_v13 }
0x1d56   : > { %6044 = vmatprep.mubr.bf16.mxu0 %v5753_v39  ;;  %6085 = vmatprep.mubr.bf16.mxu1 %v5755_v5 }
0x1d57   : > { %6045 = vmatmul.mubr.bf16.vlgmr.msra.gmra.mxu0 %v5752_v2  ;;  %6086 = vmatmul.mubr.bf16.vlgmr.msra.gmra.mxu1 %v5754_v30 }
0x1e17   : > { %v7233_v9 = vpop.f32.mrf.mxu0  ;;  %v7255_v10 = vpop.f32.mrf.mxu1 }
0x1e19   : > { %v7234_v11 = vpop.f32.mrf.mxu0  ;;  %v7256_v3 = vpop.f32.mrf.mxu1 }
0x1e1a   : > { %v7235_v12 = vadd.f32 %v7234_v11, %v7233_v9  ;;  %v7257_v15 = vadd.f32 %v7256_v3, %v7255_v10 }
0x1e1b   : > { %v7236_v16 = vpop.f32.mrf.mxu0  ;;  %v7258_v22 = vpop.f32.mrf.mxu1 }
0x1e1c   : > { %v6088_v27 = vadd.f32 %v7257_v15, %v7235_v12 }
0x1e1d   : > { %v7237_v29 = vpop.f32.mrf.mxu0  ;;  %v7259_v33 = vpop.f32.mrf.mxu1 }
0x1e1e   : > { %v7238_v32 = vadd.f32 %v7237_v29, %v7236_v16  ;;  %v6094_v34 = vadd.f32 %v6088_v27, %v5586_v51  ;;  %v7260_v35 = vadd.f32 %v7259_v33, %v7258_v22 }
0x1e20   : > { %v6091_v41 = vadd.f32 %v7260_v35, %v7238_v32  ;;  %v6096_v43 = vadd.f32 %v7806_v42, %v6094_v34 }
0x1e22   : > { %v6095_v62 = vadd.f32 %v6091_v41, %v5587_v56  ;;  %v6105_v7 = vadd.f32 %v6928_v36, %v6096_v43 }
0x1e24   : > { %v6109_v8 = vsel %vm1322_vm2, %v6105_v7, 0.0  ;;  %v6097_v40 = vadd.f32 %v7807_v48, %v6095_v62 }
0x1e25   : > { %6110 = vadd.xlane.f32.xlu0 %v6109_v8 }
0x1e26   : > { %v6106_v26 = vadd.f32 %v6928_v36, %v6097_v40 }
0x1e28   : > { %v6112_v24 = vsel %vm1322_vm2, %v6106_v26, 0.0 }
0x1e29   : > { %6113 = vadd.xlane.f32.xlu0 %v6112_v24 }
0x1eae   : > { %v6111_v49 = vpop.xlane.xlu0 %6110 }
0x1eaf   : > { %v6115_v50 = vmul.f32 0.03125, %v6111_v49 }
0x1eb1   : > { %v6117_v31 = vsub.f32 %v6105_v7, %v6115_v50 }
0x1eb2   : > { %v6114_v51 = vpop.xlane.xlu0 %6113 }
0x1eb3   : > { %v6116_v57 = vmul.f32 0.03125, %v6114_v51  ;;  %v6119_v52 = vmul.f32 %v6117_v31, %v6117_v31 }
0x1eb5   : > { %v6118_v53 = vsub.f32 %v6106_v26, %v6116_v57  ;;  %v6121_v17 = vsel %vm1322_vm2, %v6119_v52, 0.0 }
0x1eb6   : > { %6122 = vadd.xlane.f32.xlu1 %v6121_v17 }
0x1eb7   : > { %v6120_v45 = vmul.f32 %v6118_v53, %v6118_v53 }
0x1eb9   : > { %v6124_v18 = vsel %vm1322_vm2, %v6120_v45, 0.0 }
0x1eba   : > { %6125 = vadd.xlane.f32.xlu1 %v6124_v18 }
0x1f3f   : > { %v6123_v54 = vpop.xlane.xlu1 %6122 }
0x1f40   : > { %v6127_v55 = vmul.f32 0.03125, %v6123_v54 }
0x1f42   : > { %v6129_v23 = vadd.f32 1e-05, %v6127_v55 }
0x1f43   : > { %v6126_v28 = vpop.xlane.xlu1 %6125 }
0x1f44   : > { %7802 = vrsqrt.f32 %v6129_v23  ;;  %v6128_v56 = vmul.f32 0.03125, %v6126_v28 }
0x1f46   : > { %v6130_v25 = vadd.f32 1e-05, %v6128_v56 }
0x1f48   : > { %7804 = vrsqrt.f32 %v6130_v25 }
0x1f51   : > { %v7803_v46 = vpop.eup %7802 }
0x1f52   : > { %v6133_v63 = vmul.f32 %v7803_v46, %v6117_v31 }
0x1f54   : > { %v6141_v0 = vmul.f32 %v6929_v38, %v6133_v63 }
0x1f55   : > { %v7805_v14 = vpop.eup %7804 }
0x1f56   : > { %v6149_v47 = vadd.f32 %v6930_v44, %v6141_v0  ;;  %v6134_v1 = vmul.f32 %v7805_v14, %v6118_v53 }
0x1f58   : > { %6151 = vst.msk [vmem:[#allocation2] sm:$0xff] %vm1322_vm2, %v6149_v47  ;;  %v6142_v58 = vmul.f32 %v6929_v38, %v6134_v1  ;;  %6156 = sbr.rel (%p6931_p10) target bundleno = 8342 (0x2096), region = 140 }
0x1f5a   : > { %v6150_v61 = vadd.f32 %v6930_v44, %v6142_v58 }
0x1f5c   : > { %6152 = vst.msk [vmem:[#allocation2 + $0x8] sm:$0xff] %vm1322_vm2, %v6150_v61 }
0x1f5d   : > { %v6159_v21 = vsel %vm1322_vm2, %v6149_v47, 0.0  ;;  %v6162_v19 = vsel %vm1322_vm2, %v6150_v61, 0.0  ;;  %v6932_v16 = vld [vmem:[%s9069_s12] ss:$0 sm:$0xff] }
0x1f5e   : > { %6160 = vadd.xlane.f32.xlu0 %v6159_v21  ;;  %v6933_v27 = vld [vmem:[%s9070_s15] ss:$0 sm:$0xff] }
0x1f62   : > { %6163 = vadd.xlane.f32.xlu0 %v6162_v19 }
0x1fe7   : > { %v6161_v59 = vpop.xlane.xlu0 %6160 }
0x1fe8   : > { %v6165_v4 = vmul.f32 0.03125, %v6161_v59 }
0x1fea   : > { %v6167_v37 = vsub.f32 %v6149_v47, %v6165_v4 }
0x1feb   : > { %v6164_v6 = vpop.xlane.xlu0 %6163 }
0x1fec   : > { %v6166_v13 = vmul.f32 0.03125, %v6164_v6  ;;  %v6169_v60 = vmul.f32 %v6167_v37, %v6167_v37 }
0x1fee   : > { %v6168_v20 = vsub.f32 %v6150_v61, %v6166_v13  ;;  %v6171_v39 = vsel %vm1322_vm2, %v6169_v60, 0.0 }
0x1fef   : > { %6172 = vadd.xlane.f32.xlu1 %v6171_v39 }
0x1ff0   : > { %v6170_v2 = vmul.f32 %v6168_v20, %v6168_v20 }
0x1ff2   : > { %v6174_v5 = vsel %vm1322_vm2, %v6170_v2, 0.0 }
0x1ff3   : > { %6175 = vadd.xlane.f32.xlu1 %v6174_v5 }
0x2078   : > { %v6173_v30 = vpop.xlane.xlu1 %6172 }
0x2079   : > { %v6177_v9 = vmul.f32 0.03125, %v6173_v30 }
0x207b   : > { %v6179_v10 = vadd.f32 1e-05, %v6177_v9 }
0x207c   : > { %v6176_v11 = vpop.xlane.xlu1 %6175 }
0x207d   : > { %7808 = vrsqrt.f32 %v6179_v10  ;;  %v6178_v12 = vmul.f32 0.03125, %v6176_v11 }
0x207f   : > { %v6180_v3 = vadd.f32 1e-05, %v6178_v12 }
0x2081   : > { %7810 = vrsqrt.f32 %v6180_v3 }
0x208a   : > { %v7809_v15 = vpop.eup %7808 }
0x208b   : > { %v6183_v22 = vmul.f32 %v7809_v15, %v6167_v37 }
0x208d   : > { %v6191_v29 = vmul.f32 %v6932_v16, %v6183_v22 }
0x208e   : > { %v7811_v32 = vpop.eup %7810 }
0x208f   : > { %v6199_v33 = vadd.f32 %v6933_v27, %v6191_v29  ;;  %v6184_v34 = vmul.f32 %v7811_v32, %v6168_v20 }
0x2091   : > { %6201 = vst.msk [vmem:[#allocation3] sm:$0xff] %vm1322_vm2, %v6199_v33  ;;  %v6192_v35 = vmul.f32 %v6932_v16, %v6184_v34 }
0x2093   : > { %v6200_v36 = vadd.f32 %v6933_v27, %v6192_v35 }
0x2095   : > { %6202 = vst.msk [vmem:[#allocation3 + $0x8] sm:$0xff] %vm1322_vm2, %v6200_v36 }
0x2096 PF: > { %p6934_p11 = scmp.ne.s32.totalorder %s8014_s4, 7 }
0x2097   : > { %s9071_s10 = sld [smem:[#allocation35_spill]] (!%p6934_p11) }
0x2098   : > { %6206 = sbr.rel (%p6934_p11) target bundleno = 8865 (0x22a1), region = 144  ;;  %s9072_s24 = sld [smem:[#allocation33_spill]] (!%p6934_p11) }
0x2099   : > { %s9073_s16 = sld [smem:[#allocation34_spill]] (!%p6934_p11) }
0x209a   : > { %s9074_s25 = sld [smem:[#allocation36_spill]] (!%p6934_p11) }
0x209d   : > { %v6209_v41 = vsel %vm1322_vm2, %v6149_v47, 0.0  ;;  %v6212_v42 = vsel %vm1322_vm2, %v6150_v61, 0.0  ;;  %v7812_v31 = vld [vmem:[%s9071_s10 + $0x8] sm:$0xff]   ;;  %v7865_v51 = vmov 0.0   ;;  %vm7866_vm6 = vmmov 0   ;;  %v7813_v57 = vld [vmem:[%s9071_s10] sm:$0xff]  }
0x209e   : > { %6210 = vadd.xlane.f32.xlu0 %v6209_v41  ;;  %7552 = vmatprep.subr.bf16.mxu0 %v7865_v51  ;;  %v6935_v23 = vld [vmem:[%s9072_s24] ss:$0 sm:$0xff]  ;;  %vm6257_vm7 = vcmask 1040384  }
0x209f   : > { %7556 = vmatprep.mubr.msk.bf16.mxu0 %vm7866_vm6, %v7865_v51  ;;  %7553 = vmatpush3.bf16.msra.mxu0 %v7812_v31  ;;  %v6936_v46 = vld [vmem:[%s9073_s16] ss:$0 sm:$0xff] }
0x20a0   : > { %7554 = vmatprep.subr.bf16.mxu0 %v7865_v51 }
0x20a2   : > { %6213 = vadd.xlane.f32.xlu0 %v6212_v42 }
0x20a3   : > { %7555 = vmatpush3.bf16.msra.mxu0 %v7813_v57 }
0x2127   : > { %v6211_v43 = vpop.xlane.xlu0 %6210 }
0x2128   : > { %v6215_v62 = vmul.f32 0.03125, %v6211_v43 }
0x212a   : > { %v6217_v7 = vsub.f32 %v6149_v47, %v6215_v62 }
0x212b   : > { %v6214_v8 = vpop.xlane.xlu0 %6213 }
0x212c   : > { %v6216_v48 = vmul.f32 0.03125, %v6214_v8  ;;  %v6219_v40 = vmul.f32 %v6217_v7, %v6217_v7 }
0x212e   : > { %v6218_v26 = vsub.f32 %v6150_v61, %v6216_v48  ;;  %v6221_v24 = vsel %vm1322_vm2, %v6219_v40, 0.0  ;;  %v6937_v61 = vld [vmem:[%s9074_s25] ss:$0 sm:$0xff] }
0x212f   : > { %6222 = vadd.xlane.f32.xlu1 %v6221_v24 }
0x2130   : > { %v6220_v49 = vmul.f32 %v6218_v26, %v6218_v26 }
0x2132   : > { %v6224_v50 = vsel %vm1322_vm2, %v6220_v49, 0.0 }
0x2133   : > { %6225 = vadd.xlane.f32.xlu1 %v6224_v50 }
0x21b8   : > { %v6223_v52 = vpop.xlane.xlu1 %6222 }
0x21b9   : > { %v6227_v53 = vmul.f32 0.03125, %v6223_v52 }
0x21bb   : > { %v6229_v17 = vadd.f32 1e-05, %v6227_v53 }
0x21bc   : > { %v6226_v45 = vpop.xlane.xlu1 %6225 }
0x21bd   : > { %7814 = vrsqrt.f32 %v6229_v17  ;;  %v6228_v18 = vmul.f32 0.03125, %v6226_v45 }
0x21bf   : > { %v6230_v54 = vadd.f32 1e-05, %v6228_v18 }
0x21c1   : > { %7816 = vrsqrt.f32 %v6230_v54 }
0x21ca   : > { %v7815_v55 = vpop.eup %7814 }
0x21cb   : > { %v6233_v28 = vmul.f32 %v7815_v55, %v6217_v7 }
0x21cd   : > { %v6241_v56 = vmul.f32 %v6935_v23, %v6233_v28 }
0x21ce   : > { %v7817_v25 = vpop.eup %7816 }
0x21cf   : > { %v6234_v38 = vmul.f32 %v7817_v25, %v6218_v26  ;;  %v6249_v44 = vadd.f32 %v6936_v46, %v6241_v56 }
0x21d1   : > { %v6242_v63 = vmul.f32 %v6935_v23, %v6234_v38  ;;  %v6252_v14 = vrot.slane %v6249_v44, 7 }
0x21d3   : > { %v6250_v0 = vadd.f32 %v6936_v46, %v6242_v63 }
0x21d5   : > { %v6255_v47 = vrot.slane %v6250_v0, 6 }
0x21d7   : > { %v6258_v1 = vsel %vm6257_vm7, %v6252_v14, %v6255_v47 }
0x21d8   : > { %v6259_v58 = vpack.c.bf16 %v6258_v1, %v6258_v1 }
0x21da   : > { %7557 = vmatmul.mubr.msk.bf16.vlgmr.msra.gmra.mxu0 %vm1322_vm2, %v6259_v58 }
0x229a   : > { %v6320_v21 = vpop.f32.mrf.mxu0 }
0x229b   : > { %v6321_v19 = vadd.f32 %v6937_v61, %v6320_v21 }
0x229c   : > { %v7558_v59 = vpop.f32.mrf.mxu0 }
0x229d   : > { %6326 = vst [vmem:[#allocation4] sm:$0x3] %v6321_v19 }
0x229e   : > { %v6323_v4 = vpop.f32.mrf.mxu0 }
0x22a0   : > { %v7559_v37 = vpop.f32.mrf.mxu0 }
0x22a1 PF: > { %p7566_p12 = scmp.eq.s32.totalorder %s8014_s4, 7  ;;  %s7867_s21 = smov [#allocation4]  }
0x22a2   : > { %s6334_s0 = sshll.u32 %s7867_s21, 4  ;;  %s6335_s0 = int_to_ptr.vmem [resolvable:$true] %s6334_s0 }
0x22a3   : > { %s7818_s19 = scalar_lea.vmem %s6335_s0, 32  ;;  %p7825_p2 = scmp.lt.s32.totalorder %s6335_s0, %s6335_s0 }
0x22a4   : > { %p7819_p13 = scmp.ne.s32.totalorder %s6335_s0, %s7818_s19  ;;  %p7826_p3 = scmp.lt.s32.totalorder %s7818_s19, %s7818_s19 }
0x22a6   : > { %p7820_p0 = pnand %p7819_p13, %p7566_p12  ;;  %p7827_p4 = por %p7826_p3, %p7825_p2 }
0x22a8   : > { %p7821_p1 = pneg %p7820_p0 }
0x22aa   : > { %p7828_p5 = pnand %p7827_p4, %p7821_p1 }
0x22ac   : > { %7831 = shalt.err (!%p7828_p5)
}
0x22ad   : > { %s9075_s1 = sld [smem:[#allocation37_spill]] }
0x22b3   : > { %7563 = dma.vmem_to_hbm [thread:$0]  (%p7566_p12), %s6335_s0, 32, %s9075_s1, [#allocation5]  }
0x22b4   : > { %7847 = dma.done.wait (%p7566_p12), [#allocation5], 32  }
0x22b5   : > { %7849 = vsyncadd (%p7566_p12), [#allocation5], 4294967264 }
0x22b6 PF: > { %s9076_s5 = sld [smem:[#allocation7_spill]] }
0x22bc   : > { %s38_s7 = sadd.s32 1, %s9076_s5  }
0x22bd   : > { %p35_p6 = scmp.ge.s32.totalorder %s38_s7, 10  }
0x22bf   :  { %37 = sbr.rel (!%p35_p6) target bundleno = 29 (0x1d), region = 234 }
0x22c4   :  { %6347 = vsyncpa [#allocation5], 1 }
0x22c5   :  { %6349 = vsyncpa [#allocation5 + $0x1], 1 }

</bundles_post_ra>
